<compile_context>
chip_gen: v5e
topology: v5e:2x2
jax: 0.10.0
libtpu: 0.0.40
codegen_flags: <defaults>
</compile_context>

<pallas_src>
import jax
import jax.numpy as jnp
from jax.experimental import pallas as pl
from jax.experimental.pallas import tpu as pltpu

HIDDEN = 32                       # config.hidden
DENSE_H = 128                     # hidden width inside every Dense block
EMB_APP = 100                     # pretrained app-behave word2vec dim
EMB_TIME = 16                     # cut/qcut time embedding dim
D_IN = EMB_APP + 2 * EMB_TIME     # 132 = GRU input width (reference only)
NHEAD = 4
GX_W = 3 * HIDDEN                 # 96 = streamed gate pre-activation width
OUT_LANES = 128                   # packed, lane-dense output width
META_W = 16                       # col 0: valid len, cols 8:16: label one-hot
assert 32 + HIDDEN <= OUT_LANES
assert 2 * NHEAD < 32

# packed-slab row offsets (big sub-arrays start on 8-row boundaries)
R96_WHH, R96_BHH, S96_ROWS = 0, 32, 40
R_W1, R_B1, R_B2, R_BB = 0, 32, 33, 34
R_W2, R_WB, R_WP1, R_WP2 = 40, 168, 680, 712
S128_ROWS = 744
R512_WA, R512_BA, S512_ROWS = 0, 128, 136


def _round_up(x, m):
    return (x + m - 1) // m * m


def _gelu(x):
    # the module's custom GeLU (tanh approximation), verbatim
    return 0.5 * x * (1.0 + jnp.tanh(x * 0.7978845608 * (1.0 + 0.044715 * x * x)))


def _sigmoid(x):
    return 1.0 / (1.0 + jnp.exp(-x))


# --------------------------- Pallas kernel ---------------------------------

def _app_behave_kernel(
    gx_ref,      # (T, Bt, 3H) f32  folded gate pre-activations (b_ih included)
    meta_ref,    # (Bt, 16)    i32  col0 = valid len, cols 8:16 = label one-hot
    s96_ref,     # (40, 96)         GRU: whh rows 0:32, b_hh row 32
    s128_ref,    # (744, 128)       w1/b1/b2/bb/w2/wb/wp1/wp2 packed slab
    s512_ref,    # (136, 512)       fused head Linear1 (rows 32:64) + bias row 128
    out_ref,     # (Bt, 128): lanes 0:8 logits, lane 8 per-example loss,
                 #            lanes 32:64 hidden
    h_scr,       # (T, Bt, H) f32 scratch: GRU hidden states
):
    T, Bt, _ = gx_ref.shape
    H = HIDDEN

    whh = s96_ref[R96_WHH:R96_WHH + H, :]            # (H, 3H)   gate order r|z|n
    b_hh = s96_ref[R96_BHH:R96_BHH + 1, :]           # (1, 3H)

    # ---- GRU recurrence: only the small recurrent matmul + gates remain on
    #      the serial critical path (input projection folded into gx). -------
    def gru_step(t, h):
        gx = gx_ref[t]                               # (Bt, 3H)
        gh = jnp.dot(h, whh, preferred_element_type=jnp.float32) + b_hh
        rz = _sigmoid(gx[:, 0:2 * H] + gh[:, 0:2 * H])   # r|z in one pass
        r = rz[:, 0:H]
        z = rz[:, H:2 * H]
        n = jnp.tanh(gx[:, 2 * H:3 * H] + r * gh[:, 2 * H:3 * H])
        h_new = (1.0 - z) * n + z * h
        h_scr[t] = h_new
        return h_new

    _ = jax.lax.fori_loop(0, T, gru_step, jnp.zeros((Bt, H), jnp.float32),
                          unroll=min(T, 8))

    # ---- MLPAttentionPool, hoisted out of the serial loop: one batched
    #      (T*Bt,H) projection, masked softmax over time, weighted sum. ------
    wp1 = s128_ref[R_WP1:R_WP1 + H, 0:H]             # (H, H)
    wp2 = s128_ref[R_WP2:R_WP2 + H, 0:1]             # (H, 1)
    h_all = h_scr[...]                               # (T, Bt, H)
    proj = jnp.tanh(jnp.dot(h_all.reshape(T * Bt, H), wp1,
                            preferred_element_type=jnp.float32))
    s = jnp.dot(proj, wp2,
                preferred_element_type=jnp.float32).reshape(T, Bt, 1)
    lens = meta_ref[:, 0:1]                          # (Bt, 1) int32
    t_iota = jax.lax.broadcasted_iota(jnp.int32, (T, Bt, 1), 0)
    s = jnp.where(t_iota < lens[None, :, :], s, -1e30)
    m = jnp.max(s, axis=0, keepdims=True)            # (1, Bt, 1)
    e = jnp.exp(s - m)                               # masked steps -> exactly 0
    l = jnp.sum(e, axis=0)                           # (Bt, 1), >= 1 (lens >= 1)
    pooled = jnp.sum(e * h_all, axis=0) / l          # (Bt, H)

    # ---- dense_hidden: Linear(H,128) -> GeLU -> Dropout(0.0) -> Linear(128,H)
    #      second Linear pre-packed so `hidden` lands in lanes 32:64. --------
    w1 = s128_ref[R_W1:R_W1 + H, :]
    b1 = s128_ref[R_B1:R_B1 + 1, :]
    w2 = s128_ref[R_W2:R_W2 + DENSE_H, :]
    b2 = s128_ref[R_B2:R_B2 + 1, :]
    a1 = _gelu(jnp.dot(pooled, w1, preferred_element_type=jnp.float32) + b1)
    hidden_pad = jnp.dot(a1, w2, preferred_element_type=jnp.float32) + b2  # (Bt,128)

    # ---- 4 fused heads: one (.,512) GeLU matmul + one block-diagonal
    #      (512,128) matmul; head h class-0 -> lane h, class-1 -> lane 4+h. --
    wa = s512_ref[R512_WA:R512_WA + DENSE_H, :]
    ba = s512_ref[R512_BA:R512_BA + 1, :]
    zz = _gelu(jnp.dot(hidden_pad, wa, preferred_element_type=jnp.float32) + ba)
    wb = s128_ref[R_WB:R_WB + NHEAD * DENSE_H, :]
    bb = s128_ref[R_BB:R_BB + 1, :]
    y = jnp.dot(zz, wb, preferred_element_type=jnp.float32) + bb           # (Bt,128)

    # ---- summed binary CrossEntropy over the 4 heads, lane-vectorized ------
    ya = y[:, 0:NHEAD]                               # class-0 logits, heads 0..3
    yb = y[:, NHEAD:2 * NHEAD]                       # class-1 logits
    mx = jnp.maximum(ya, yb)
    lse = mx + jnp.log(jnp.exp(ya - mx) + jnp.exp(yb - mx))                # (Bt,4)
    lab_sel = meta_ref[:, 2 * NHEAD:4 * NHEAD].astype(jnp.float32)         # (Bt,8)
    chosen = jnp.sum(y[:, 0:2 * NHEAD] * lab_sel, axis=-1, keepdims=True)
    per_ex = jnp.sum(lse, axis=-1, keepdims=True) - chosen                 # (Bt,1)

    col = jax.lax.broadcasted_iota(jnp.int32, (Bt, OUT_LANES), 1)
    out_ref[...] = y + hidden_pad + per_ex * (col == 2 * NHEAD).astype(jnp.float32)


# --------------------------- wrapper ----------------------------------------

def _vmem_limit_bytes():
    # v7x: 64 MiB VMEM per TensorCore -> 48 MiB limit; v5e/v6e: 128 MiB -> 96 MiB.
    try:
        cap = int(pltpu.get_tpu_info().vmem_capacity_bytes)
    except Exception:
        cap = 64 * 1024 * 1024
    return max(16 * 1024 * 1024, min(96 * 1024 * 1024, (cap * 3) // 4))


def _pick_block_b(B, T, vmem_limit):
    # rough per-example VMEM bytes: streamed gx tile (96 -> 128 lanes f32, up
    # to triple-buffered) + (T,Bt,H) h scratch + transient attention values.
    per_ex = 6 * T * 128 * 4
    bb = (int(vmem_limit * 0.6) // max(per_ex, 1)) // 8 * 8
    bb = max(8, min(512, bb))
    bb = min(bb, _round_up(B, 8))
    if B > 8:
        # v7x has 2 TensorCores and the batch axis is the only parallel grid
        # axis: make sure it gets at least 2 steps so both cores have work.
        bb = min(bb, _round_up((B + 1) // 2, 8))
    return bb


def _pallas_forward(gx_tbd, meta, slabs, block_b, vmem_limit):
    T, B_pad, _ = gx_tbd.shape
    nb = B_pad // block_b

    gx_kwargs = {}
    if nb >= 4:
        # deeper buffering of the single large stream (helps v5e/v6e most)
        gx_kwargs["pipeline_mode"] = pl.Buffered(3)

    in_specs = [
        pl.BlockSpec((T, block_b, GX_W), lambda i: (0, i, 0), **gx_kwargs),
        pl.BlockSpec((block_b, META_W), lambda i: (i, 0)),
        # weight slabs: full block, constant index_map -> stay VMEM-resident
        pl.BlockSpec((S96_ROWS, GX_W), lambda i: (0, 0)),
        pl.BlockSpec((S128_ROWS, DENSE_H), lambda i: (0, 0)),
        pl.BlockSpec((S512_ROWS, NHEAD * DENSE_H), lambda i: (0, 0)),
    ]
    out_spec = pl.BlockSpec((block_b, OUT_LANES), lambda i: (i, 0))

    fn = pl.pallas_call(
        _app_behave_kernel,
        out_shape=jax.ShapeDtypeStruct((B_pad, OUT_LANES), jnp.float32),
        grid_spec=pltpu.PrefetchScalarGridSpec(
            num_scalar_prefetch=0,
            grid=(nb,),
            in_specs=in_specs,
            out_specs=out_spec,
            scratch_shapes=[pltpu.VMEM((T, block_b, HIDDEN), jnp.float32)]),
        compiler_params=pltpu.CompilerParams(
            dimension_semantics=("parallel",),
            vmem_limit_bytes=vmem_limit),
    )
    return fn(gx_tbd, meta, *slabs)


def pack_kernel_params(p):
    """Packs raw (PyTorch-layout-equivalent) params into three fused slabs."""
    H = HIDDEN
    s96 = jnp.zeros((S96_ROWS, GX_W), jnp.float32)
    s96 = s96.at[R96_WHH:R96_WHH + H, :].set(p["gru_whh"])
    s96 = s96.at[R96_BHH, :].set(p["gru_bhh"])

    s128 = jnp.zeros((S128_ROWS, DENSE_H), jnp.float32)
    s128 = s128.at[R_W1:R_W1 + H, :].set(p["dense_w1"])
    s128 = s128.at[R_B1, :].set(p["dense_b1"])
    s128 = s128.at[R_W2:R_W2 + DENSE_H, 32:32 + H].set(p["dense_w2"])
    s128 = s128.at[R_B2, 32:32 + H].set(p["dense_b2"])
    s128 = s128.at[R_WP1:R_WP1 + H, 0:H].set(p["attn_w1"])
    s128 = s128.at[R_WP2:R_WP2 + H, 0].set(p["attn_w2"][:, 0])

    s512 = jnp.zeros((S512_ROWS, NHEAD * DENSE_H), jnp.float32)
    for h in range(NHEAD):
        # head Linear1 feeds from `hidden` packed at lanes 32:64
        s512 = s512.at[R512_WA + 32:R512_WA + 32 + H,
                       h * DENSE_H:(h + 1) * DENSE_H].set(p[f"head{h}_w1"])
        s512 = s512.at[R512_BA, h * DENSE_H:(h + 1) * DENSE_H].set(p[f"head{h}_b1"])
        # head Linear2: class-0 logit -> lane h, class-1 logit -> lane NHEAD+h
        s128 = s128.at[R_WB + h * DENSE_H:R_WB + (h + 1) * DENSE_H, h].set(
            p[f"head{h}_w2"][:, 0])
        s128 = s128.at[R_WB + h * DENSE_H:R_WB + (h + 1) * DENSE_H, NHEAD + h].set(
            p[f"head{h}_w2"][:, 1])
        s128 = s128.at[R_BB, h].set(p[f"head{h}_b2"][0])
        s128 = s128.at[R_BB, NHEAD + h].set(p[f"head{h}_b2"][1])
    return s96, s128, s512


def app_behave_forward(batch, params, *, block_b=None):
    ids = batch["app_behave"].astype(jnp.int32)
    # guard: a zero-length sequence would make the masked softmax NaN
    lens = jnp.maximum(batch["app_behave_len"].astype(jnp.int32), 1)
    tcut = batch["app_behave_time_cut"].astype(jnp.int32)
    tqcut = batch["app_behave_time_qcut"].astype(jnp.int32)
    labels = jnp.stack([batch["labels1"], batch["labels2"],
                        batch["labels3"], batch["labels4"]],
                       axis=1).astype(jnp.int32)                      # (B, 4)
    B, T = ids.shape

    # Fold the frozen embeddings + GRU input projection + b_ih into per-token
    # gate pre-activations gx (forward() uses cut_time_embeddings for BOTH the
    # cut and qcut ids, faithfully reproduced here).
    wih = params["gru_wih"]                                           # (132, 3H)
    app_tab = jnp.dot(params["app_behave_weight"], wih[:EMB_APP])
    cut_tab = jnp.dot(params["cut_time_emb"], wih[EMB_APP:EMB_APP + EMB_TIME])
    qcut_tab = jnp.dot(params["cut_time_emb"], wih[EMB_APP + EMB_TIME:])
    gx = (jnp.take(app_tab, ids, axis=0) + jnp.take(cut_tab, tcut, axis=0)
          + jnp.take(qcut_tab, tqcut, axis=0) + params["gru_bih"][None, None, :])
    gx = jnp.transpose(gx, (1, 0, 2)).astype(jnp.float32)             # (T, B, 3H)

    vmem_limit = _vmem_limit_bytes()
    if block_b is None:
        block_b = _pick_block_b(B, T, vmem_limit)
    B_pad = _round_up(B, block_b)
    if B_pad != B:
        pad = B_pad - B
        gx = jnp.pad(gx, ((0, 0), (0, pad), (0, 0)))
        lens = jnp.pad(lens, (0, pad), constant_values=1)
        labels = jnp.pad(labels, ((0, pad), (0, 0)))

    # merged per-example metadata: col 0 = valid length, cols 8:16 = one-hot
    # of the chosen-class lane (class0 of head h -> lane h, class1 -> lane 4+h)
    lane_idx = jnp.arange(NHEAD)[None, :] + NHEAD * labels            # (B_pad, 4)
    lab_sel = jnp.sum(jax.nn.one_hot(lane_idx, 2 * NHEAD, dtype=jnp.int32), axis=1)
    meta = jnp.zeros((B_pad, META_W), jnp.int32)
    meta = meta.at[:, 0].set(lens)
    meta = meta.at[:, 2 * NHEAD:4 * NHEAD].set(lab_sel)

    slabs = pack_kernel_params(params)
    out = _pallas_forward(gx, meta, slabs, block_b, vmem_limit)

    ys = tuple(jnp.stack([out[:B, h], out[:B, NHEAD + h]], axis=1)
               for h in range(NHEAD))
    hidden = out[:B, 32:32 + HIDDEN]
    loss = jnp.sum(out[:B, 2 * NHEAD]) / B     # true-B mean, padded rows dropped
    return (loss,) + ys + (hidden,)


# --------------------------- parameters --------------------------------------

def init_raw_params(key, app_vocab=50, time_vocab=64):
    H = HIDDEN
    keys = jax.random.split(key, 32)
    k = iter(keys)

    def xavier(kk, fi, fo):
        lim = (6.0 / (fi + fo)) ** 0.5
        return jax.random.uniform(kk, (fi, fo), jnp.float32, -lim, lim)

    def uni(kk, shape, bound):
        return jax.random.uniform(kk, shape, jnp.float32, -bound, bound)

    gb = 1.0 / (H ** 0.5)
    p = {
        "app_behave_weight": jax.random.normal(next(k), (app_vocab, EMB_APP), jnp.float32),
        "cut_time_emb": jax.random.normal(next(k), (time_vocab, EMB_TIME), jnp.float32),
        # GRU stored input-major (in, 3H) so forward is x @ W; gate order [r|z|n]
        "gru_wih": uni(next(k), (D_IN, 3 * H), gb),
        "gru_whh": uni(next(k), (H, 3 * H), gb),
        "gru_bih": uni(next(k), (3 * H,), gb),
        "gru_bhh": uni(next(k), (3 * H,), gb),
        # MLPAttentionPool (both Linears bias-free)
        "attn_w1": xavier(next(k), H, H),
        "attn_w2": xavier(next(k), H, 1),
        # dense_hidden = Dense(H, H): Linear(H,128) -> GeLU -> Linear(128,H)
        "dense_w1": xavier(next(k), H, DENSE_H),
        "dense_b1": uni(next(k), (DENSE_H,), 1.0 / (H ** 0.5)),
        "dense_w2": xavier(next(k), DENSE_H, H),
        "dense_b2": uni(next(k), (H,), 1.0 / (DENSE_H ** 0.5)),
    }
    for h in range(NHEAD):
        p[f"head{h}_w1"] = xavier(next(k), H, DENSE_H)
        p[f"head{h}_b1"] = uni(next(k), (DENSE_H,), 1.0 / (H ** 0.5))
        p[f"head{h}_w2"] = xavier(next(k), DENSE_H, 2)
        p[f"head{h}_b2"] = uni(next(k), (2,), 1.0 / (DENSE_H ** 0.5))
    return p


# --------------------------- pure-JAX reference ------------------------------

def reference_forward(batch, params):
    ids = batch["app_behave"].astype(jnp.int32)
    lens = batch["app_behave_len"].astype(jnp.int32)
    tcut = batch["app_behave_time_cut"].astype(jnp.int32)
    tqcut = batch["app_behave_time_qcut"].astype(jnp.int32)

    app_e = jnp.take(params["app_behave_weight"], ids, axis=0)
    cut_e = jnp.take(params["cut_time_emb"], tcut, axis=0)
    qcut_e = jnp.take(params["cut_time_emb"], tqcut, axis=0)
    seq = jnp.concatenate([app_e, cut_e, qcut_e], axis=-1).astype(jnp.float32)

    B, T = ids.shape
    H = HIDDEN
    wih, whh = params["gru_wih"], params["gru_whh"]
    b_ih, b_hh = params["gru_bih"], params["gru_bhh"]
    h = jnp.zeros((B, H), jnp.float32)
    outs = []
    for t in range(T):
        x_t = seq[:, t, :]
        gx = x_t @ wih + b_ih
        gh = h @ whh + b_hh
        r = _sigmoid(gx[:, :H] + gh[:, :H])
        z = _sigmoid(gx[:, H:2 * H] + gh[:, H:2 * H])
        n = jnp.tanh(gx[:, 2 * H:] + r * gh[:, 2 * H:])
        h = (1.0 - z) * n + z * h
        outs.append(h)
    rnn_out = jnp.stack(outs, axis=1)                        # (B, T, H)
    # pack_padded_sequence zeroes rnn_out past valid_len in PyTorch; the masked
    # attention below gives those positions exactly zero weight, so the pooled
    # output (and everything downstream) is identical.
    scores = (jnp.tanh(rnn_out @ params["attn_w1"]) @ params["attn_w2"])[..., 0]
    mask = jnp.arange(T)[None, :] < lens[:, None]
    scores = jnp.where(mask, scores, -jnp.inf)
    attn = jax.nn.softmax(scores, axis=-1)
    pooled = jnp.sum(attn[..., None] * rnn_out, axis=1)      # (B, H)

    hidden = (_gelu(pooled @ params["dense_w1"] + params["dense_b1"])
              @ params["dense_w2"] + params["dense_b2"])
    labels = [batch["labels1"], batch["labels2"], batch["labels3"], batch["labels4"]]
    ys, loss = [], 0.0
    for i in range(NHEAD):
        y = (_gelu(hidden @ params[f"head{i}_w1"] + params[f"head{i}_b1"])
             @ params[f"head{i}_w2"] + params[f"head{i}_b2"])
        ys.append(y)
        logp = jax.nn.log_softmax(y, axis=-1)
        lab = labels[i].astype(jnp.int32).reshape(-1, 1)
        loss = loss + jnp.mean(-jnp.take_along_axis(logp, lab, axis=1))
    return (loss,) + tuple(ys) + (hidden,)


# --------------------------- demo / self-test --------------------------------

if __name__ == "__main__":
    # full-precision f32 matmuls in the reference so it matches the kernel
    jax.config.update("jax_default_matmul_precision", "highest")

    B, T, VOCAB = 16, 8, 50
    key = jax.random.PRNGKey(0)
    k_id, k_tc, k_tq, k_len, k_lab, k_par = jax.random.split(key, 6)
    batch = {
        "app_behave": jax.random.randint(k_id, (B, T), 1, VOCAB, jnp.int32),
        "app_behave_time_cut": jax.random.randint(k_tc, (B, T), 0, 64, jnp.int32),
        "app_behave_time_qcut": jax.random.randint(k_tq, (B, T), 0, 64, jnp.int32),
        "app_behave_len": jax.random.randint(k_len, (B,), 1, T + 1, jnp.int32),
    }
    kl = jax.random.split(k_lab, 4)
    for i in range(4):
        batch[f"labels{i + 1}"] = jax.random.randint(kl[i], (B,), 0, 2, jnp.int32)

    params = init_raw_params(k_par, app_vocab=VOCAB)

    out = app_behave_forward(batch, params)
    out = jax.block_until_ready(out)
    loss, y1, y2, y3, y4, hidden = out

    ref_loss, r1, r2, r3, r4, r_hidden = reference_forward(batch, params)

    assert jnp.allclose(loss, ref_loss, rtol=2e-3, atol=2e-3), (loss, ref_loss)
    for got, want in zip((y1, y2, y3, y4, hidden), (r1, r2, r3, r4, r_hidden)):
        assert jnp.allclose(got, want, rtol=2e-3, atol=2e-3)

    print("KERNEL_OK")
</pallas_src>

<mosaic_0001>
module attributes {stable_mosaic.version = 11 : i64} {
  func.func @_app_behave_kernel(%arg0: i32, %arg1: memref<8x8x96xf32, #tpu.memory_space<vmem>>, %arg2: memref<8x16xi32, #tpu.memory_space<vmem>>, %arg3: memref<40x96xf32, #tpu.memory_space<vmem>>, %arg4: memref<744x128xf32, #tpu.memory_space<vmem>>, %arg5: memref<136x512xf32, #tpu.memory_space<vmem>>, %arg6: memref<8x128xf32, #tpu.memory_space<vmem>>, %arg7: memref<8x8x32xf32, #tpu.memory_space<vmem>>) attributes {dimension_semantics = [#tpu.dimension_semantics<parallel>], iteration_bounds = array<i64: 2>, scalar_prefetch = 0 : i64, scratch_operands = 1 : i64, tpu.core_type = #tpu.core_type<tc>, window_params = [{transform_indices = @transform_0, window_bounds = array<i64: 8, 8, 96>}, {transform_indices = @transform_1, window_bounds = array<i64: 8, 16>}, {pipeline_mode = #tpu.pipeline_mode<synchronous>, transform_indices = @transform_2, window_bounds = array<i64: 40, 96>}, {pipeline_mode = #tpu.pipeline_mode<synchronous>, transform_indices = @transform_3, window_bounds = array<i64: 744, 128>}, {pipeline_mode = #tpu.pipeline_mode<synchronous>, transform_indices = @transform_4, window_bounds = array<i64: 136, 512>}, {transform_indices = @transform_5, window_bounds = array<i64: 8, 128>}]} {
    %c0 = arith.constant 0 : index
    %c0_0 = arith.constant 0 : index
    %0 = vector.load %arg3[%c0, %c0_0] : memref<40x96xf32, #tpu.memory_space<vmem>>, vector<32x96xf32>
    %c32 = arith.constant 32 : index
    %c0_1 = arith.constant 0 : index
    %1 = vector.load %arg3[%c32, %c0_1] : memref<40x96xf32, #tpu.memory_space<vmem>>, vector<1x96xf32>
    %cst = arith.constant 0.000000e+00 : f32
    %2 = vector.broadcast %cst : f32 to vector<8x32xf32>
    %c0_i32 = arith.constant 0 : i32
    %3 = arith.index_cast %c0_i32 : i32 to index
    %c0_2 = arith.constant 0 : index
    %c0_3 = arith.constant 0 : index
    %4 = vector.load %arg1[%3, %c0_2, %c0_3] : memref<8x8x96xf32, #tpu.memory_space<vmem>>, vector<1x8x96xf32>
    %5 = vector.shape_cast %4 : vector<1x8x96xf32> to vector<8x96xf32>
    %cst_4 = arith.constant dense<0.000000e+00> : vector<8x96xf32>
    %6 = tpu.matmul %2, %0, %cst_4 {dimension_numbers = #tpu.dot_dimension_numbers<[1], [0], [0], [1], [0, 0, 1, 1], [], []>, precision = #tpu.contract_precision<fp32>} : vector<8x32xf32>, vector<32x96xf32>, vector<8x96xf32> -> vector<8x96xf32>
    %7 = vector.broadcast %1 : vector<1x96xf32> to vector<8x96xf32>
    %8 = arith.addf %6, %7 : vector<8x96xf32>
    %9 = vector.extract_strided_slice %5 {offsets = [0, 0], sizes = [8, 64], strides = [1, 1]} : vector<8x96xf32> to vector<8x64xf32>
    %10 = vector.extract_strided_slice %8 {offsets = [0, 0], sizes = [8, 64], strides = [1, 1]} : vector<8x96xf32> to vector<8x64xf32>
    %11 = arith.addf %9, %10 : vector<8x64xf32>
    %cst_5 = arith.constant 0.000000e+00 : f32
    %12 = vector.broadcast %cst_5 : f32 to vector<8x64xf32>
    %13 = arith.subf %12, %11 : vector<8x64xf32>
    %14 = math.exp %13 : vector<8x64xf32>
    %cst_6 = arith.constant 1.000000e+00 : f32
    %15 = vector.broadcast %cst_6 : f32 to vector<8x64xf32>
    %16 = arith.addf %15, %14 : vector<8x64xf32>
    %cst_7 = arith.constant 1.000000e+00 : f32
    %17 = vector.broadcast %cst_7 : f32 to vector<8x64xf32>
    %18 = arith.divf %17, %16 : vector<8x64xf32>
    %19 = vector.extract_strided_slice %18 {offsets = [0, 0], sizes = [8, 32], strides = [1, 1]} : vector<8x64xf32> to vector<8x32xf32>
    %20 = vector.extract_strided_slice %18 {offsets = [0, 32], sizes = [8, 32], strides = [1, 1]} : vector<8x64xf32> to vector<8x32xf32>
    %21 = vector.extract_strided_slice %5 {offsets = [0, 64], sizes = [8, 32], strides = [1, 1]} : vector<8x96xf32> to vector<8x32xf32>
    %22 = vector.extract_strided_slice %8 {offsets = [0, 64], sizes = [8, 32], strides = [1, 1]} : vector<8x96xf32> to vector<8x32xf32>
    %23 = arith.mulf %19, %22 : vector<8x32xf32>
    %24 = arith.addf %21, %23 : vector<8x32xf32>
    %25 = math.tanh %24 : vector<8x32xf32>
    %cst_8 = arith.constant 1.000000e+00 : f32
    %26 = vector.broadcast %cst_8 : f32 to vector<8x32xf32>
    %27 = arith.subf %26, %20 : vector<8x32xf32>
    %28 = arith.mulf %27, %25 : vector<8x32xf32>
    %29 = arith.mulf %20, %2 : vector<8x32xf32>
    %30 = arith.addf %28, %29 : vector<8x32xf32>
    %31 = arith.index_cast %c0_i32 : i32 to index
    %c0_9 = arith.constant 0 : index
    %c0_10 = arith.constant 0 : index
    %32 = vector.load %arg7[%31, %c0_9, %c0_10] : memref<8x8x32xf32, #tpu.memory_space<vmem>>, vector<1x8x32xf32>
    %33 = vector.shape_cast %32 : vector<1x8x32xf32> to vector<8x32xf32>
    %34 = vector.shape_cast %30 : vector<8x32xf32> to vector<1x8x32xf32>
    tpu.vector_store %arg7[%31, %c0_9, %c0_10], %34 {strides = array<i32>} : memref<8x8x32xf32, #tpu.memory_space<vmem>>, vector<1x8x32xf32>,
    %c1_i32 = arith.constant 1 : i32
    %35 = arith.index_cast %c1_i32 : i32 to index
    %c0_11 = arith.constant 0 : index
    %c0_12 = arith.constant 0 : index
    %36 = vector.load %arg1[%35, %c0_11, %c0_12] : memref<8x8x96xf32, #tpu.memory_space<vmem>>, vector<1x8x96xf32>
    %37 = vector.shape_cast %36 : vector<1x8x96xf32> to vector<8x96xf32>
    %cst_13 = arith.constant dense<0.000000e+00> : vector<8x96xf32>
    %38 = tpu.matmul %30, %0, %cst_13 {dimension_numbers = #tpu.dot_dimension_numbers<[1], [0], [0], [1], [0, 0, 1, 1], [], []>, precision = #tpu.contract_precision<fp32>} : vector<8x32xf32>, vector<32x96xf32>, vector<8x96xf32> -> vector<8x96xf32>
    %39 = vector.broadcast %1 : vector<1x96xf32> to vector<8x96xf32>
    %40 = arith.addf %38, %39 : vector<8x96xf32>
    %41 = vector.extract_strided_slice %37 {offsets = [0, 0], sizes = [8, 64], strides = [1, 1]} : vector<8x96xf32> to vector<8x64xf32>
    %42 = vector.extract_strided_slice %40 {offsets = [0, 0], sizes = [8, 64], strides = [1, 1]} : vector<8x96xf32> to vector<8x64xf32>
    %43 = arith.addf %41, %42 : vector<8x64xf32>
    %cst_14 = arith.constant 0.000000e+00 : f32
    %44 = vector.broadcast %cst_14 : f32 to vector<8x64xf32>
    %45 = arith.subf %44, %43 : vector<8x64xf32>
    %46 = math.exp %45 : vector<8x64xf32>
    %cst_15 = arith.constant 1.000000e+00 : f32
    %47 = vector.broadcast %cst_15 : f32 to vector<8x64xf32>
    %48 = arith.addf %47, %46 : vector<8x64xf32>
    %cst_16 = arith.constant 1.000000e+00 : f32
    %49 = vector.broadcast %cst_16 : f32 to vector<8x64xf32>
    %50 = arith.divf %49, %48 : vector<8x64xf32>
    %51 = vector.extract_strided_slice %50 {offsets = [0, 0], sizes = [8, 32], strides = [1, 1]} : vector<8x64xf32> to vector<8x32xf32>
    %52 = vector.extract_strided_slice %50 {offsets = [0, 32], sizes = [8, 32], strides = [1, 1]} : vector<8x64xf32> to vector<8x32xf32>
    %53 = vector.extract_strided_slice %37 {offsets = [0, 64], sizes = [8, 32], strides = [1, 1]} : vector<8x96xf32> to vector<8x32xf32>
    %54 = vector.extract_strided_slice %40 {offsets = [0, 64], sizes = [8, 32], strides = [1, 1]} : vector<8x96xf32> to vector<8x32xf32>
    %55 = arith.mulf %51, %54 : vector<8x32xf32>
    %56 = arith.addf %53, %55 : vector<8x32xf32>
    %57 = math.tanh %56 : vector<8x32xf32>
    %cst_17 = arith.constant 1.000000e+00 : f32
    %58 = vector.broadcast %cst_17 : f32 to vector<8x32xf32>
    %59 = arith.subf %58, %52 : vector<8x32xf32>
    %60 = arith.mulf %59, %57 : vector<8x32xf32>
    %61 = arith.mulf %52, %30 : vector<8x32xf32>
    %62 = arith.addf %60, %61 : vector<8x32xf32>
    %63 = arith.index_cast %c1_i32 : i32 to index
    %c0_18 = arith.constant 0 : index
    %c0_19 = arith.constant 0 : index
    %64 = vector.load %arg7[%63, %c0_18, %c0_19] : memref<8x8x32xf32, #tpu.memory_space<vmem>>, vector<1x8x32xf32>
    %65 = vector.shape_cast %64 : vector<1x8x32xf32> to vector<8x32xf32>
    %66 = vector.shape_cast %62 : vector<8x32xf32> to vector<1x8x32xf32>
    tpu.vector_store %arg7[%63, %c0_18, %c0_19], %66 {strides = array<i32>} : memref<8x8x32xf32, #tpu.memory_space<vmem>>, vector<1x8x32xf32>,
    %c2_i32 = arith.constant 2 : i32
    %67 = arith.index_cast %c2_i32 : i32 to index
    %c0_20 = arith.constant 0 : index
    %c0_21 = arith.constant 0 : index
    %68 = vector.load %arg1[%67, %c0_20, %c0_21] : memref<8x8x96xf32, #tpu.memory_space<vmem>>, vector<1x8x96xf32>
    %69 = vector.shape_cast %68 : vector<1x8x96xf32> to vector<8x96xf32>
    %cst_22 = arith.constant dense<0.000000e+00> : vector<8x96xf32>
    %70 = tpu.matmul %62, %0, %cst_22 {dimension_numbers = #tpu.dot_dimension_numbers<[1], [0], [0], [1], [0, 0, 1, 1], [], []>, precision = #tpu.contract_precision<fp32>} : vector<8x32xf32>, vector<32x96xf32>, vector<8x96xf32> -> vector<8x96xf32>
    %71 = vector.broadcast %1 : vector<1x96xf32> to vector<8x96xf32>
    %72 = arith.addf %70, %71 : vector<8x96xf32>
    %73 = vector.extract_strided_slice %69 {offsets = [0, 0], sizes = [8, 64], strides = [1, 1]} : vector<8x96xf32> to vector<8x64xf32>
    %74 = vector.extract_strided_slice %72 {offsets = [0, 0], sizes = [8, 64], strides = [1, 1]} : vector<8x96xf32> to vector<8x64xf32>
    %75 = arith.addf %73, %74 : vector<8x64xf32>
    %cst_23 = arith.constant 0.000000e+00 : f32
    %76 = vector.broadcast %cst_23 : f32 to vector<8x64xf32>
    %77 = arith.subf %76, %75 : vector<8x64xf32>
    %78 = math.exp %77 : vector<8x64xf32>
    %cst_24 = arith.constant 1.000000e+00 : f32
    %79 = vector.broadcast %cst_24 : f32 to vector<8x64xf32>
    %80 = arith.addf %79, %78 : vector<8x64xf32>
    %cst_25 = arith.constant 1.000000e+00 : f32
    %81 = vector.broadcast %cst_25 : f32 to vector<8x64xf32>
    %82 = arith.divf %81, %80 : vector<8x64xf32>
    %83 = vector.extract_strided_slice %82 {offsets = [0, 0], sizes = [8, 32], strides = [1, 1]} : vector<8x64xf32> to vector<8x32xf32>
    %84 = vector.extract_strided_slice %82 {offsets = [0, 32], sizes = [8, 32], strides = [1, 1]} : vector<8x64xf32> to vector<8x32xf32>
    %85 = vector.extract_strided_slice %69 {offsets = [0, 64], sizes = [8, 32], strides = [1, 1]} : vector<8x96xf32> to vector<8x32xf32>
    %86 = vector.extract_strided_slice %72 {offsets = [0, 64], sizes = [8, 32], strides = [1, 1]} : vector<8x96xf32> to vector<8x32xf32>
    %87 = arith.mulf %83, %86 : vector<8x32xf32>
    %88 = arith.addf %85, %87 : vector<8x32xf32>
    %89 = math.tanh %88 : vector<8x32xf32>
    %cst_26 = arith.constant 1.000000e+00 : f32
    %90 = vector.broadcast %cst_26 : f32 to vector<8x32xf32>
    %91 = arith.subf %90, %84 : vector<8x32xf32>
    %92 = arith.mulf %91, %89 : vector<8x32xf32>
    %93 = arith.mulf %84, %62 : vector<8x32xf32>
    %94 = arith.addf %92, %93 : vector<8x32xf32>
    %95 = arith.index_cast %c2_i32 : i32 to index
    %c0_27 = arith.constant 0 : index
    %c0_28 = arith.constant 0 : index
    %96 = vector.load %arg7[%95, %c0_27, %c0_28] : memref<8x8x32xf32, #tpu.memory_space<vmem>>, vector<1x8x32xf32>
    %97 = vector.shape_cast %96 : vector<1x8x32xf32> to vector<8x32xf32>
    %98 = vector.shape_cast %94 : vector<8x32xf32> to vector<1x8x32xf32>
    tpu.vector_store %arg7[%95, %c0_27, %c0_28], %98 {strides = array<i32>} : memref<8x8x32xf32, #tpu.memory_space<vmem>>, vector<1x8x32xf32>,
    %c3_i32 = arith.constant 3 : i32
    %99 = arith.index_cast %c3_i32 : i32 to index
    %c0_29 = arith.constant 0 : index
    %c0_30 = arith.constant 0 : index
    %100 = vector.load %arg1[%99, %c0_29, %c0_30] : memref<8x8x96xf32, #tpu.memory_space<vmem>>, vector<1x8x96xf32>
    %101 = vector.shape_cast %100 : vector<1x8x96xf32> to vector<8x96xf32>
    %cst_31 = arith.constant dense<0.000000e+00> : vector<8x96xf32>
    %102 = tpu.matmul %94, %0, %cst_31 {dimension_numbers = #tpu.dot_dimension_numbers<[1], [0], [0], [1], [0, 0, 1, 1], [], []>, precision = #tpu.contract_precision<fp32>} : vector<8x32xf32>, vector<32x96xf32>, vector<8x96xf32> -> vector<8x96xf32>
    %103 = vector.broadcast %1 : vector<1x96xf32> to vector<8x96xf32>
    %104 = arith.addf %102, %103 : vector<8x96xf32>
    %105 = vector.extract_strided_slice %101 {offsets = [0, 0], sizes = [8, 64], strides = [1, 1]} : vector<8x96xf32> to vector<8x64xf32>
    %106 = vector.extract_strided_slice %104 {offsets = [0, 0], sizes = [8, 64], strides = [1, 1]} : vector<8x96xf32> to vector<8x64xf32>
    %107 = arith.addf %105, %106 : vector<8x64xf32>
    %cst_32 = arith.constant 0.000000e+00 : f32
    %108 = vector.broadcast %cst_32 : f32 to vector<8x64xf32>
    %109 = arith.subf %108, %107 : vector<8x64xf32>
    %110 = math.exp %109 : vector<8x64xf32>
    %cst_33 = arith.constant 1.000000e+00 : f32
    %111 = vector.broadcast %cst_33 : f32 to vector<8x64xf32>
    %112 = arith.addf %111, %110 : vector<8x64xf32>
    %cst_34 = arith.constant 1.000000e+00 : f32
    %113 = vector.broadcast %cst_34 : f32 to vector<8x64xf32>
    %114 = arith.divf %113, %112 : vector<8x64xf32>
    %115 = vector.extract_strided_slice %114 {offsets = [0, 0], sizes = [8, 32], strides = [1, 1]} : vector<8x64xf32> to vector<8x32xf32>
    %116 = vector.extract_strided_slice %114 {offsets = [0, 32], sizes = [8, 32], strides = [1, 1]} : vector<8x64xf32> to vector<8x32xf32>
    %117 = vector.extract_strided_slice %101 {offsets = [0, 64], sizes = [8, 32], strides = [1, 1]} : vector<8x96xf32> to vector<8x32xf32>
    %118 = vector.extract_strided_slice %104 {offsets = [0, 64], sizes = [8, 32], strides = [1, 1]} : vector<8x96xf32> to vector<8x32xf32>
    %119 = arith.mulf %115, %118 : vector<8x32xf32>
    %120 = arith.addf %117, %119 : vector<8x32xf32>
    %121 = math.tanh %120 : vector<8x32xf32>
    %cst_35 = arith.constant 1.000000e+00 : f32
    %122 = vector.broadcast %cst_35 : f32 to vector<8x32xf32>
    %123 = arith.subf %122, %116 : vector<8x32xf32>
    %124 = arith.mulf %123, %121 : vector<8x32xf32>
    %125 = arith.mulf %116, %94 : vector<8x32xf32>
    %126 = arith.addf %124, %125 : vector<8x32xf32>
    %127 = arith.index_cast %c3_i32 : i32 to index
    %c0_36 = arith.constant 0 : index
    %c0_37 = arith.constant 0 : index
    %128 = vector.load %arg7[%127, %c0_36, %c0_37] : memref<8x8x32xf32, #tpu.memory_space<vmem>>, vector<1x8x32xf32>
    %129 = vector.shape_cast %128 : vector<1x8x32xf32> to vector<8x32xf32>
    %130 = vector.shape_cast %126 : vector<8x32xf32> to vector<1x8x32xf32>
    tpu.vector_store %arg7[%127, %c0_36, %c0_37], %130 {strides = array<i32>} : memref<8x8x32xf32, #tpu.memory_space<vmem>>, vector<1x8x32xf32>,
    %c4_i32 = arith.constant 4 : i32
    %131 = arith.index_cast %c4_i32 : i32 to index
    %c0_38 = arith.constant 0 : index
    %c0_39 = arith.constant 0 : index
    %132 = vector.load %arg1[%131, %c0_38, %c0_39] : memref<8x8x96xf32, #tpu.memory_space<vmem>>, vector<1x8x96xf32>
    %133 = vector.shape_cast %132 : vector<1x8x96xf32> to vector<8x96xf32>
    %cst_40 = arith.constant dense<0.000000e+00> : vector<8x96xf32>
    %134 = tpu.matmul %126, %0, %cst_40 {dimension_numbers = #tpu.dot_dimension_numbers<[1], [0], [0], [1], [0, 0, 1, 1], [], []>, precision = #tpu.contract_precision<fp32>} : vector<8x32xf32>, vector<32x96xf32>, vector<8x96xf32> -> vector<8x96xf32>
    %135 = vector.broadcast %1 : vector<1x96xf32> to vector<8x96xf32>
    %136 = arith.addf %134, %135 : vector<8x96xf32>
    %137 = vector.extract_strided_slice %133 {offsets = [0, 0], sizes = [8, 64], strides = [1, 1]} : vector<8x96xf32> to vector<8x64xf32>
    %138 = vector.extract_strided_slice %136 {offsets = [0, 0], sizes = [8, 64], strides = [1, 1]} : vector<8x96xf32> to vector<8x64xf32>
    %139 = arith.addf %137, %138 : vector<8x64xf32>
    %cst_41 = arith.constant 0.000000e+00 : f32
    %140 = vector.broadcast %cst_41 : f32 to vector<8x64xf32>
    %141 = arith.subf %140, %139 : vector<8x64xf32>
    %142 = math.exp %141 : vector<8x64xf32>
    %cst_42 = arith.constant 1.000000e+00 : f32
    %143 = vector.broadcast %cst_42 : f32 to vector<8x64xf32>
    %144 = arith.addf %143, %142 : vector<8x64xf32>
    %cst_43 = arith.constant 1.000000e+00 : f32
    %145 = vector.broadcast %cst_43 : f32 to vector<8x64xf32>
    %146 = arith.divf %145, %144 : vector<8x64xf32>
    %147 = vector.extract_strided_slice %146 {offsets = [0, 0], sizes = [8, 32], strides = [1, 1]} : vector<8x64xf32> to vector<8x32xf32>
    %148 = vector.extract_strided_slice %146 {offsets = [0, 32], sizes = [8, 32], strides = [1, 1]} : vector<8x64xf32> to vector<8x32xf32>
    %149 = vector.extract_strided_slice %133 {offsets = [0, 64], sizes = [8, 32], strides = [1, 1]} : vector<8x96xf32> to vector<8x32xf32>
    %150 = vector.extract_strided_slice %136 {offsets = [0, 64], sizes = [8, 32], strides = [1, 1]} : vector<8x96xf32> to vector<8x32xf32>
    %151 = arith.mulf %147, %150 : vector<8x32xf32>
    %152 = arith.addf %149, %151 : vector<8x32xf32>
    %153 = math.tanh %152 : vector<8x32xf32>
    %cst_44 = arith.constant 1.000000e+00 : f32
    %154 = vector.broadcast %cst_44 : f32 to vector<8x32xf32>
    %155 = arith.subf %154, %148 : vector<8x32xf32>
    %156 = arith.mulf %155, %153 : vector<8x32xf32>
    %157 = arith.mulf %148, %126 : vector<8x32xf32>
    %158 = arith.addf %156, %157 : vector<8x32xf32>
    %159 = arith.index_cast %c4_i32 : i32 to index
    %c0_45 = arith.constant 0 : index
    %c0_46 = arith.constant 0 : index
    %160 = vector.load %arg7[%159, %c0_45, %c0_46] : memref<8x8x32xf32, #tpu.memory_space<vmem>>, vector<1x8x32xf32>
    %161 = vector.shape_cast %160 : vector<1x8x32xf32> to vector<8x32xf32>
    %162 = vector.shape_cast %158 : vector<8x32xf32> to vector<1x8x32xf32>
    tpu.vector_store %arg7[%159, %c0_45, %c0_46], %162 {strides = array<i32>} : memref<8x8x32xf32, #tpu.memory_space<vmem>>, vector<1x8x32xf32>,
    %c5_i32 = arith.constant 5 : i32
    %163 = arith.index_cast %c5_i32 : i32 to index
    %c0_47 = arith.constant 0 : index
    %c0_48 = arith.constant 0 : index
    %164 = vector.load %arg1[%163, %c0_47, %c0_48] : memref<8x8x96xf32, #tpu.memory_space<vmem>>, vector<1x8x96xf32>
    %165 = vector.shape_cast %164 : vector<1x8x96xf32> to vector<8x96xf32>
    %cst_49 = arith.constant dense<0.000000e+00> : vector<8x96xf32>
    %166 = tpu.matmul %158, %0, %cst_49 {dimension_numbers = #tpu.dot_dimension_numbers<[1], [0], [0], [1], [0, 0, 1, 1], [], []>, precision = #tpu.contract_precision<fp32>} : vector<8x32xf32>, vector<32x96xf32>, vector<8x96xf32> -> vector<8x96xf32>
    %167 = vector.broadcast %1 : vector<1x96xf32> to vector<8x96xf32>
    %168 = arith.addf %166, %167 : vector<8x96xf32>
    %169 = vector.extract_strided_slice %165 {offsets = [0, 0], sizes = [8, 64], strides = [1, 1]} : vector<8x96xf32> to vector<8x64xf32>
    %170 = vector.extract_strided_slice %168 {offsets = [0, 0], sizes = [8, 64], strides = [1, 1]} : vector<8x96xf32> to vector<8x64xf32>
    %171 = arith.addf %169, %170 : vector<8x64xf32>
    %cst_50 = arith.constant 0.000000e+00 : f32
    %172 = vector.broadcast %cst_50 : f32 to vector<8x64xf32>
    %173 = arith.subf %172, %171 : vector<8x64xf32>
    %174 = math.exp %173 : vector<8x64xf32>
    %cst_51 = arith.constant 1.000000e+00 : f32
    %175 = vector.broadcast %cst_51 : f32 to vector<8x64xf32>
    %176 = arith.addf %175, %174 : vector<8x64xf32>
    %cst_52 = arith.constant 1.000000e+00 : f32
    %177 = vector.broadcast %cst_52 : f32 to vector<8x64xf32>
    %178 = arith.divf %177, %176 : vector<8x64xf32>
    %179 = vector.extract_strided_slice %178 {offsets = [0, 0], sizes = [8, 32], strides = [1, 1]} : vector<8x64xf32> to vector<8x32xf32>
    %180 = vector.extract_strided_slice %178 {offsets = [0, 32], sizes = [8, 32], strides = [1, 1]} : vector<8x64xf32> to vector<8x32xf32>
    %181 = vector.extract_strided_slice %165 {offsets = [0, 64], sizes = [8, 32], strides = [1, 1]} : vector<8x96xf32> to vector<8x32xf32>
    %182 = vector.extract_strided_slice %168 {offsets = [0, 64], sizes = [8, 32], strides = [1, 1]} : vector<8x96xf32> to vector<8x32xf32>
    %183 = arith.mulf %179, %182 : vector<8x32xf32>
    %184 = arith.addf %181, %183 : vector<8x32xf32>
    %185 = math.tanh %184 : vector<8x32xf32>
    %cst_53 = arith.constant 1.000000e+00 : f32
    %186 = vector.broadcast %cst_53 : f32 to vector<8x32xf32>
    %187 = arith.subf %186, %180 : vector<8x32xf32>
    %188 = arith.mulf %187, %185 : vector<8x32xf32>
    %189 = arith.mulf %180, %158 : vector<8x32xf32>
    %190 = arith.addf %188, %189 : vector<8x32xf32>
    %191 = arith.index_cast %c5_i32 : i32 to index
    %c0_54 = arith.constant 0 : index
    %c0_55 = arith.constant 0 : index
    %192 = vector.load %arg7[%191, %c0_54, %c0_55] : memref<8x8x32xf32, #tpu.memory_space<vmem>>, vector<1x8x32xf32>
    %193 = vector.shape_cast %192 : vector<1x8x32xf32> to vector<8x32xf32>
    %194 = vector.shape_cast %190 : vector<8x32xf32> to vector<1x8x32xf32>
    tpu.vector_store %arg7[%191, %c0_54, %c0_55], %194 {strides = array<i32>} : memref<8x8x32xf32, #tpu.memory_space<vmem>>, vector<1x8x32xf32>,
    %c6_i32 = arith.constant 6 : i32
    %195 = arith.index_cast %c6_i32 : i32 to index
    %c0_56 = arith.constant 0 : index
    %c0_57 = arith.constant 0 : index
    %196 = vector.load %arg1[%195, %c0_56, %c0_57] : memref<8x8x96xf32, #tpu.memory_space<vmem>>, vector<1x8x96xf32>
    %197 = vector.shape_cast %196 : vector<1x8x96xf32> to vector<8x96xf32>
    %cst_58 = arith.constant dense<0.000000e+00> : vector<8x96xf32>
    %198 = tpu.matmul %190, %0, %cst_58 {dimension_numbers = #tpu.dot_dimension_numbers<[1], [0], [0], [1], [0, 0, 1, 1], [], []>, precision = #tpu.contract_precision<fp32>} : vector<8x32xf32>, vector<32x96xf32>, vector<8x96xf32> -> vector<8x96xf32>
    %199 = vector.broadcast %1 : vector<1x96xf32> to vector<8x96xf32>
    %200 = arith.addf %198, %199 : vector<8x96xf32>
    %201 = vector.extract_strided_slice %197 {offsets = [0, 0], sizes = [8, 64], strides = [1, 1]} : vector<8x96xf32> to vector<8x64xf32>
    %202 = vector.extract_strided_slice %200 {offsets = [0, 0], sizes = [8, 64], strides = [1, 1]} : vector<8x96xf32> to vector<8x64xf32>
    %203 = arith.addf %201, %202 : vector<8x64xf32>
    %cst_59 = arith.constant 0.000000e+00 : f32
    %204 = vector.broadcast %cst_59 : f32 to vector<8x64xf32>
    %205 = arith.subf %204, %203 : vector<8x64xf32>
    %206 = math.exp %205 : vector<8x64xf32>
    %cst_60 = arith.constant 1.000000e+00 : f32
    %207 = vector.broadcast %cst_60 : f32 to vector<8x64xf32>
    %208 = arith.addf %207, %206 : vector<8x64xf32>
    %cst_61 = arith.constant 1.000000e+00 : f32
    %209 = vector.broadcast %cst_61 : f32 to vector<8x64xf32>
    %210 = arith.divf %209, %208 : vector<8x64xf32>
    %211 = vector.extract_strided_slice %210 {offsets = [0, 0], sizes = [8, 32], strides = [1, 1]} : vector<8x64xf32> to vector<8x32xf32>
    %212 = vector.extract_strided_slice %210 {offsets = [0, 32], sizes = [8, 32], strides = [1, 1]} : vector<8x64xf32> to vector<8x32xf32>
    %213 = vector.extract_strided_slice %197 {offsets = [0, 64], sizes = [8, 32], strides = [1, 1]} : vector<8x96xf32> to vector<8x32xf32>
    %214 = vector.extract_strided_slice %200 {offsets = [0, 64], sizes = [8, 32], strides = [1, 1]} : vector<8x96xf32> to vector<8x32xf32>
    %215 = arith.mulf %211, %214 : vector<8x32xf32>
    %216 = arith.addf %213, %215 : vector<8x32xf32>
    %217 = math.tanh %216 : vector<8x32xf32>
    %cst_62 = arith.constant 1.000000e+00 : f32
    %218 = vector.broadcast %cst_62 : f32 to vector<8x32xf32>
    %219 = arith.subf %218, %212 : vector<8x32xf32>
    %220 = arith.mulf %219, %217 : vector<8x32xf32>
    %221 = arith.mulf %212, %190 : vector<8x32xf32>
    %222 = arith.addf %220, %221 : vector<8x32xf32>
    %223 = arith.index_cast %c6_i32 : i32 to index
    %c0_63 = arith.constant 0 : index
    %c0_64 = arith.constant 0 : index
    %224 = vector.load %arg7[%223, %c0_63, %c0_64] : memref<8x8x32xf32, #tpu.memory_space<vmem>>, vector<1x8x32xf32>
    %225 = vector.shape_cast %224 : vector<1x8x32xf32> to vector<8x32xf32>
    %226 = vector.shape_cast %222 : vector<8x32xf32> to vector<1x8x32xf32>
    tpu.vector_store %arg7[%223, %c0_63, %c0_64], %226 {strides = array<i32>} : memref<8x8x32xf32, #tpu.memory_space<vmem>>, vector<1x8x32xf32>,
    %c7_i32 = arith.constant 7 : i32
    %227 = arith.index_cast %c7_i32 : i32 to index
    %c0_65 = arith.constant 0 : index
    %c0_66 = arith.constant 0 : index
    %228 = vector.load %arg1[%227, %c0_65, %c0_66] : memref<8x8x96xf32, #tpu.memory_space<vmem>>, vector<1x8x96xf32>
    %229 = vector.shape_cast %228 : vector<1x8x96xf32> to vector<8x96xf32>
    %cst_67 = arith.constant dense<0.000000e+00> : vector<8x96xf32>
    %230 = tpu.matmul %222, %0, %cst_67 {dimension_numbers = #tpu.dot_dimension_numbers<[1], [0], [0], [1], [0, 0, 1, 1], [], []>, precision = #tpu.contract_precision<fp32>} : vector<8x32xf32>, vector<32x96xf32>, vector<8x96xf32> -> vector<8x96xf32>
    %231 = vector.broadcast %1 : vector<1x96xf32> to vector<8x96xf32>
    %232 = arith.addf %230, %231 : vector<8x96xf32>
    %233 = vector.extract_strided_slice %229 {offsets = [0, 0], sizes = [8, 64], strides = [1, 1]} : vector<8x96xf32> to vector<8x64xf32>
    %234 = vector.extract_strided_slice %232 {offsets = [0, 0], sizes = [8, 64], strides = [1, 1]} : vector<8x96xf32> to vector<8x64xf32>
    %235 = arith.addf %233, %234 : vector<8x64xf32>
    %cst_68 = arith.constant 0.000000e+00 : f32
    %236 = vector.broadcast %cst_68 : f32 to vector<8x64xf32>
    %237 = arith.subf %236, %235 : vector<8x64xf32>
    %238 = math.exp %237 : vector<8x64xf32>
    %cst_69 = arith.constant 1.000000e+00 : f32
    %239 = vector.broadcast %cst_69 : f32 to vector<8x64xf32>
    %240 = arith.addf %239, %238 : vector<8x64xf32>
    %cst_70 = arith.constant 1.000000e+00 : f32
    %241 = vector.broadcast %cst_70 : f32 to vector<8x64xf32>
    %242 = arith.divf %241, %240 : vector<8x64xf32>
    %243 = vector.extract_strided_slice %242 {offsets = [0, 0], sizes = [8, 32], strides = [1, 1]} : vector<8x64xf32> to vector<8x32xf32>
    %244 = vector.extract_strided_slice %242 {offsets = [0, 32], sizes = [8, 32], strides = [1, 1]} : vector<8x64xf32> to vector<8x32xf32>
    %245 = vector.extract_strided_slice %229 {offsets = [0, 64], sizes = [8, 32], strides = [1, 1]} : vector<8x96xf32> to vector<8x32xf32>
    %246 = vector.extract_strided_slice %232 {offsets = [0, 64], sizes = [8, 32], strides = [1, 1]} : vector<8x96xf32> to vector<8x32xf32>
    %247 = arith.mulf %243, %246 : vector<8x32xf32>
    %248 = arith.addf %245, %247 : vector<8x32xf32>
    %249 = math.tanh %248 : vector<8x32xf32>
    %cst_71 = arith.constant 1.000000e+00 : f32
    %250 = vector.broadcast %cst_71 : f32 to vector<8x32xf32>
    %251 = arith.subf %250, %244 : vector<8x32xf32>
    %252 = arith.mulf %251, %249 : vector<8x32xf32>
    %253 = arith.mulf %244, %222 : vector<8x32xf32>
    %254 = arith.addf %252, %253 : vector<8x32xf32>
    %255 = arith.index_cast %c7_i32 : i32 to index
    %c0_72 = arith.constant 0 : index
    %c0_73 = arith.constant 0 : index
    %256 = vector.load %arg7[%255, %c0_72, %c0_73] : memref<8x8x32xf32, #tpu.memory_space<vmem>>, vector<1x8x32xf32>
    %257 = vector.shape_cast %256 : vector<1x8x32xf32> to vector<8x32xf32>
    %258 = vector.shape_cast %254 : vector<8x32xf32> to vector<1x8x32xf32>
    tpu.vector_store %arg7[%255, %c0_72, %c0_73], %258 {strides = array<i32>} : memref<8x8x32xf32, #tpu.memory_space<vmem>>, vector<1x8x32xf32>,
    %c8_i32 = arith.constant 8 : i32
    %c680 = arith.constant 680 : index
    %c0_74 = arith.constant 0 : index
    %259 = vector.load %arg4[%c680, %c0_74] : memref<744x128xf32, #tpu.memory_space<vmem>>, vector<32x32xf32>
    %c712 = arith.constant 712 : index
    %c0_75 = arith.constant 0 : index
    %260 = vector.load %arg4[%c712, %c0_75] : memref<744x128xf32, #tpu.memory_space<vmem>>, vector<32x1xf32>
    %c0_76 = arith.constant 0 : index
    %c0_77 = arith.constant 0 : index
    %c0_78 = arith.constant 0 : index
    %261 = vector.load %arg7[%c0_76, %c0_77, %c0_78] : memref<8x8x32xf32, #tpu.memory_space<vmem>>, vector<8x8x32xf32>
    %262 = vector.shape_cast %261 : vector<8x8x32xf32> to vector<64x32xf32>
    %cst_79 = arith.constant dense<0.000000e+00> : vector<64x32xf32>
    %263 = tpu.matmul %262, %259, %cst_79 {dimension_numbers = #tpu.dot_dimension_numbers<[1], [0], [0], [1], [0, 0, 1, 1], [], []>, precision = #tpu.contract_precision<fp32>} : vector<64x32xf32>, vector<32x32xf32>, vector<64x32xf32> -> vector<64x32xf32>
    %264 = math.tanh %263 : vector<64x32xf32>
    %cst_80 = arith.constant dense<0.000000e+00> : vector<64x1xf32>
    %265 = tpu.matmul %264, %260, %cst_80 {dimension_numbers = #tpu.dot_dimension_numbers<[1], [0], [0], [1], [0, 0, 1, 1], [], []>, precision = #tpu.contract_precision<fp32>} : vector<64x32xf32>, vector<32x1xf32>, vector<64x1xf32> -> vector<64x1xf32>
    %266 = vector.shape_cast %265 : vector<64x1xf32> to vector<8x8x1xf32>
    %c0_81 = arith.constant 0 : index
    %c0_82 = arith.constant 0 : index
    %267 = vector.load %arg2[%c0_81, %c0_82] : memref<8x16xi32, #tpu.memory_space<vmem>>, vector<8x1xi32>
    %268 = tpu.iota {dimensions = array<i32: 0>} : vector<8x8x1xi32>
    %269 = vector.shape_cast %267 : vector<8x1xi32> to vector<1x8x1xi32>
    %270 = vector.broadcast %269 : vector<1x8x1xi32> to vector<8x8x1xi32>
    %271 = arith.cmpi slt, %268, %270 : vector<8x8x1xi32>
    %cst_83 = arith.constant -1.000000e+30 : f32
    %272 = vector.broadcast %cst_83 : f32 to vector<8x8x1xf32>
    %273 = arith.select %271, %266, %272 : vector<8x8x1xi1>, vector<8x8x1xf32>
    %cst_84 = arith.constant dense<0xFF800000> : vector<8x1xf32>
    %274 = vector.multi_reduction <maximumf>, %273, %cst_84 [0] : vector<8x8x1xf32> to vector<8x1xf32>
    %275 = vector.shape_cast %274 : vector<8x1xf32> to vector<1x8x1xf32>
    %276 = vector.broadcast %275 : vector<1x8x1xf32> to vector<8x8x1xf32>
    %277 = arith.subf %273, %276 : vector<8x8x1xf32>
    %278 = math.exp %277 : vector<8x8x1xf32>
    %cst_85 = arith.constant dense<0.000000e+00> : vector<8x1xf32>
    %279 = vector.multi_reduction <add>, %278, %cst_85 [0] : vector<8x8x1xf32> to vector<8x1xf32>
    %280 = vector.broadcast %278 : vector<8x8x1xf32> to vector<8x8x32xf32>
    %281 = arith.mulf %280, %261 : vector<8x8x32xf32>
    %cst_86 = arith.constant dense<0.000000e+00> : vector<8x32xf32>
    %282 = vector.multi_reduction <add>, %281, %cst_86 [0] : vector<8x8x32xf32> to vector<8x32xf32>
    %283 = vector.broadcast %279 : vector<8x1xf32> to vector<8x32xf32>
    %284 = arith.divf %282, %283 : vector<8x32xf32>
    %c0_87 = arith.constant 0 : index
    %c0_88 = arith.constant 0 : index
    %285 = vector.load %arg4[%c0_87, %c0_88] : memref<744x128xf32, #tpu.memory_space<vmem>>, vector<32x128xf32>
    %c32_89 = arith.constant 32 : index
    %c0_90 = arith.constant 0 : index
    %286 = vector.load %arg4[%c32_89, %c0_90] : memref<744x128xf32, #tpu.memory_space<vmem>>, vector<1x128xf32>
    %c40 = arith.constant 40 : index
    %c0_91 = arith.constant 0 : index
    %287 = vector.load %arg4[%c40, %c0_91] : memref<744x128xf32, #tpu.memory_space<vmem>>, vector<128x128xf32>
    %c33 = arith.constant 33 : index
    %c0_92 = arith.constant 0 : index
    %288 = vector.load %arg4[%c33, %c0_92] : memref<744x128xf32, #tpu.memory_space<vmem>>, vector<1x128xf32>
    %cst_93 = arith.constant dense<0.000000e+00> : vector<8x128xf32>
    %289 = tpu.matmul %284, %285, %cst_93 {dimension_numbers = #tpu.dot_dimension_numbers<[1], [0], [0], [1], [0, 0, 1, 1], [], []>, precision = #tpu.contract_precision<fp32>} : vector<8x32xf32>, vector<32x128xf32>, vector<8x128xf32> -> vector<8x128xf32>
    %290 = vector.broadcast %286 : vector<1x128xf32> to vector<8x128xf32>
    %291 = arith.addf %289, %290 : vector<8x128xf32>
    %cst_94 = arith.constant 5.000000e-01 : f32
    %292 = vector.broadcast %cst_94 : f32 to vector<8x128xf32>
    %293 = arith.mulf %292, %291 : vector<8x128xf32>
    %cst_95 = arith.constant 0.797884583 : f32
    %294 = vector.broadcast %cst_95 : f32 to vector<8x128xf32>
    %295 = arith.mulf %291, %294 : vector<8x128xf32>
    %cst_96 = arith.constant 4.471500e-02 : f32
    %296 = vector.broadcast %cst_96 : f32 to vector<8x128xf32>
    %297 = arith.mulf %296, %291 : vector<8x128xf32>
    %298 = arith.mulf %297, %291 : vector<8x128xf32>
    %cst_97 = arith.constant 1.000000e+00 : f32
    %299 = vector.broadcast %cst_97 : f32 to vector<8x128xf32>
    %300 = arith.addf %299, %298 : vector<8x128xf32>
    %301 = arith.mulf %295, %300 : vector<8x128xf32>
    %302 = math.tanh %301 : vector<8x128xf32>
    %cst_98 = arith.constant 1.000000e+00 : f32
    %303 = vector.broadcast %cst_98 : f32 to vector<8x128xf32>
    %304 = arith.addf %303, %302 : vector<8x128xf32>
    %305 = arith.mulf %293, %304 : vector<8x128xf32>
    %cst_99 = arith.constant dense<0.000000e+00> : vector<8x128xf32>
    %306 = tpu.matmul %305, %287, %cst_99 {dimension_numbers = #tpu.dot_dimension_numbers<[1], [0], [0], [1], [0, 0, 1, 1], [], []>, precision = #tpu.contract_precision<fp32>} : vector<8x128xf32>, vector<128x128xf32>, vector<8x128xf32> -> vector<8x128xf32>
    %307 = vector.broadcast %288 : vector<1x128xf32> to vector<8x128xf32>
    %308 = arith.addf %306, %307 : vector<8x128xf32>
    %c0_100 = arith.constant 0 : index
    %c0_101 = arith.constant 0 : index
    %309 = vector.load %arg5[%c0_100, %c0_101] : memref<136x512xf32, #tpu.memory_space<vmem>>, vector<128x512xf32>
    %c128 = arith.constant 128 : index
    %c0_102 = arith.constant 0 : index
    %310 = vector.load %arg5[%c128, %c0_102] : memref<136x512xf32, #tpu.memory_space<vmem>>, vector<1x512xf32>
    %cst_103 = arith.constant dense<0.000000e+00> : vector<8x512xf32>
    %311 = tpu.matmul %308, %309, %cst_103 {dimension_numbers = #tpu.dot_dimension_numbers<[1], [0], [0], [1], [0, 0, 1, 1], [], []>, precision = #tpu.contract_precision<fp32>} : vector<8x128xf32>, vector<128x512xf32>, vector<8x512xf32> -> vector<8x512xf32>
    %312 = vector.broadcast %310 : vector<1x512xf32> to vector<8x512xf32>
    %313 = arith.addf %311, %312 : vector<8x512xf32>
    %cst_104 = arith.constant 5.000000e-01 : f32
    %314 = vector.broadcast %cst_104 : f32 to vector<8x512xf32>
    %315 = arith.mulf %314, %313 : vector<8x512xf32>
    %cst_105 = arith.constant 0.797884583 : f32
    %316 = vector.broadcast %cst_105 : f32 to vector<8x512xf32>
    %317 = arith.mulf %313, %316 : vector<8x512xf32>
    %cst_106 = arith.constant 4.471500e-02 : f32
    %318 = vector.broadcast %cst_106 : f32 to vector<8x512xf32>
    %319 = arith.mulf %318, %313 : vector<8x512xf32>
    %320 = arith.mulf %319, %313 : vector<8x512xf32>
    %cst_107 = arith.constant 1.000000e+00 : f32
    %321 = vector.broadcast %cst_107 : f32 to vector<8x512xf32>
    %322 = arith.addf %321, %320 : vector<8x512xf32>
    %323 = arith.mulf %317, %322 : vector<8x512xf32>
    %324 = math.tanh %323 : vector<8x512xf32>
    %cst_108 = arith.constant 1.000000e+00 : f32
    %325 = vector.broadcast %cst_108 : f32 to vector<8x512xf32>
    %326 = arith.addf %325, %324 : vector<8x512xf32>
    %327 = arith.mulf %315, %326 : vector<8x512xf32>
    %c168 = arith.constant 168 : index
    %c0_109 = arith.constant 0 : index
    %328 = vector.load %arg4[%c168, %c0_109] : memref<744x128xf32, #tpu.memory_space<vmem>>, vector<512x128xf32>
    %c34 = arith.constant 34 : index
    %c0_110 = arith.constant 0 : index
    %329 = vector.load %arg4[%c34, %c0_110] : memref<744x128xf32, #tpu.memory_space<vmem>>, vector<1x128xf32>
    %cst_111 = arith.constant dense<0.000000e+00> : vector<8x128xf32>
    %330 = tpu.matmul %327, %328, %cst_111 {dimension_numbers = #tpu.dot_dimension_numbers<[1], [0], [0], [1], [0, 0, 1, 1], [], []>, precision = #tpu.contract_precision<fp32>} : vector<8x512xf32>, vector<512x128xf32>, vector<8x128xf32> -> vector<8x128xf32>
    %331 = vector.broadcast %329 : vector<1x128xf32> to vector<8x128xf32>
    %332 = arith.addf %330, %331 : vector<8x128xf32>
    %333 = vector.extract_strided_slice %332 {offsets = [0, 0], sizes = [8, 4], strides = [1, 1]} : vector<8x128xf32> to vector<8x4xf32>
    %334 = vector.extract_strided_slice %332 {offsets = [0, 4], sizes = [8, 4], strides = [1, 1]} : vector<8x128xf32> to vector<8x4xf32>
    %335 = arith.maximumf %333, %334 : vector<8x4xf32>
    %336 = arith.subf %333, %335 : vector<8x4xf32>
    %337 = math.exp %336 : vector<8x4xf32>
    %338 = arith.subf %334, %335 : vector<8x4xf32>
    %339 = math.exp %338 : vector<8x4xf32>
    %340 = arith.addf %337, %339 : vector<8x4xf32>
    %341 = math.log %340 : vector<8x4xf32>
    %342 = arith.addf %335, %341 : vector<8x4xf32>
    %c0_112 = arith.constant 0 : index
    %c8 = arith.constant 8 : index
    %343 = vector.load %arg2[%c0_112, %c8] : memref<8x16xi32, #tpu.memory_space<vmem>>, vector<8x8xi32>
    %344 = arith.sitofp %343 : vector<8x8xi32> to vector<8x8xf32>
    %345 = vector.extract_strided_slice %332 {offsets = [0, 0], sizes = [8, 8], strides = [1, 1]} : vector<8x128xf32> to vector<8x8xf32>
    %346 = arith.mulf %345, %344 : vector<8x8xf32>
    %cst_113 = arith.constant dense<0.000000e+00> : vector<8xf32>
    %347 = vector.multi_reduction <add>, %346, %cst_113 [1] : vector<8x8xf32> to vector<8xf32>
    %348 = vector.shape_cast %347 : vector<8xf32> to vector<8x1xf32>
    %cst_114 = arith.constant dense<0.000000e+00> : vector<8xf32>
    %349 = vector.multi_reduction <add>, %342, %cst_114 [1] : vector<8x4xf32> to vector<8xf32>
    %350 = vector.shape_cast %349 : vector<8xf32> to vector<8x1xf32>
    %351 = arith.subf %350, %348 : vector<8x1xf32>
    %352 = tpu.iota {dimensions = array<i32: 1>} : vector<8x128xi32>
    %353 = arith.addf %332, %308 : vector<8x128xf32>
    %c8_i32_115 = arith.constant 8 : i32
    %354 = vector.broadcast %c8_i32_115 : i32 to vector<8x128xi32>
    %355 = arith.cmpi eq, %352, %354 : vector<8x128xi32>
    %356 = arith.extui %355 : vector<8x128xi1> to vector<8x128xi32>
    %357 = arith.sitofp %356 : vector<8x128xi32> to vector<8x128xf32>
    %358 = vector.broadcast %351 : vector<8x1xf32> to vector<8x128xf32>
    %359 = arith.mulf %358, %357 : vector<8x128xf32>
    %360 = arith.addf %353, %359 : vector<8x128xf32>
    %c0_116 = arith.constant 0 : index
    %c0_117 = arith.constant 0 : index
    %361 = vector.load %arg6[%c0_116, %c0_117] : memref<8x128xf32, #tpu.memory_space<vmem>>, vector<8x128xf32>
    tpu.vector_store %arg6[%c0_116, %c0_117], %360 {strides = array<i32>} : memref<8x128xf32, #tpu.memory_space<vmem>>, vector<8x128xf32>,
    return
  }
  func.func @transform_0(%arg0: i32) -> (i32, i32, i32) {
    %c0_i32 = arith.constant 0 : i32
    %c0_i32_0 = arith.constant 0 : i32
    %c0_i32_1 = arith.constant 0 : i32
    return %c0_i32, %arg0, %c0_i32_0 : i32, i32, i32
  }
  func.func @transform_1(%arg0: i32) -> (i32, i32) {
    %c0_i32 = arith.constant 0 : i32
    %c0_i32_0 = arith.constant 0 : i32
    return %arg0, %c0_i32 : i32, i32
  }
  func.func @transform_2(%arg0: i32) -> (i32, i32) {
    %c0_i32 = arith.constant 0 : i32
    %c0_i32_0 = arith.constant 0 : i32
    %c0_i32_1 = arith.constant 0 : i32
    return %c0_i32, %c0_i32_0 : i32, i32
  }
  func.func @transform_3(%arg0: i32) -> (i32, i32) {
    %c0_i32 = arith.constant 0 : i32
    %c0_i32_0 = arith.constant 0 : i32
    %c0_i32_1 = arith.constant 0 : i32
    return %c0_i32, %c0_i32_0 : i32, i32
  }
  func.func @transform_4(%arg0: i32) -> (i32, i32) {
    %c0_i32 = arith.constant 0 : i32
    %c0_i32_0 = arith.constant 0 : i32
    %c0_i32_1 = arith.constant 0 : i32
    return %c0_i32, %c0_i32_0 : i32, i32
  }
  func.func @transform_5(%arg0: i32) -> (i32, i32) {
    %c0_i32 = arith.constant 0 : i32
    %c0_i32_0 = arith.constant 0 : i32
    return %arg0, %c0_i32 : i32, i32
  }
}

</mosaic_0001>

<bundles_post_ra>
// kernel: tpu_custom_call.1
= control target key start
LH: loop header
LB: loop body
LE: loop exit
PB: predicated region body
PF: predicated region fallthrough
CT: control target
= control target key end

     0   :  { %s10508_s0 = inlined_call_operand.hbm [shape: f32[8,16,96], index: 0, kind: input, shape index: {}]   ;;  %s10509_s1 = inlined_call_operand.hbm [shape: s32[16,16], index: 1, kind: input, shape index: {}]   ;;  %s10510_s2 = inlined_call_operand.hbm [shape: f32[40,96], index: 2, kind: input, shape index: {}]   ;;  %s10511_s3 = inlined_call_operand.hbm [shape: f32[744,128], index: 3, kind: input, shape index: {}]   ;;  %s10512_s4 = inlined_call_operand.hbm [shape: f32[136,512], index: 4, kind: input, shape index: {}]   ;;  %s10513_s5 = inlined_call_operand.hbm [shape: f32[16,128], index: 5, kind: output, shape index: {}]  }
   0x1   :  { %10614 = sst [smem:[#allocation28_spill]] %s10510_s2 }
   0x2   :  { %10615 = sst [smem:[#allocation29_spill]] %s10511_s3 }
   0x3   :  { %10616 = sst [smem:[#allocation30_spill]] %s10512_s4 }
   0x4   :  { %10 = vsyncpa [#allocation4], 0 }
   0x5   :  { %12 = vsyncpa [#allocation4 + $0x1], 0 }
   0x6   :  { %13 = vsyncpa [#allocation7], 0 }
   0x7   :  { %15 = vsyncpa [#allocation7 + $0x1], 0 }
   0x8   :  { %16 = vsyncpa [#allocation10], 0 }
   0x9   :  { %17 = vsyncpa [#allocation5], 0 }
   0xa   :  { %19 = vsyncpa [#allocation5 + $0x1], 0  ;;  %s7410_s18 = smov 0   ;;  %s7412_s19 = smov 0  }
   0xb   :  { %s7414_s20 = smov 0   ;;  %s7416_s21 = smov 0  }
   0xc LB: > { %10617 = sst [smem:[#allocation18_spill]] %s7359_s20  ;;  %s7431_s22 = sadd.s32 4294967295, %s7363_s21   ;;  %s7363_s21 = sphi %s7416_s21, %s10768_s21   ;;  %s7359_s20 = sphi %s7414_s20, %s10765_s20   ;;  %s7355_s19 = sphi %s7412_s19, %s10767_s19   ;;  %s7351_s18 = sphi %s7410_s18, %s10766_s18  }
   0xd   : > { %s6892_s23 = sadd.s32 4294967294, %s7363_s21   ;;  %p45_p0 = scmp.ne.s32.totalorder %s7355_s19, %s7351_s18 }
   0xe   : > { %p46_p1 = scmp.eq.s32.totalorder %s7431_s22, 0  ;;  %p158_p2 = scmp.eq.s32.totalorder %s7431_s22, 1 }
   0xf   : > { %p164_p3 = scmp.eq.s32.totalorder %s6892_s23, 1  ;;  %p6893_p5 = scmp.ge.s32.totalorder %s7363_s21, 1 }
  0x10   : > { %p7440_p4 = por %p46_p1, %p45_p0  ;;  %p171_p7 = scmp.lt.s32.totalorder %s7363_s21, 3 }
  0x11   : > { %p7445_p6 = por %p164_p3, %p45_p0  ;;  %s10620_s2 = sld [smem:[#allocation28_spill]] }
  0x12   : > { %p7453_p8 = pnand %p6893_p5, %p171_p7  ;;  %s7365_s30 = smov [#allocation8]  }
  0x13   : > { %s184_s6 = sshll.u32 %s7365_s30, 4  ;;  %s10623_s3 = sld [smem:[#allocation29_spill]]  ;;  %s185_s6 = int_to_ptr.vmem [resolvable:$true] %s184_s6 }
  0x14   : > { %p6943_p9 = pneg %p7453_p8  ;;  %s10514_s11 = smov 128  }
  0x15   : > { %s10515_s12 = smov 8   ;;  %s7368_s13 = smov [#allocation9]  }
  0x16   : > { %p7461_p10 = pnand %p6943_p9, %p46_p1  ;;  %s198_s14 = sshll.u32 %s7368_s13, 4  ;;  %s199_s14 = int_to_ptr.vmem [resolvable:$true] %s198_s14 }
  0x17   : > { %s182_s28 = sshll.u32 %s10620_s2, 4  ;;  %s10624_s4 = sld [smem:[#allocation30_spill]]  ;;  %s183_s28 = int_to_ptr.hbm [resolvable:$true] %s182_s28 }
  0x18   : > { %6946 = dma.hbm_to_vmem [thread:$0]  (!%p7461_p10), %s183_s28, 640, %s185_s6, [#allocation7], %s10514_s11, %s10514_s11, %s10515_s12  }
  0x19   : > { %s196_s10 = sshll.u32 %s10623_s3, 4  ;;  %s7369_s23 = smov [#allocation11]   ;;  %s197_s10 = int_to_ptr.hbm [resolvable:$true] %s196_s10 }
  0x1a   : > { %6949 = dma.hbm_to_vmem [thread:$0]  (!%p7461_p10), %s197_s10, 11904, %s199_s14, [#allocation10], %s10514_s11, %s10514_s11, %s10515_s12  }
  0x1b   : > { %s212_s26 = sshll.u32 %s7369_s23, 4  ;;  %s7370_s27 = smov 512   ;;  %s213_s26 = int_to_ptr.vmem [resolvable:$true] %s212_s26 }
  0x1c   : > { %s7371_s28 = smov 32   ;;  %s7485_s30 = sadd.s32 1, %s7363_s21  }
  0x1d   : > { %s210_s17 = sshll.u32 %s10624_s4, 4  ;;  %s29_s6 = ssub.s32 %s7363_s21, %s7485_s30  ;;  %s211_s17 = int_to_ptr.hbm [resolvable:$true] %s210_s17 }
  0x1e   : > { %6952 = dma.hbm_to_vmem [thread:$0]  (!%p7461_p10), %s211_s17, 8704, %s213_s26, [#allocation10], %s7370_s27, %s7370_s27, %s7371_s28  }
  0x1f   : > { %s32_s8 = sadd.s32 1, %s7359_s20  ;;  %p30_p12 = scmp.eq.s32.totalorder %s29_s6, 0 }
  0x20   : > { %p39_p13 = scmp.ne.s32.totalorder %s7359_s20, %s7355_s19  ;;  %p40_p0 = scmp.eq.s32.totalorder %s7363_s21, 0 }
  0x21   : > { %p6967_p3 = scmp.lt.s32.totalorder %s7363_s21, 2  ;;  %s7504_s7 = sand.u32 1, %s7359_s20  }
  0x22   : > { %s7495_s9 = scalar_select %p30_p12, %s7359_s20, %s32_s8  }
  0x23   : > { %p41_p5 = por %p40_p0, %p39_p13  ;;  %p7499_p7 = por %p158_p2, %p39_p13 }
  0x24   : > { %10625 = sst [smem:[#allocation19_spill]] %s7495_s9  ;;  %s10516_s13 = sshll.u32 %s7363_s21, 3 }
  0x25   : > { %s6898_s14 = sshll.u32 %s7504_s7, 6  ;;  %s234_s17 = scalar_lea.hbm %s10508_s0, %s10516_s13 }
  0x26   : > { %s235_s23 = sshll.u32 %s234_s17, 4  ;;  %s230_s26 = scalar_lea.vmem [#allocation3], %s6898_s14  ;;  %s236_s23 = int_to_ptr.hbm [resolvable:$true] %s235_s23 }
  0x27   : > { %s237_s27 = sshll.u32 %s230_s26, 4  ;;  %p7515_p2 = pnand %p6967_p3, %p41_p5  ;;  %s238_s27 = int_to_ptr.vmem [resolvable:$true] %s237_s27 }
  0x28   : > { %s247_s6 = sand.u32 1, %s7363_s21   ;;  %s6900_s8 = sshll.u32 %s7504_s7, 3 }
  0x29   : > { %s227_s11 = scalar_lea.sflag [#allocation4], %s7504_s7  ;;  %s7225_s12 = sshra.s32 %s236_s23, 4  ;;  %s7226_s12 = int_to_ptr.hbm [resolvable:$true] %s7225_s12 }
  0x2a   : > { %s7227_s2 = scalar_lea.hbm %s7226_s12, 64  ;;  %p7229_p10 = pneg %p7515_p2 }
  0x2b   : > { %p7228_p9 = scmp.ne.s32.totalorder %s7226_s12, %s7227_s2  ;;  %s7232_s16 = scalar_lea.hbm %s10508_s0, 128 }
  0x2c   : > { %p7233_p0 = scmp.lt.s32.totalorder %s7226_s12, %s10508_s0  ;;  %p7234_p3 = scmp.lt.s32.totalorder %s7232_s16, %s7227_s2 }
  0x2d   : > { %p7230_p12 = pnand %p7229_p10, %p7228_p9 }
  0x2e   : > { %p7235_p5 = por %p7234_p3, %p7233_p0 }
  0x2f   : > { %p7231_p13 = pneg %p7230_p12 }
  0x31   : > { %p7236_p11 = pnand %p7235_p5, %p7231_p13 }
  0x33   : > { %7239 = shalt.err (!%p7236_p11)
}
  0x34   : > { %s7372_s7 = smov 256   ;;  %s10628_s13 = smov 8  }
  0x35   : > { %s10629_s3 = smov 128   ;;  %s10630_s4 = sshll.u32 %s7363_s21, 3 }
  0x36   : > { %6956 = dma.hbm_to_vmem [thread:$0]  (!%p7515_p2), %s236_s23, 1024, %s238_s27, %s227_s11, %s7372_s7, %s10629_s3, %s10628_s13  }
  0x37   : > { %s255_s15 = scalar_lea.hbm %s10509_s1, %s10630_s4  ;;  %s251_s17 = scalar_lea.vmem [#allocation6], %s6900_s8 }
  0x38   : > { %s257_s20 = sshll.u32 %s255_s15, 4  ;;  %s259_s12 = sshll.u32 %s251_s17, 4  ;;  %s258_s20 = int_to_ptr.hbm [resolvable:$true] %s257_s20  ;;  %s260_s12 = int_to_ptr.vmem [resolvable:$true] %s259_s12 }
  0x39   : > { %s248_s2 = scalar_lea.sflag [#allocation7], %s247_s6  ;;  %s7255_s16 = sshra.s32 %s258_s20, 4  ;;  %s7256_s16 = int_to_ptr.hbm [resolvable:$true] %s7255_s16 }
  0x3a   : > { %s7257_s26 = scalar_lea.hbm %s7256_s16, 8  ;;  %s7262_s13 = scalar_lea.hbm %s10509_s1, 16 }
  0x3b   : > { %p7258_p11 = scmp.ne.s32.totalorder %s7256_s16, %s7257_s26  ;;  %p7263_p13 = scmp.lt.s32.totalorder %s7256_s16, %s10509_s1 }
  0x3c   : > { %p7264_p0 = scmp.lt.s32.totalorder %s7262_s13, %s7257_s26 }
  0x3d   : > { %p7260_p9 = pnand %p7258_p11, %p7229_p10 }
  0x3e   : > { %p7265_p3 = por %p7264_p0, %p7263_p13 }
  0x3f   : > { %p7261_p12 = pneg %p7260_p9 }
  0x41   : > { %p7266_p5 = pnand %p7265_p3, %p7261_p12 }
  0x43   : > { %7269 = shalt.err (!%p7266_p5)
}
  0x44   : > { %6959 = dma.hbm_to_vmem [thread:$0]  (!%p7515_p2), %s258_s20, 128, %s260_s12, %s248_s2  }
  0x45   : > { %268 = sbr.rel (%p7453_p8) target bundleno = 6761 (0x1a69), region = 40 }
  0x4a   : > { %s7556_s23 = sand.u32 1, %s7355_s19  }
  0x4b   : > { %s6903_s27 = sshll.u32 %s7556_s23, 6  ;;  %s271_s6 = scalar_lea.sflag [#allocation4], %s7556_s23 }
  0x4c   : > { %s7560_s8 = scalar_lea.vmem [#allocation3], %s6903_s27 }
  0x4d   : > { %7330 = dma.done.wait (%p7440_p4), %s271_s6, 1024  }
  0x4e   : > { %7332 = vsyncadd (%p7440_p4), %s271_s6, 4294966272  ;;  %s280_s20 = sand.u32 1, %s7431_s22   ;;  %s6904_s29 = sshll.u32 %s7556_s23, 3 }
  0x4f   : > { %s281_s28 = scalar_lea.sflag [#allocation7], %s280_s20  ;;  %s7570_s7 = scalar_lea.vmem [#allocation6], %s6904_s29 }
  0x50   : > { %7334 = dma.done.wait (%p7440_p4), %s281_s28, 128  }
  0x51   : > { %7336 = vsyncadd (%p7440_p4), %s281_s28, 4294967168 }
  0x52   : > { %7338 = dma.done.wait (%p46_p1), [#allocation7], 640  }
  0x53   : > { %7340 = vsyncadd (%p46_p1), [#allocation7], 4294966656 }
  0x54   : > { %7342 = dma.done.wait (%p46_p1), [#allocation10], 20608  }
  0x55   : > { %7344 = vsyncadd (%p46_p1), [#allocation10], 4294946688  ;;  %v335_v0 = vld [vmem:[#allocation8 + $0x18] sm:$0xff]  ;;  %v334_v1 = vld [vmem:[#allocation8 + $0x10] sm:$0xff]  ;;  %v10518_v22 = vmov 0.0   ;;  %s7374_s24 = smov 64  }
  0x56   : > { %v333_v2 = vld [vmem:[#allocation8 + $0x8] sm:$0xff]  ;;  %v7584_v3 = vand.u32 4294901760, %v335_v0  ;;  %v7586_v4 = vand.u32 4294901760, %v334_v1  ;;  %v332_v6 = vld [vmem:[#allocation8] sm:$0xff]  ;;  %v337_v38 = vld [vmem:[%s7560_s8] sm:$0xff]  ;;  %s7375_s14 = smov 96  }
  0x57   : > { %v7588_v5 = vand.u32 4294901760, %v333_v2  ;;  %v7590_v7 = vand.u32 4294901760, %v332_v6  ;;  %v7694_v25 = vld [vmem:[#allocation8 + $0x20] ss:$0 sm:$0xff]  ;;  %vm339_vm4 = vcmask 261120   ;;  %s7377_s15 = smov 124  }
  0x58   : > { %v7593_v8 = vsub.f32 %v335_v0, %v7584_v3  ;;  %356 = vmatpush.msra.mxu0 %v7584_v3  ;;  %v7597_v9 = vsub.f32 %v334_v1, %v7586_v4  ;;  %456 = vmatpush.msra.mxu3 %v7584_v3  ;;  %s7378_s17 = smov 120   ;;  %s7379_s12 = smov 4  }
  0x59   : > { %v7601_v10 = vsub.f32 %v333_v2, %v7588_v5  ;;  %v7604_v11 = vsub.f32 %v332_v6, %v7590_v7  ;;  %s6918_s2 = sshll.u32 %s7431_s22, 3  ;;  %s331_s11 = scalar_lea.vmem [#allocation12], %s6904_s29 }
  0x5a   : > { %427 = vmatpush.msra.mxu2 %v7593_v8  ;;  %358 = vmatpush.msra.mxu0 %v7586_v4  ;;  %v7609_v12 = vand.u32 4294901760, %v7593_v8  ;;  %v7612_v13 = vand.u32 4294901760, %v7597_v9  ;;  %s6766_s3 = scalar_lea.hbm %s10513_s5, %s6918_s2  ;;  %s6768_s13 = sshll.u32 %s331_s11, 4  ;;  %s6769_s13 = int_to_ptr.vmem [resolvable:$true] %s6768_s13 }
  0x5b   : > { %v7615_v14 = vand.u32 4294901760, %v7601_v10  ;;  %458 = vmatpush.msra.mxu3 %v7586_v4  ;;  %v7619_v15 = vand.u32 4294901760, %v7604_v11  ;;  %s6770_s9 = sshll.u32 %s6766_s3, 4  ;;  %s6756_s22 = scalar_lea.sflag [#allocation5], %s7556_s23  ;;  %s6771_s9 = int_to_ptr.hbm [resolvable:$true] %s6770_s9 }
  0x5c   : > { %430 = vmatpush.msra.mxu2 %v7597_v9  ;;  %v387_v16 = vsub.f32 %v7593_v8, %v7609_v12  ;;  %360 = vmatpush.msra.mxu0 %v7588_v5  ;;  %v393_v17 = vsub.f32 %v7597_v9, %v7612_v13  ;;  %s7299_s4 = sshra.s32 %s6771_s9, 4  ;;  %s7305_s20 = scalar_lea.hbm %s10513_s5, 16  ;;  %s7300_s4 = int_to_ptr.hbm [resolvable:$true] %s7299_s4 }
  0x5d   : > { %v399_v18 = vsub.f32 %v7601_v10, %v7615_v14  ;;  %460 = vmatpush.msra.mxu3 %v7588_v5  ;;  %v405_v21 = vsub.f32 %v7604_v11, %v7619_v15  ;;  %s7301_s27 = scalar_lea.hbm %s7300_s4, 8  ;;  %p7306_p2 = scmp.lt.s32.totalorder %s7300_s4, %s10513_s5 }
  0x5e   : > { %v7630_v19 = vand.u32 4294901760, %v387_v16  ;;  %433 = vmatpush.msra.mxu2 %v7601_v10  ;;  %v7633_v20 = vand.u32 4294901760, %v393_v17  ;;  %362 = vmatpush.msra.mxu0 %v7590_v7  ;;  %p7302_p1 = scmp.ne.s32.totalorder %s7300_s4, %s7301_s27  ;;  %p7307_p10 = scmp.lt.s32.totalorder %s7305_s20, %s7301_s27 }
  0x5f   : > { %462 = vmatpush.msra.mxu3 %v7590_v7  ;;  %368 = vmatmul.f32.vlgmr.msra.gmra.mxu0 %v10518_v22  ;;  %v7642_v23 = vand.u32 4294901760, %v399_v18  ;;  %v7647_v24 = vand.u32 4294901760, %v405_v21 }
  0x60   : > { %389 = vmatpush.msra.mxu1 %v7630_v19  ;;  %436 = vmatpush.msra.mxu2 %v7604_v11  ;;  %p7303_p4 = pnand %p7302_p1, %p7499_p7  ;;  %p7308_p11 = por %p7307_p10, %p7306_p2 }
  0x61   : > { %439 = vmatmul.f32.vlgmr.msra.gmra.mxu2 %v10518_v22  ;;  %466 = vmatmul.f32.vlgmr.msra.gmra.mxu3 %v10518_v22 }
  0x62   : > { %395 = vmatpush.msra.mxu1 %v7633_v20  ;;  %485 = vmatpush.msrb.mxu0 %v7609_v12  ;;  %p7304_p8 = pneg %p7303_p4 }
  0x63   : > { %622 = vmatpush.msrb.mxu3 %v7630_v19  ;;  %589 = vmatpush.msrb.mxu2 %v7584_v3 }
  0x64   : > { %401 = vmatpush.msra.mxu1 %v7642_v23  ;;  %489 = vmatpush.msrb.mxu0 %v7612_v13  ;;  %p7309_p9 = pnand %p7308_p11, %p7304_p8 }
  0x65   : > { %628 = vmatpush.msrb.mxu3 %v7633_v20  ;;  %591 = vmatpush.msrb.mxu2 %v7586_v4 }
  0x66   : > { %407 = vmatpush.msra.mxu1 %v7647_v24  ;;  %493 = vmatpush.msrb.mxu0 %v7615_v14 }
  0x67   : > { %409 = vmatmul.f32.vlgmr.msra.gmra.mxu1 %v10518_v22  ;;  %634 = vmatpush.msrb.mxu3 %v7642_v23 }
  0x68   : > { %516 = vmatpush.msrb.mxu1 %v7584_v3  ;;  %497 = vmatpush.msrb.mxu0 %v7619_v15 }
  0x69   : > { %499 = vmatmul.f32.vlgmr.msrb.gmra.mxu0 %v10518_v22  ;;  %640 = vmatpush.msrb.mxu3 %v7647_v24 }
  0x6a   : > { %518 = vmatpush.msrb.mxu1 %v7586_v4  ;;  %660 = vmatpush.msra.mxu0 %v7593_v8 }
  0x6b   : > { %749 = vmatpush.msra.mxu3 %v7584_v3  ;;  %593 = vmatpush.msrb.mxu2 %v7588_v5 }
  0x6c   : > { %520 = vmatpush.msrb.mxu1 %v7588_v5  ;;  %663 = vmatpush.msra.mxu0 %v7597_v9 }
  0x6d   : > { %751 = vmatpush.msra.mxu3 %v7586_v4  ;;  %595 = vmatpush.msrb.mxu2 %v7590_v7 }
  0x6e   : > { %522 = vmatpush.msrb.mxu1 %v7590_v7  ;;  %666 = vmatpush.msra.mxu0 %v7601_v10 }
  0x6f   : > { %524 = vmatmul.f32.vlgmr.msrb.gmra.mxu1 %v10518_v22  ;;  %753 = vmatpush.msra.mxu3 %v7588_v5 }
  0x70   : > { %689 = vmatpush.msra.mxu1 %v7584_v3  ;;  %669 = vmatpush.msra.mxu0 %v7604_v11 }
  0x71   : > { %755 = vmatpush.msra.mxu3 %v7590_v7  ;;  %718 = vmatpush.msra.mxu2 %v7609_v12 }
  0x72   : > { %691 = vmatpush.msra.mxu1 %v7586_v4  ;;  %823 = vmatpush.msrb.mxu0 %v7584_v3 }
  0x73   : > { %722 = vmatpush.msra.mxu2 %v7612_v13 }
  0x74   : > { %693 = vmatpush.msra.mxu1 %v7588_v5  ;;  %825 = vmatpush.msrb.mxu0 %v7586_v4 }
  0x75   : > { %726 = vmatpush.msra.mxu2 %v7615_v14 }
  0x76   : > { %695 = vmatpush.msra.mxu1 %v7590_v7  ;;  %827 = vmatpush.msrb.mxu0 %v7588_v5 }
  0x77   : > { %730 = vmatpush.msra.mxu2 %v7619_v15 }
  0x78   : > { %856 = vmatpush.msrb.mxu1 %v7630_v19  ;;  %829 = vmatpush.msrb.mxu0 %v7590_v7 }
  0x7a   : > { %862 = vmatpush.msrb.mxu1 %v7633_v20 }
  0x7c   : > { %868 = vmatpush.msrb.mxu1 %v7642_v23 }
  0x7e   : > { %874 = vmatpush.msrb.mxu1 %v7647_v24 }
  0xdc   : > { %v369_v26 = vpop.f32.mrf.mxu0 }
  0xdd   : > { %v370_v27 = vadd.f32 %v7694_v25, %v369_v26 }
  0xe4   : > { %v410_v28 = vpop.f32.mrf.mxu1  ;;  %v440_v29 = vpop.f32.mrf.mxu2 }
  0xe5   : > { %v411_v30 = vadd.f32 %v410_v28, %v370_v27  ;;  %v467_v31 = vpop.f32.mrf.mxu3 }
  0xe6   : > { %v500_v33 = vpop.f32.mrf.mxu0 }
  0xe7   : > { %v441_v32 = vadd.f32 %v440_v29, %v411_v30 }
  0xe9   : > { %v468_v34 = vadd.f32 %v467_v31, %v441_v32 }
  0xeb   : > { %v501_v35 = vadd.f32 %v500_v33, %v468_v34 }
  0xec   : > { %v525_v36 = vpop.f32.mrf.mxu1 }
  0xed   : > { %v526_v37 = vadd.f32 %v525_v36, %v501_v35 }
  0xef   : > { %549 = vrot.lane.b32.xlu0 %v526_v37, %s7374_s24  ;;  %v528_v39 = vadd.f32 %v526_v37, %v337_v38  ;;  %v6909_v37 = vld [vmem:[%s7560_s8 + $0x8] sm:$0xff] }
  0xf1   : > { %v529_v40 = vsub.f32 0.0, %v528_v39 }
  0xf3   : > { %v530_v41 = vmul.f32 1.442695, %v529_v40 }
  0xf5   : > { %7026 = vpow2.f32 %v530_v41 }
  0xfb   : > { %v7027_v42 = vpop.eup %7026 }
  0xfc   : > { %v532_v43 = vadd.f32 1.0, %v7027_v42 }
  0xfe   : > { %7028 = vrcp.f32 %v532_v43  ;;  %v544_v49 = vand.u32 2147483648, %v532_v43  ;;  %vm538_vm1 = vweird.f32 %v532_v43  ;;  %v542_v50 = vand.u32 2147483647, %v532_v43 }
 0x100   : > { %v545_v52 = vor.u32 1.1754944e-38, %v544_v49  ;;  %vm543_vm3 = vcmp.eq.f32.partialorder %v542_v50, 8.507059e+37 }
 0x104   : > { %v7029_v44 = vpop.eup %7028 }
 0x105   : > { %v534_v45 = vmul.f32 %v7029_v44, %v532_v43  ;;  %vm539_vm0 = vweird.f32 %v7029_v44 }
 0x106   : > { %vm540_vm2 = vmor %vm538_vm1, %vm539_vm0 }
 0x107   : > { %v535_v46 = vsub.f32 1.0, %v534_v45 }
 0x109   : > { %v536_v47 = vmul.f32 %v7029_v44, %v535_v46 }
 0x10b   : > { %v537_v48 = vadd.f32 %v7029_v44, %v536_v47 }
 0x10d   : > { %v541_v51 = vsel %vm540_vm2, %v7029_v44, %v537_v48 }
 0x10e   : > { %v546_v54 = vsel %vm543_vm3, %v545_v52, %v541_v51 }
 0x10f   : > { %v559_v59 = vsub.f32 1.0, %v546_v54  ;;  %v565_v61 = vmul.f32 0.0, %v546_v54 }
 0x161   : > { %v550_v53 = vpop.permute.xlu0 %549 }
 0x162   : > { %v552_v55 = vmul.f32 %v550_v53, %v546_v54 }
 0x164   : > { %554 = vrot.lane.b32.xlu0 %v552_v55, %s7374_s24 }
 0x1d6   : > { %v555_v56 = vpop.permute.xlu0 %554 }
 0x1d7   : > { %v557_v57 = vadd.f32 %v555_v56, %v337_v38 }
 0x1d9   : > { %7030 = vtanh.f32 %v557_v57 }
 0x1df   : > { %v7031_v58 = vpop.eup %7030 }
 0x1e0   : > { %561 = vrot.lane.b32.xlu1 %v7031_v58, %s7375_s14 }
 0x252   : > { %v562_v60 = vpop.permute.xlu1 %561 }
 0x253   : > { %v564_v62 = vmul.f32 %v562_v60, %v559_v59 }
 0x255   : > { %v7701_v63 = vadd.f32 %v565_v61, %v564_v62 }
 0x257   : > { %568 = vrot.lane.b32.xlu1 %v7701_v63, %s7375_s14 }
 0x2c9   : > { %v569_v0 = vpop.permute.xlu1 %568 }
 0x2ca   : > { %571 = vst.msk [vmem:[#allocation2] sm:$0xff] %vm339_vm4, %v569_v0  ;;  %v574_v1 = vsel %vm339_vm4, %v569_v0, 0 }
 0x2cb   : > { %v596_v2 = vand.u32 4294901760, %v574_v1 }
 0x2cd   : > { %v597_v6 = vsub.f32 %v574_v1, %v596_v2  ;;  %642 = vmatmul.f32.vlgmr.msrb.gmra.mxu3 %v596_v2 }
 0x2ce   : > { %923 = vmatpush.msrb.mxu3 %v7584_v3 }
 0x2cf   : > { %v598_v16 = vand.u32 4294901760, %v597_v6  ;;  %672 = vmatmul.f32.vlgmr.msra.gmra.mxu0 %v597_v6 }
 0x2d0   : > { %925 = vmatpush.msrb.mxu3 %v7586_v4  ;;  %952 = vmatpush.msra.mxu0 %v7609_v12 }
 0x2d1   : > { %699 = vmatmul.f32.vlgmr.msra.gmra.mxu1 %v598_v16  ;;  %v599_v17 = vsub.f32 %v597_v6, %v598_v16 }
 0x2d2   : > { %927 = vmatpush.msrb.mxu3 %v7588_v5  ;;  %983 = vmatpush.msra.mxu1 %v7584_v3 }
 0x2d3   : > { %v600_v18 = vand.u32 4294901760, %v599_v17  ;;  %956 = vmatpush.msra.mxu0 %v7612_v13 }
 0x2d4   : > { %929 = vmatpush.msrb.mxu3 %v7590_v7  ;;  %985 = vmatpush.msra.mxu1 %v7586_v4 }
 0x2d5   : > { %601 = vmatmul.f32.vlgmr.msrb.gmra.mxu2 %v600_v18  ;;  %757 = vmatmul.f32.vlgmr.msra.gmra.mxu3 %v596_v2 }
 0x2d6   : > { %894 = vmatpush.msrb.mxu2 %v7593_v8  ;;  %987 = vmatpush.msra.mxu1 %v7588_v5 }
 0x2d7   : > { %960 = vmatpush.msra.mxu0 %v7615_v14  ;;  %1090 = vmatpush.msra.mxu3 %v7630_v19 }
 0x2d8   : > { %897 = vmatpush.msrb.mxu2 %v7597_v9  ;;  %989 = vmatpush.msra.mxu1 %v7590_v7 }
 0x2d9   : > { %964 = vmatpush.msra.mxu0 %v7619_v15  ;;  %1096 = vmatpush.msra.mxu3 %v7633_v20 }
 0x2da   : > { %900 = vmatpush.msrb.mxu2 %v7601_v10 }
 0x2db   : > { %1102 = vmatpush.msra.mxu3 %v7642_v23 }
 0x2dc   : > { %903 = vmatpush.msrb.mxu2 %v7604_v11 }
 0x2dd   : > { %732 = vmatmul.f32.vlgmr.msra.gmra.mxu2 %v596_v2  ;;  %1108 = vmatpush.msra.mxu3 %v7647_v24 }
 0x2de   : > { %1057 = vmatpush.msra.mxu2 %v7584_v3 }
 0x2e0   : > { %1059 = vmatpush.msra.mxu2 %v7586_v4 }
 0x2e2   : > { %1061 = vmatpush.msra.mxu2 %v7588_v5 }
 0x2e4   : > { %1063 = vmatpush.msra.mxu2 %v7590_v7 }
 0x34c   : > { %v673_v29 = vpop.f32.mrf.mxu0 }
 0x34e   : > { %v700_v31 = vpop.f32.mrf.mxu1 }
 0x350   : > { %v643_v21 = vpop.f32.mrf.mxu3 }
 0x358   : > { %v602_v26 = vpop.f32.mrf.mxu2  ;;  %v758_v35 = vpop.f32.mrf.mxu3 }
 0x359   : > { %v603_v27 = vadd.f32 %v7694_v25, %v602_v26 }
 0x35b   : > { %v644_v28 = vadd.f32 %v643_v21, %v603_v27 }
 0x35d   : > { %v674_v30 = vadd.f32 %v673_v29, %v644_v28 }
 0x35f   : > { %v701_v32 = vadd.f32 %v700_v31, %v674_v30 }
 0x360   : > { %v733_v33 = vpop.f32.mrf.mxu2 }
 0x361   : > { %v734_v34 = vadd.f32 %v733_v33, %v701_v32 }
 0x363   : > { %v759_v36 = vadd.f32 %v758_v35, %v734_v34 }
 0x365   : > { %782 = vrot.lane.b32.xlu2 %v759_v36, %s7374_s24  ;;  %v761_v38 = vadd.f32 %v6909_v37, %v759_v36  ;;  %v6910_v36 = vld [vmem:[%s7560_s8 + $0x10] sm:$0xff] }
 0x367   : > { %v762_v39 = vsub.f32 0.0, %v761_v38 }
 0x369   : > { %v763_v40 = vmul.f32 1.442695, %v762_v39 }
 0x36b   : > { %7032 = vpow2.f32 %v763_v40 }
 0x371   : > { %v7033_v41 = vpop.eup %7032 }
 0x372   : > { %v765_v42 = vadd.f32 1.0, %v7033_v41 }
 0x374   : > { %7034 = vrcp.f32 %v765_v42  ;;  %v777_v48 = vand.u32 2147483648, %v765_v42  ;;  %vm771_vm6 = vweird.f32 %v765_v42  ;;  %v775_v49 = vand.u32 2147483647, %v765_v42 }
 0x376   : > { %v778_v51 = vor.u32 1.1754944e-38, %v777_v48  ;;  %vm776_vm8 = vcmp.eq.f32.partialorder %v775_v49, 8.507059e+37 }
 0x37a   : > { %v7035_v43 = vpop.eup %7034 }
 0x37b   : > { %v767_v44 = vmul.f32 %v7035_v43, %v765_v42  ;;  %vm772_vm5 = vweird.f32 %v7035_v43 }
 0x37c   : > { %vm773_vm7 = vmor %vm771_vm6, %vm772_vm5 }
 0x37d   : > { %v768_v45 = vsub.f32 1.0, %v767_v44 }
 0x37f   : > { %v769_v46 = vmul.f32 %v7035_v43, %v768_v45 }
 0x381   : > { %v770_v47 = vadd.f32 %v7035_v43, %v769_v46 }
 0x383   : > { %v774_v50 = vsel %vm773_vm7, %v7035_v43, %v770_v47 }
 0x384   : > { %v779_v53 = vsel %vm776_vm8, %v778_v51, %v774_v50 }
 0x385   : > { %v792_v58 = vsub.f32 1.0, %v779_v53  ;;  %v798_v60 = vmul.f32 %v779_v53, %v7701_v63 }
 0x3bf   : > { %v783_v52 = vpop.permute.xlu2 %782 }
 0x3c0   : > { %v785_v54 = vmul.f32 %v783_v52, %v779_v53 }
 0x3c2   : > { %787 = vrot.lane.b32.xlu2 %v785_v54, %s7374_s24 }
 0x41c   : > { %v788_v55 = vpop.permute.xlu2 %787 }
 0x41d   : > { %v790_v56 = vadd.f32 %v6909_v37, %v788_v55 }
 0x41f   : > { %7036 = vtanh.f32 %v790_v56 }
 0x425   : > { %v7037_v57 = vpop.eup %7036 }
 0x426   : > { %794 = vrot.lane.b32.xlu0 %v7037_v57, %s7375_s14 }
 0x498   : > { %v795_v59 = vpop.permute.xlu0 %794 }
 0x499   : > { %v797_v61 = vmul.f32 %v795_v59, %v792_v58 }
 0x49b   : > { %v7737_v62 = vadd.f32 %v798_v60, %v797_v61 }
 0x49d   : > { %801 = vrot.lane.b32.xlu1 %v7737_v62, %s7375_s14 }
 0x50f   : > { %v802_v0 = vpop.permute.xlu1 %801 }
 0x510   : > { %805 = vst.msk [vmem:[#allocation2 + $0x8] sm:$0xff] %vm339_vm4, %v802_v0  ;;  %v808_v1 = vsel %vm339_vm4, %v802_v0, 0 }
 0x511   : > { %v830_v2 = vand.u32 4294901760, %v808_v1 }
 0x513   : > { %v831_v6 = vsub.f32 %v808_v1, %v830_v2  ;;  %876 = vmatmul.f32.vlgmr.msrb.gmra.mxu1 %v830_v2 }
 0x514   : > { %1157 = vmatpush.msrb.mxu1 %v7584_v3 }
 0x515   : > { %v832_v16 = vand.u32 4294901760, %v831_v6  ;;  %906 = vmatmul.f32.vlgmr.msrb.gmra.mxu2 %v831_v6 }
 0x516   : > { %1159 = vmatpush.msrb.mxu1 %v7586_v4  ;;  %1186 = vmatpush.msrb.mxu2 %v7609_v12 }
 0x517   : > { %v833_v63 = vsub.f32 %v831_v6, %v832_v16  ;;  %933 = vmatmul.f32.vlgmr.msrb.gmra.mxu3 %v832_v16 }
 0x518   : > { %1161 = vmatpush.msrb.mxu1 %v7588_v5  ;;  %1217 = vmatpush.msrb.mxu3 %v7584_v3 }
 0x519   : > { %v834_v17 = vand.u32 4294901760, %v833_v63  ;;  %1190 = vmatpush.msrb.mxu2 %v7612_v13 }
 0x51a   : > { %1163 = vmatpush.msrb.mxu1 %v7590_v7  ;;  %1219 = vmatpush.msrb.mxu3 %v7586_v4 }
 0x51b   : > { %835 = vmatmul.f32.vlgmr.msrb.gmra.mxu0 %v834_v17  ;;  %991 = vmatmul.f32.vlgmr.msra.gmra.mxu1 %v830_v2 }
 0x51c   : > { %1128 = vmatpush.msrb.mxu0 %v7593_v8  ;;  %1221 = vmatpush.msrb.mxu3 %v7588_v5 }
 0x51d   : > { %1194 = vmatpush.msrb.mxu2 %v7615_v14  ;;  %1324 = vmatpush.msra.mxu1 %v7630_v19 }
 0x51e   : > { %1131 = vmatpush.msrb.mxu0 %v7597_v9  ;;  %1223 = vmatpush.msrb.mxu3 %v7590_v7 }
 0x51f   : > { %1198 = vmatpush.msrb.mxu2 %v7619_v15  ;;  %1330 = vmatpush.msra.mxu1 %v7633_v20 }
 0x520   : > { %1134 = vmatpush.msrb.mxu0 %v7601_v10 }
 0x521   : > { %1336 = vmatpush.msra.mxu1 %v7642_v23 }
 0x522   : > { %1137 = vmatpush.msrb.mxu0 %v7604_v11 }
 0x523   : > { %966 = vmatmul.f32.vlgmr.msra.gmra.mxu0 %v830_v2  ;;  %1342 = vmatpush.msra.mxu1 %v7647_v24 }
 0x524   : > { %1291 = vmatpush.msra.mxu0 %v7584_v3 }
 0x526   : > { %1293 = vmatpush.msra.mxu0 %v7586_v4 }
 0x528   : > { %1295 = vmatpush.msra.mxu0 %v7588_v5 }
 0x52a   : > { %1297 = vmatpush.msra.mxu0 %v7590_v7 }
 0x590   : > { %v877_v18 = vpop.f32.mrf.mxu1 }
 0x598   : > { %v836_v21 = vpop.f32.mrf.mxu0  ;;  %v907_v28 = vpop.f32.mrf.mxu2 }
 0x599   : > { %v837_v26 = vadd.f32 %v7694_v25, %v836_v21  ;;  %v992_v34 = vpop.f32.mrf.mxu1 }
 0x59a   : > { %v934_v30 = vpop.f32.mrf.mxu3 }
 0x59b   : > { %v878_v27 = vadd.f32 %v877_v18, %v837_v26 }
 0x59d   : > { %v908_v29 = vadd.f32 %v907_v28, %v878_v27 }
 0x59f   : > { %v935_v31 = vadd.f32 %v934_v30, %v908_v29 }
 0x5a0   : > { %v967_v32 = vpop.f32.mrf.mxu0 }
 0x5a1   : > { %v968_v33 = vadd.f32 %v967_v32, %v935_v31 }
 0x5a3   : > { %v993_v35 = vadd.f32 %v992_v34, %v968_v33 }
 0x5a5   : > { %1016 = vrot.lane.b32.xlu2 %v993_v35, %s7374_s24  ;;  %v995_v37 = vadd.f32 %v6910_v36, %v993_v35  ;;  %v6911_v35 = vld [vmem:[%s7560_s8 + $0x18] sm:$0xff] }
 0x5a7   : > { %v996_v38 = vsub.f32 0.0, %v995_v37 }
 0x5a9   : > { %v997_v39 = vmul.f32 1.442695, %v996_v38 }
 0x5ab   : > { %7038 = vpow2.f32 %v997_v39 }
 0x5b1   : > { %v7039_v40 = vpop.eup %7038 }
 0x5b2   : > { %v999_v41 = vadd.f32 1.0, %v7039_v40 }
 0x5b4   : > { %7040 = vrcp.f32 %v999_v41  ;;  %v1011_v47 = vand.u32 2147483648, %v999_v41  ;;  %vm1005_vm10 = vweird.f32 %v999_v41  ;;  %v1009_v48 = vand.u32 2147483647, %v999_v41 }
 0x5b6   : > { %v1012_v50 = vor.u32 1.1754944e-38, %v1011_v47  ;;  %vm1010_vm12 = vcmp.eq.f32.partialorder %v1009_v48, 8.507059e+37 }
 0x5ba   : > { %v7041_v42 = vpop.eup %7040 }
 0x5bb   : > { %v1001_v43 = vmul.f32 %v7041_v42, %v999_v41  ;;  %vm1006_vm9 = vweird.f32 %v7041_v42 }
 0x5bc   : > { %vm1007_vm11 = vmor %vm1005_vm10, %vm1006_vm9 }
 0x5bd   : > { %v1002_v44 = vsub.f32 1.0, %v1001_v43 }
 0x5bf   : > { %v1003_v45 = vmul.f32 %v7041_v42, %v1002_v44 }
 0x5c1   : > { %v1004_v46 = vadd.f32 %v7041_v42, %v1003_v45 }
 0x5c3   : > { %v1008_v49 = vsel %vm1007_vm11, %v7041_v42, %v1004_v46 }
 0x5c4   : > { %v1013_v52 = vsel %vm1010_vm12, %v1012_v50, %v1008_v49 }
 0x5c5   : > { %v1026_v57 = vsub.f32 1.0, %v1013_v52  ;;  %v1032_v59 = vmul.f32 %v1013_v52, %v7737_v62 }
 0x5ff   : > { %v1017_v51 = vpop.permute.xlu2 %1016 }
 0x600   : > { %v1019_v53 = vmul.f32 %v1017_v51, %v1013_v52 }
 0x602   : > { %1021 = vrot.lane.b32.xlu0 %v1019_v53, %s7374_s24 }
 0x674   : > { %v1022_v54 = vpop.permute.xlu0 %1021 }
 0x675   : > { %v1024_v55 = vadd.f32 %v6910_v36, %v1022_v54 }
 0x677   : > { %7042 = vtanh.f32 %v1024_v55 }
 0x67d   : > { %v7043_v56 = vpop.eup %7042 }
 0x67e   : > { %1028 = vrot.lane.b32.xlu1 %v7043_v56, %s7375_s14 }
 0x6f0   : > { %v1029_v58 = vpop.permute.xlu1 %1028 }
 0x6f1   : > { %v1031_v60 = vmul.f32 %v1029_v58, %v1026_v57 }
 0x6f3   : > { %v7773_v61 = vadd.f32 %v1032_v59, %v1031_v60 }
 0x6f5   : > { %1035 = vrot.lane.b32.xlu2 %v7773_v61, %s7375_s14 }
 0x74f   : > { %v1036_v0 = vpop.permute.xlu2 %1035 }
 0x750   : > { %1039 = vst.msk [vmem:[#allocation2 + $0x10] sm:$0xff] %vm339_vm4, %v1036_v0  ;;  %v1042_v1 = vsel %vm339_vm4, %v1036_v0, 0 }
 0x751   : > { %v1064_v2 = vand.u32 4294901760, %v1042_v1 }
 0x753   : > { %v1065_v6 = vsub.f32 %v1042_v1, %v1064_v2  ;;  %1110 = vmatmul.f32.vlgmr.msra.gmra.mxu3 %v1064_v2 }
 0x754   : > { %1391 = vmatpush.msra.mxu3 %v7584_v3 }
 0x755   : > { %v1066_v16 = vand.u32 4294901760, %v1065_v6  ;;  %1140 = vmatmul.f32.vlgmr.msrb.gmra.mxu0 %v1065_v6 }
 0x756   : > { %1393 = vmatpush.msra.mxu3 %v7586_v4  ;;  %1420 = vmatpush.msrb.mxu0 %v7609_v12 }
 0x757   : > { %v1067_v62 = vsub.f32 %v1065_v6, %v1066_v16  ;;  %1167 = vmatmul.f32.vlgmr.msrb.gmra.mxu1 %v1066_v16 }
 0x758   : > { %1395 = vmatpush.msra.mxu3 %v7588_v5  ;;  %1451 = vmatpush.msrb.mxu1 %v7584_v3 }
 0x759   : > { %v1068_v63 = vand.u32 4294901760, %v1067_v62  ;;  %1424 = vmatpush.msrb.mxu0 %v7612_v13 }
 0x75a   : > { %1397 = vmatpush.msra.mxu3 %v7590_v7  ;;  %1453 = vmatpush.msrb.mxu1 %v7586_v4 }
 0x75b   : > { %1069 = vmatmul.f32.vlgmr.msra.gmra.mxu2 %v1068_v63  ;;  %1225 = vmatmul.f32.vlgmr.msrb.gmra.mxu3 %v1064_v2 }
 0x75c   : > { %1362 = vmatpush.msra.mxu2 %v7593_v8  ;;  %1455 = vmatpush.msrb.mxu1 %v7588_v5 }
 0x75d   : > { %1428 = vmatpush.msrb.mxu0 %v7615_v14  ;;  %1558 = vmatpush.msrb.mxu3 %v7630_v19 }
 0x75e   : > { %1365 = vmatpush.msra.mxu2 %v7597_v9  ;;  %1457 = vmatpush.msrb.mxu1 %v7590_v7 }
 0x75f   : > { %1432 = vmatpush.msrb.mxu0 %v7619_v15  ;;  %1564 = vmatpush.msrb.mxu3 %v7633_v20 }
 0x760   : > { %1368 = vmatpush.msra.mxu2 %v7601_v10 }
 0x761   : > { %1570 = vmatpush.msrb.mxu3 %v7642_v23 }
 0x762   : > { %1371 = vmatpush.msra.mxu2 %v7604_v11 }
 0x763   : > { %1200 = vmatmul.f32.vlgmr.msrb.gmra.mxu2 %v1064_v2  ;;  %1576 = vmatpush.msrb.mxu3 %v7647_v24 }
 0x764   : > { %1525 = vmatpush.msrb.mxu2 %v7584_v3 }
 0x766   : > { %1527 = vmatpush.msrb.mxu2 %v7586_v4 }
 0x768   : > { %1529 = vmatpush.msrb.mxu2 %v7588_v5 }
 0x76a   : > { %1531 = vmatpush.msrb.mxu2 %v7590_v7 }
 0x7d2   : > { %v1141_v27 = vpop.f32.mrf.mxu0 }
 0x7d4   : > { %v1168_v29 = vpop.f32.mrf.mxu1 }
 0x7d6   : > { %v1111_v17 = vpop.f32.mrf.mxu3 }
 0x7de   : > { %v1070_v18 = vpop.f32.mrf.mxu2  ;;  %v1226_v33 = vpop.f32.mrf.mxu3 }
 0x7df   : > { %v1071_v21 = vadd.f32 %v7694_v25, %v1070_v18 }
 0x7e1   : > { %v1112_v26 = vadd.f32 %v1111_v17, %v1071_v21 }
 0x7e3   : > { %v1142_v28 = vadd.f32 %v1141_v27, %v1112_v26 }
 0x7e5   : > { %v1169_v30 = vadd.f32 %v1168_v29, %v1142_v28 }
 0x7e6   : > { %v1201_v31 = vpop.f32.mrf.mxu2 }
 0x7e7   : > { %v1202_v32 = vadd.f32 %v1201_v31, %v1169_v30 }
 0x7e9   : > { %v1227_v34 = vadd.f32 %v1226_v33, %v1202_v32 }
 0x7eb   : > { %1250 = vrot.lane.b32.xlu0 %v1227_v34, %s7374_s24  ;;  %v1229_v36 = vadd.f32 %v6911_v35, %v1227_v34  ;;  %v6912_v34 = vld [vmem:[%s7560_s8 + $0x20] sm:$0xff] }
 0x7ed   : > { %v1230_v37 = vsub.f32 0.0, %v1229_v36 }
 0x7ef   : > { %v1231_v38 = vmul.f32 1.442695, %v1230_v37 }
 0x7f1   : > { %7044 = vpow2.f32 %v1231_v38 }
 0x7f7   : > { %v7045_v39 = vpop.eup %7044 }
 0x7f8   : > { %v1233_v40 = vadd.f32 1.0, %v7045_v39 }
 0x7fa   : > { %7046 = vrcp.f32 %v1233_v40  ;;  %v1245_v46 = vand.u32 2147483648, %v1233_v40  ;;  %vm1239_vm14 = vweird.f32 %v1233_v40  ;;  %v1243_v47 = vand.u32 2147483647, %v1233_v40 }
 0x7fc   : > { %v1246_v49 = vor.u32 1.1754944e-38, %v1245_v46  ;;  %vm1244_vm0 = vcmp.eq.f32.partialorder %v1243_v47, 8.507059e+37 }
 0x800   : > { %v7047_v41 = vpop.eup %7046 }
 0x801   : > { %v1235_v42 = vmul.f32 %v7047_v41, %v1233_v40  ;;  %vm1240_vm13 = vweird.f32 %v7047_v41 }
 0x802   : > { %vm1241_vm15 = vmor %vm1239_vm14, %vm1240_vm13 }
 0x803   : > { %v1236_v43 = vsub.f32 1.0, %v1235_v42 }
 0x805   : > { %v1237_v44 = vmul.f32 %v7047_v41, %v1236_v43 }
 0x807   : > { %v1238_v45 = vadd.f32 %v7047_v41, %v1237_v44 }
 0x809   : > { %v1242_v48 = vsel %vm1241_vm15, %v7047_v41, %v1238_v45 }
 0x80a   : > { %v1247_v51 = vsel %vm1244_vm0, %v1246_v49, %v1242_v48 }
 0x80b   : > { %v1260_v56 = vsub.f32 1.0, %v1247_v51  ;;  %v1266_v58 = vmul.f32 %v1247_v51, %v7773_v61 }
 0x85d   : > { %v1251_v50 = vpop.permute.xlu0 %1250 }
 0x85e   : > { %v1253_v52 = vmul.f32 %v1251_v50, %v1247_v51 }
 0x860   : > { %1255 = vrot.lane.b32.xlu1 %v1253_v52, %s7374_s24 }
 0x8d2   : > { %v1256_v53 = vpop.permute.xlu1 %1255 }
 0x8d3   : > { %v1258_v54 = vadd.f32 %v6911_v35, %v1256_v53 }
 0x8d5   : > { %7048 = vtanh.f32 %v1258_v54 }
 0x8db   : > { %v7049_v55 = vpop.eup %7048 }
 0x8dc   : > { %1262 = vrot.lane.b32.xlu2 %v7049_v55, %s7375_s14 }
 0x936   : > { %v1263_v57 = vpop.permute.xlu2 %1262 }
 0x937   : > { %v1265_v59 = vmul.f32 %v1263_v57, %v1260_v56 }
 0x939   : > { %v7809_v60 = vadd.f32 %v1266_v58, %v1265_v59 }
 0x93b   : > { %1269 = vrot.lane.b32.xlu0 %v7809_v60, %s7375_s14 }
 0x9ad   : > { %v1270_v0 = vpop.permute.xlu0 %1269 }
 0x9ae   : > { %1273 = vst.msk [vmem:[#allocation2 + $0x18] sm:$0xff] %vm339_vm4, %v1270_v0  ;;  %v1276_v1 = vsel %vm339_vm4, %v1270_v0, 0 }
 0x9af   : > { %v1298_v2 = vand.u32 4294901760, %v1276_v1 }
 0x9b1   : > { %v1299_v6 = vsub.f32 %v1276_v1, %v1298_v2  ;;  %1344 = vmatmul.f32.vlgmr.msra.gmra.mxu1 %v1298_v2 }
 0x9b2   : > { %1625 = vmatpush.msra.mxu1 %v7584_v3 }
 0x9b3   : > { %v1300_v16 = vand.u32 4294901760, %v1299_v6  ;;  %1374 = vmatmul.f32.vlgmr.msra.gmra.mxu2 %v1299_v6 }
 0x9b4   : > { %1627 = vmatpush.msra.mxu1 %v7586_v4  ;;  %1654 = vmatpush.msra.mxu2 %v7609_v12 }
 0x9b5   : > { %v1301_v61 = vsub.f32 %v1299_v6, %v1300_v16  ;;  %1401 = vmatmul.f32.vlgmr.msra.gmra.mxu3 %v1300_v16 }
 0x9b6   : > { %1629 = vmatpush.msra.mxu1 %v7588_v5  ;;  %1685 = vmatpush.msra.mxu3 %v7584_v3 }
 0x9b7   : > { %v1302_v62 = vand.u32 4294901760, %v1301_v61  ;;  %1658 = vmatpush.msra.mxu2 %v7612_v13 }
 0x9b8   : > { %1631 = vmatpush.msra.mxu1 %v7590_v7  ;;  %1687 = vmatpush.msra.mxu3 %v7586_v4 }
 0x9b9   : > { %1303 = vmatmul.f32.vlgmr.msra.gmra.mxu0 %v1302_v62  ;;  %1459 = vmatmul.f32.vlgmr.msrb.gmra.mxu1 %v1298_v2 }
 0x9ba   : > { %1596 = vmatpush.msra.mxu0 %v7593_v8  ;;  %1689 = vmatpush.msra.mxu3 %v7588_v5 }
 0x9bb   : > { %1662 = vmatpush.msra.mxu2 %v7615_v14  ;;  %1792 = vmatpush.msrb.mxu1 %v7630_v19 }
 0x9bc   : > { %1599 = vmatpush.msra.mxu0 %v7597_v9  ;;  %1691 = vmatpush.msra.mxu3 %v7590_v7 }
 0x9bd   : > { %1666 = vmatpush.msra.mxu2 %v7619_v15  ;;  %1798 = vmatpush.msrb.mxu1 %v7633_v20 }
 0x9be   : > { %1602 = vmatpush.msra.mxu0 %v7601_v10 }
 0x9bf   : > { %1804 = vmatpush.msrb.mxu1 %v7642_v23 }
 0x9c0   : > { %1605 = vmatpush.msra.mxu0 %v7604_v11 }
 0x9c1   : > { %1434 = vmatmul.f32.vlgmr.msrb.gmra.mxu0 %v1298_v2  ;;  %1810 = vmatpush.msrb.mxu1 %v7647_v24 }
 0x9c2   : > { %1759 = vmatpush.msrb.mxu0 %v7584_v3 }
 0x9c4   : > { %1761 = vmatpush.msrb.mxu0 %v7586_v4 }
 0x9c6   : > { %1763 = vmatpush.msrb.mxu0 %v7588_v5 }
 0x9c8   : > { %1765 = vmatpush.msrb.mxu0 %v7590_v7 }
 0xa2e   : > { %v1345_v63 = vpop.f32.mrf.mxu1 }
 0xa36   : > { %v1304_v17 = vpop.f32.mrf.mxu0  ;;  %v1375_v26 = vpop.f32.mrf.mxu2 }
 0xa37   : > { %v1305_v18 = vadd.f32 %v7694_v25, %v1304_v17  ;;  %v1460_v32 = vpop.f32.mrf.mxu1 }
 0xa38   : > { %v1402_v28 = vpop.f32.mrf.mxu3 }
 0xa39   : > { %v1346_v21 = vadd.f32 %v1345_v63, %v1305_v18 }
 0xa3b   : > { %v1376_v27 = vadd.f32 %v1375_v26, %v1346_v21 }
 0xa3d   : > { %v1403_v29 = vadd.f32 %v1402_v28, %v1376_v27 }
 0xa3e   : > { %v1435_v30 = vpop.f32.mrf.mxu0 }
 0xa3f   : > { %v1436_v31 = vadd.f32 %v1435_v30, %v1403_v29  ;;  %v6913_v29 = vld [vmem:[%s7560_s8 + $0x28] sm:$0xff] }
 0xa41   : > { %v1461_v33 = vadd.f32 %v1460_v32, %v1436_v31 }
 0xa43   : > { %1484 = vrot.lane.b32.xlu1 %v1461_v33, %s7374_s24  ;;  %v1463_v35 = vadd.f32 %v6912_v34, %v1461_v33 }
 0xa45   : > { %v1464_v36 = vsub.f32 0.0, %v1463_v35 }
 0xa47   : > { %v1465_v37 = vmul.f32 1.442695, %v1464_v36 }
 0xa49   : > { %7050 = vpow2.f32 %v1465_v37 }
 0xa4f   : > { %v7051_v38 = vpop.eup %7050 }
 0xa50   : > { %v1467_v39 = vadd.f32 1.0, %v7051_v38 }
 0xa52   : > { %7052 = vrcp.f32 %v1467_v39  ;;  %v1479_v45 = vand.u32 2147483648, %v1467_v39  ;;  %vm1473_vm2 = vweird.f32 %v1467_v39  ;;  %v1477_v46 = vand.u32 2147483647, %v1467_v39 }
 0xa54   : > { %v1480_v48 = vor.u32 1.1754944e-38, %v1479_v45  ;;  %vm1478_vm5 = vcmp.eq.f32.partialorder %v1477_v46, 8.507059e+37 }
 0xa58   : > { %v7053_v40 = vpop.eup %7052 }
 0xa59   : > { %v1469_v41 = vmul.f32 %v7053_v40, %v1467_v39  ;;  %vm1474_vm1 = vweird.f32 %v7053_v40 }
 0xa5a   : > { %vm1475_vm3 = vmor %vm1473_vm2, %vm1474_vm1 }
 0xa5b   : > { %v1470_v42 = vsub.f32 1.0, %v1469_v41 }
 0xa5d   : > { %v1471_v43 = vmul.f32 %v7053_v40, %v1470_v42 }
 0xa5f   : > { %v1472_v44 = vadd.f32 %v7053_v40, %v1471_v43 }
 0xa61   : > { %v1476_v47 = vsel %vm1475_vm3, %v7053_v40, %v1472_v44 }
 0xa62   : > { %v1481_v50 = vsel %vm1478_vm5, %v1480_v48, %v1476_v47 }
 0xa63   : > { %v1494_v55 = vsub.f32 1.0, %v1481_v50  ;;  %v1500_v57 = vmul.f32 %v1481_v50, %v7809_v60 }
 0xab5   : > { %v1485_v49 = vpop.permute.xlu1 %1484 }
 0xab6   : > { %v1487_v51 = vmul.f32 %v1485_v49, %v1481_v50 }
 0xab8   : > { %1489 = vrot.lane.b32.xlu2 %v1487_v51, %s7374_s24 }
 0xb12   : > { %v1490_v52 = vpop.permute.xlu2 %1489 }
 0xb13   : > { %v1492_v53 = vadd.f32 %v6912_v34, %v1490_v52 }
 0xb15   : > { %7054 = vtanh.f32 %v1492_v53 }
 0xb1b   : > { %v7055_v54 = vpop.eup %7054 }
 0xb1c   : > { %1496 = vrot.lane.b32.xlu0 %v7055_v54, %s7375_s14 }
 0xb8e   : > { %v1497_v56 = vpop.permute.xlu0 %1496 }
 0xb8f   : > { %v1499_v58 = vmul.f32 %v1497_v56, %v1494_v55 }
 0xb91   : > { %v7845_v59 = vadd.f32 %v1500_v57, %v1499_v58 }
 0xb93   : > { %1503 = vrot.lane.b32.xlu1 %v7845_v59, %s7375_s14 }
 0xc05   : > { %v1504_v0 = vpop.permute.xlu1 %1503 }
 0xc06   : > { %1507 = vst.msk [vmem:[#allocation2 + $0x20] sm:$0xff] %vm339_vm4, %v1504_v0  ;;  %v1510_v1 = vsel %vm339_vm4, %v1504_v0, 0 }
 0xc07   : > { %v1532_v2 = vand.u32 4294901760, %v1510_v1 }
 0xc09   : > { %v1533_v6 = vsub.f32 %v1510_v1, %v1532_v2  ;;  %1578 = vmatmul.f32.vlgmr.msrb.gmra.mxu3 %v1532_v2 }
 0xc0a   : > { %1859 = vmatpush.msrb.mxu3 %v7584_v3 }
 0xc0b   : > { %v1534_v16 = vand.u32 4294901760, %v1533_v6  ;;  %1608 = vmatmul.f32.vlgmr.msra.gmra.mxu0 %v1533_v6 }
 0xc0c   : > { %1861 = vmatpush.msrb.mxu3 %v7586_v4  ;;  %1888 = vmatpush.msra.mxu0 %v7609_v12 }
 0xc0d   : > { %v1535_v60 = vsub.f32 %v1533_v6, %v1534_v16  ;;  %1635 = vmatmul.f32.vlgmr.msra.gmra.mxu1 %v1534_v16 }
 0xc0e   : > { %1863 = vmatpush.msrb.mxu3 %v7588_v5  ;;  %1919 = vmatpush.msra.mxu1 %v7584_v3 }
 0xc0f   : > { %v1536_v61 = vand.u32 4294901760, %v1535_v60  ;;  %1892 = vmatpush.msra.mxu0 %v7612_v13 }
 0xc10   : > { %1865 = vmatpush.msrb.mxu3 %v7590_v7  ;;  %1921 = vmatpush.msra.mxu1 %v7586_v4 }
 0xc11   : > { %1537 = vmatmul.f32.vlgmr.msrb.gmra.mxu2 %v1536_v61  ;;  %1693 = vmatmul.f32.vlgmr.msra.gmra.mxu3 %v1532_v2 }
 0xc12   : > { %1830 = vmatpush.msrb.mxu2 %v7593_v8  ;;  %1923 = vmatpush.msra.mxu1 %v7588_v5 }
 0xc13   : > { %1896 = vmatpush.msra.mxu0 %v7615_v14  ;;  %2026 = vmatpush.msra.mxu3 %v7630_v19 }
 0xc14   : > { %1833 = vmatpush.msrb.mxu2 %v7597_v9  ;;  %1925 = vmatpush.msra.mxu1 %v7590_v7 }
 0xc15   : > { %1900 = vmatpush.msra.mxu0 %v7619_v15  ;;  %2032 = vmatpush.msra.mxu3 %v7633_v20 }
 0xc16   : > { %1836 = vmatpush.msrb.mxu2 %v7601_v10 }
 0xc17   : > { %2038 = vmatpush.msra.mxu3 %v7642_v23 }
 0xc18   : > { %1839 = vmatpush.msrb.mxu2 %v7604_v11 }
 0xc19   : > { %1668 = vmatmul.f32.vlgmr.msra.gmra.mxu2 %v1532_v2  ;;  %2044 = vmatpush.msra.mxu3 %v7647_v24 }
 0xc1a   : > { %1993 = vmatpush.msra.mxu2 %v7584_v3 }
 0xc1c   : > { %1995 = vmatpush.msra.mxu2 %v7586_v4 }
 0xc1e   : > { %1997 = vmatpush.msra.mxu2 %v7588_v5 }
 0xc20   : > { %1999 = vmatpush.msra.mxu2 %v7590_v7 }
 0xc88   : > { %v1609_v23 = vpop.f32.mrf.mxu0 }
 0xc8a   : > { %v1636_v18 = vpop.f32.mrf.mxu1 }
 0xc8c   : > { %v1579_v19 = vpop.f32.mrf.mxu3 }
 0xc94   : > { %v1538_v20 = vpop.f32.mrf.mxu2  ;;  %v1694_v27 = vpop.f32.mrf.mxu3 }
 0xc95   : > { %v1539_v62 = vadd.f32 %v7694_v25, %v1538_v20 }
 0xc97   : > { %v1580_v63 = vadd.f32 %v1579_v19, %v1539_v62 }
 0xc99   : > { %v1610_v17 = vadd.f32 %v1609_v23, %v1580_v63 }
 0xc9b   : > { %v1637_v21 = vadd.f32 %v1636_v18, %v1610_v17 }
 0xc9c   : > { %v1669_v26 = vpop.f32.mrf.mxu2 }
 0xc9d   : > { %v1670_v24 = vadd.f32 %v1669_v26, %v1637_v21 }
 0xc9f   : > { %v1695_v28 = vadd.f32 %v1694_v27, %v1670_v24 }
 0xca1   : > { %1718 = vrot.lane.b32.xlu2 %v1695_v28, %s7374_s24  ;;  %v1697_v30 = vadd.f32 %v6913_v29, %v1695_v28 }
 0xca3   : > { %v1698_v31 = vsub.f32 0.0, %v1697_v30 }
 0xca5   : > { %v1699_v32 = vmul.f32 1.442695, %v1698_v31 }
 0xca7   : > { %7056 = vpow2.f32 %v1699_v32 }
 0xcad   : > { %v7057_v33 = vpop.eup %7056 }
 0xcae   : > { %v1701_v34 = vadd.f32 1.0, %v7057_v33 }
 0xcb0   : > { %7058 = vrcp.f32 %v1701_v34  ;;  %v1713_v39 = vand.u32 2147483648, %v1701_v34  ;;  %vm1707_vm7 = vweird.f32 %v1701_v34  ;;  %v1711_v40 = vand.u32 2147483647, %v1701_v34 }
 0xcb2   : > { %v1714_v42 = vor.u32 1.1754944e-38, %v1713_v39  ;;  %vm1712_vm9 = vcmp.eq.f32.partialorder %v1711_v40, 8.507059e+37  ;;  %v2212_v39 = vld [vmem:[#allocation9 + $0x2b8] sm:$0xff] }
 0xcb3   : > { %v7918_v40 = vand.u32 4294901760, %v2212_v39 }
 0xcb6   : > { %v7059_v25 = vpop.eup %7058 }
 0xcb7   : > { %v1703_v35 = vmul.f32 %v7059_v25, %v1701_v34  ;;  %vm1708_vm6 = vweird.f32 %v7059_v25 }
 0xcb8   : > { %vm1709_vm8 = vmor %vm1707_vm7, %vm1708_vm6 }
 0xcb9   : > { %v1704_v36 = vsub.f32 1.0, %v1703_v35 }
 0xcbb   : > { %v1705_v37 = vmul.f32 %v7059_v25, %v1704_v36 }
 0xcbd   : > { %v1706_v38 = vadd.f32 %v7059_v25, %v1705_v37  ;;  %v2213_v37 = vld [vmem:[#allocation9 + $0x2c0] sm:$0xff] }
 0xcbf   : > { %v1710_v41 = vsel %vm1709_vm8, %v7059_v25, %v1706_v38  ;;  %v7915_v38 = vand.u32 4294901760, %v2213_v37  ;;  %vm3103_vm8 = vcmask 7168  }
 0xcc0   : > { %v1715_v44 = vsel %vm1712_vm9, %v1714_v42, %v1710_v41  ;;  %v2211_v42 = vld [vmem:[#allocation9 + $0x2b0] sm:$0xff] }
 0xcc1   : > { %v1728_v49 = vsub.f32 1.0, %v1715_v44  ;;  %v1734_v51 = vmul.f32 %v1715_v44, %v7845_v59  ;;  %v7921_v41 = vsub.f32 %v2213_v37, %v7915_v38 }
 0xcfb   : > { %v1719_v43 = vpop.permute.xlu2 %1718 }
 0xcfc   : > { %v1721_v45 = vmul.f32 %v1719_v43, %v1715_v44  ;;  %v2349_v43 = vand.u32 4294901760, %v7921_v41  ;;  %v7925_v44 = vand.u32 4294901760, %v2211_v42 }
 0xcfe   : > { %1723 = vrot.lane.b32.xlu0 %v1721_v45, %s7374_s24  ;;  %v7928_v45 = vsub.f32 %v2212_v39, %v7918_v40 }
 0xd70   : > { %v1724_v46 = vpop.permute.xlu0 %1723 }
 0xd71   : > { %v1726_v47 = vadd.f32 %v6913_v29, %v1724_v46  ;;  %v2210_v46 = vld [vmem:[#allocation9 + $0x2a8] sm:$0xff] }
 0xd73   : > { %7060 = vtanh.f32 %v1726_v47  ;;  %v2350_v47 = vsub.f32 %v7921_v41, %v2349_v43 }
 0xd79   : > { %v7061_v48 = vpop.eup %7060 }
 0xd7a   : > { %1730 = vrot.lane.b32.xlu1 %v7061_v48, %s7375_s14  ;;  %v2355_v48 = vand.u32 4294901760, %v7928_v45 }
 0xdec   : > { %v1731_v50 = vpop.permute.xlu1 %1730 }
 0xded   : > { %v1733_v52 = vmul.f32 %v1731_v50, %v1728_v49  ;;  %v7933_v49 = vand.u32 4294901760, %v2210_v46  ;;  %v2360_v50 = vsub.f32 %v2211_v42, %v7925_v44 }
 0xdef   : > { %v7881_v53 = vadd.f32 %v1734_v51, %v1733_v52  ;;  %v2351_v51 = vand.u32 4294901760, %v2350_v47  ;;  %v2356_v52 = vsub.f32 %v7928_v45, %v2355_v48 }
 0xdf1   : > { %1737 = vrot.lane.b32.xlu2 %v7881_v53, %s7375_s14 }
 0xe4b   : > { %v1738_v54 = vpop.permute.xlu2 %1737 }
 0xe4c   : > { %1741 = vst.msk [vmem:[#allocation2 + $0x28] sm:$0xff] %vm339_vm4, %v1738_v54  ;;  %v1744_v55 = vsel %vm339_vm4, %v1738_v54, 0  ;;  %v2366_v54 = vsub.f32 %v2210_v46, %v7933_v49 }
 0xe4d   : > { %v1766_v56 = vand.u32 4294901760, %v1744_v55 }
 0xe4f   : > { %v1767_v57 = vsub.f32 %v1744_v55, %v1766_v56  ;;  %1812 = vmatmul.f32.vlgmr.msrb.gmra.mxu1 %v1766_v56  ;;  %v2357_v55 = vand.u32 4294901760, %v2356_v52 }
 0xe50   : > { %2093 = vmatpush.msrb.mxu1 %v7584_v3 }
 0xe51   : > { %v1768_v58 = vand.u32 4294901760, %v1767_v57  ;;  %1842 = vmatmul.f32.vlgmr.msrb.gmra.mxu2 %v1767_v57 }
 0xe52   : > { %2095 = vmatpush.msrb.mxu1 %v7586_v4  ;;  %2122 = vmatpush.msrb.mxu2 %v7609_v12  ;;  %v7903_v12 = vld [vmem:[#allocation8 + $0x20] ss:$0 sm:$0xff] }
 0xe53   : > { %v1769_v59 = vsub.f32 %v1767_v57, %v1768_v58  ;;  %1869 = vmatmul.f32.vlgmr.msrb.gmra.mxu3 %v1768_v58  ;;  %v2367_v57 = vand.u32 4294901760, %v2366_v54 }
 0xe54   : > { %2097 = vmatpush.msrb.mxu1 %v7588_v5  ;;  %2153 = vmatpush.msrb.mxu3 %v7584_v3 }
 0xe55   : > { %v1770_v0 = vand.u32 4294901760, %v1769_v59  ;;  %2126 = vmatpush.msrb.mxu2 %v7612_v13  ;;  %v2368_v59 = vsub.f32 %v2366_v54, %v2367_v57 }
 0xe56   : > { %2099 = vmatpush.msrb.mxu1 %v7590_v7  ;;  %2155 = vmatpush.msrb.mxu3 %v7586_v4 }
 0xe57   : > { %1771 = vmatmul.f32.vlgmr.msrb.gmra.mxu0 %v1770_v0  ;;  %1927 = vmatmul.f32.vlgmr.msra.gmra.mxu1 %v1766_v56  ;;  %v2369_v0 = vand.u32 4294901760, %v2368_v59 }
 0xe58   : > { %2064 = vmatpush.msrb.mxu0 %v7593_v8  ;;  %2157 = vmatpush.msrb.mxu3 %v7588_v5 }
 0xe59   : > { %2130 = vmatpush.msrb.mxu2 %v7615_v14  ;;  %2352 = vmatpush.msra.mxu1 %v2351_v51 }
 0xe5a   : > { %2067 = vmatpush.msrb.mxu0 %v7597_v9  ;;  %2159 = vmatpush.msrb.mxu3 %v7590_v7 }
 0xe5b   : > { %2134 = vmatpush.msrb.mxu2 %v7619_v15  ;;  %2358 = vmatpush.msra.mxu1 %v2357_v55 }
 0xe5c   : > { %2070 = vmatpush.msrb.mxu0 %v7601_v10  ;;  %v6914_v10 = vld [vmem:[%s7560_s8 + $0x30] sm:$0xff] }
 0xe5e   : > { %2073 = vmatpush.msrb.mxu0 %v7604_v11 }
 0xe5f   : > { %1902 = vmatmul.f32.vlgmr.msra.gmra.mxu0 %v1766_v56 }
 0xe60   : > { %2263 = vmatpush.msra.mxu0 %v7915_v38 }
 0xe62   : > { %2265 = vmatpush.msra.mxu0 %v7918_v40 }
 0xe64   : > { %2267 = vmatpush.msra.mxu0 %v7925_v44 }
 0xe66   : > { %2269 = vmatpush.msra.mxu0 %v7933_v49 }
 0xecc   : > { %v1813_v3 = vpop.f32.mrf.mxu1 }
 0xed4   : > { %v1772_v4 = vpop.f32.mrf.mxu0  ;;  %v1843_v13 = vpop.f32.mrf.mxu2 }
 0xed5   : > { %v1773_v5 = vadd.f32 %v7903_v12, %v1772_v4  ;;  %v1928_v15 = vpop.f32.mrf.mxu1 }
 0xed6   : > { %v1870_v9 = vpop.f32.mrf.mxu3 }
 0xed7   : > { %v1814_v8 = vadd.f32 %v1813_v3, %v1773_v5  ;;  %v2218_v3 = vld [vmem:[#allocation2] sm:$0xff] }
 0xed8   : > { %v2227_v4 = vsel %vm339_vm4, %v2218_v3, 0 }
 0xed9   : > { %v1844_v14 = vadd.f32 %v1843_v13, %v1814_v8  ;;  %v7940_v5 = vand.u32 4294901760, %v2227_v4  ;;  %v2219_v8 = vld [vmem:[#allocation2 + $0x8] sm:$0xff] }
 0xedb   : > { %v1871_v1 = vadd.f32 %v1870_v9, %v1844_v14  ;;  %v7943_v14 = vsub.f32 %v2227_v4, %v7940_v5 }
 0xedc   : > { %v1903_v7 = vpop.f32.mrf.mxu0 }
 0xedd   : > { %v1904_v2 = vadd.f32 %v1903_v7, %v1871_v1  ;;  %v2230_v1 = vsel %vm339_vm4, %v2219_v8, 0 }
 0xedf   : > { %v1929_v6 = vadd.f32 %v1928_v15, %v1904_v2  ;;  %v2272_v15 = vand.u32 4294901760, %v7943_v14 }
 0xee1   : > { %1952 = vrot.lane.b32.xlu0 %v1929_v6, %s7374_s24  ;;  %v1931_v11 = vadd.f32 %v6914_v10, %v1929_v6  ;;  %v2220_v6 = vld [vmem:[#allocation2 + $0x10] sm:$0xff] }
 0xee3   : > { %v1932_v16 = vsub.f32 0.0, %v1931_v11 }
 0xee5   : > { %v1933_v60 = vmul.f32 1.442695, %v1932_v16  ;;  %v2233_v16 = vsel %vm339_vm4, %v2220_v6, 0 }
 0xee7   : > { %7062 = vpow2.f32 %v1933_v60 }
 0xeed   : > { %v7063_v61 = vpop.eup %7062 }
 0xeee   : > { %v1935_v19 = vadd.f32 1.0, %v7063_v61  ;;  %v2273_v61 = vsub.f32 %v7943_v14, %v2272_v15 }
 0xef0   : > { %7064 = vrcp.f32 %v1935_v19  ;;  %v1947_v18 = vand.u32 2147483648, %v1935_v19  ;;  %vm1941_vm11 = vweird.f32 %v1935_v19  ;;  %v1945_v21 = vand.u32 2147483647, %v1935_v19 }
 0xef2   : > { %v1948_v24 = vor.u32 1.1754944e-38, %v1947_v18  ;;  %vm1946_vm13 = vcmp.eq.f32.partialorder %v1945_v21, 8.507059e+37 }
 0xef6   : > { %v7065_v20 = vpop.eup %7064 }
 0xef7   : > { %v1937_v62 = vmul.f32 %v7065_v20, %v1935_v19  ;;  %vm1942_vm10 = vweird.f32 %v7065_v20 }
 0xef8   : > { %vm1943_vm12 = vmor %vm1941_vm11, %vm1942_vm10 }
 0xef9   : > { %v1938_v63 = vsub.f32 1.0, %v1937_v62  ;;  %v7962_v62 = vand.u32 4294901760, %v2233_v16 }
 0xefb   : > { %v1939_v23 = vmul.f32 %v7065_v20, %v1938_v63  ;;  %v2274_v63 = vand.u32 4294901760, %v2273_v61  ;;  %v2287_v18 = vsub.f32 %v2233_v16, %v7962_v62 }
 0xefd   : > { %v1940_v17 = vadd.f32 %v7065_v20, %v1939_v23 }
 0xeff   : > { %v1944_v26 = vsel %vm1943_vm12, %v7065_v20, %v1940_v17  ;;  %v2221_v17 = vld [vmem:[#allocation2 + $0x18] sm:$0xff] }
 0xf00   : > { %v1949_v28 = vsel %vm1946_vm13, %v1948_v24, %v1944_v26  ;;  %v2236_v21 = vsel %vm339_vm4, %v2221_v17, 0  ;;  %v2288_v24 = vand.u32 4294901760, %v2287_v18 }
 0xf01   : > { %v1962_v33 = vsub.f32 1.0, %v1949_v28  ;;  %v1968_v25 = vmul.f32 %v1949_v28, %v7881_v53  ;;  %v2361_v53 = vand.u32 4294901760, %v2360_v50 }
 0xf03   : > { %v2362_v56 = vsub.f32 %v2360_v50, %v2361_v53 }
 0xf05   : > { %v2363_v58 = vand.u32 4294901760, %v2362_v56 }
 0xf07   : > { %2364 = vmatpush.msra.mxu1 %v2363_v58 }
 0xf09   : > { %2370 = vmatpush.msra.mxu1 %v2369_v0 }
 0xf53   : > { %v1953_v27 = vpop.permute.xlu0 %1952 }
 0xf54   : > { %v1955_v29 = vmul.f32 %v1953_v27, %v1949_v28  ;;  %v7977_v27 = vand.u32 4294901760, %v2236_v21 }
 0xf56   : > { %1957 = vrot.lane.b32.xlu1 %v1955_v29, %s7374_s24  ;;  %v2222_v29 = vld [vmem:[#allocation2 + $0x20] sm:$0xff] }
 0xfc8   : > { %v1958_v30 = vpop.permute.xlu1 %1957 }
 0xfc9   : > { %v1960_v31 = vadd.f32 %v6914_v10, %v1958_v30  ;;  %v7949_v10 = vand.u32 4294901760, %v2230_v1  ;;  %v2295_v30 = vsub.f32 %v2236_v21, %v7977_v27 }
 0xfcb   : > { %7066 = vtanh.f32 %v1960_v31  ;;  %v7958_v19 = vsub.f32 %v2230_v1, %v7949_v10  ;;  %v2239_v31 = vsel %vm339_vm4, %v2222_v29, 0 }
 0xfcd   : > { %v2280_v23 = vand.u32 4294901760, %v7958_v19 }
 0xfcf   : > { %v2281_v26 = vsub.f32 %v7958_v19, %v2280_v23 }
 0xfd1   : > { %v7067_v32 = vpop.eup %7066  ;;  %v2282_v28 = vand.u32 4294901760, %v2281_v26 }
 0xfd2   : > { %1964 = vrot.lane.b32.xlu2 %v7067_v32, %s7375_s14  ;;  %v2289_v32 = vsub.f32 %v2287_v18, %v2288_v24 }
0x102c   : > { %v1965_v34 = vpop.permute.xlu2 %1964 }
0x102d   : > { %v1967_v35 = vmul.f32 %v1965_v34, %v1962_v33  ;;  %v2296_v33 = vand.u32 4294901760, %v2295_v30  ;;  %v7985_v34 = vand.u32 4294901760, %v2239_v31 }
0x102f   : > { %v7911_v36 = vadd.f32 %v1968_v25, %v1967_v35  ;;  %v2290_v25 = vand.u32 4294901760, %v2289_v32  ;;  %v2223_v35 = vld [vmem:[#allocation2 + $0x28] sm:$0xff]  ;;  %v2303_v37 = vsub.f32 %v2239_v31, %v7985_v34  ;;  %v2297_v39 = vsub.f32 %v2295_v30, %v2296_v33 }
0x1031   : > { %1971 = vrot.lane.b32.xlu0 %v7911_v36, %s7375_s14  ;;  %v2298_v42 = vand.u32 4294901760, %v2297_v39 }
0x10a3   : > { %v1972_v13 = vpop.permute.xlu0 %1971 }
0x10a4   : > { %1975 = vst.msk [vmem:[#allocation2 + $0x30] sm:$0xff] %vm339_vm4, %v1972_v13  ;;  %v1978_v9 = vsel %vm339_vm4, %v1972_v13, 0 }
0x10a5   : > { %v2000_v7 = vand.u32 4294901760, %v1978_v9 }
0x10a7   : > { %v2001_v2 = vsub.f32 %v1978_v9, %v2000_v7  ;;  %2046 = vmatmul.f32.vlgmr.msra.gmra.mxu3 %v2000_v7 }
0x10a8   : > { %6921 = vmatpush.msra.mxu3 %v7915_v38 }
0x10a9   : > { %v2002_v11 = vand.u32 4294901760, %v2001_v2  ;;  %2076 = vmatmul.f32.vlgmr.msrb.gmra.mxu0 %v2001_v2 }
0x10aa   : > { %6922 = vmatpush.msra.mxu3 %v7918_v40  ;;  %2553 = vmatpush.msrb.mxu0 %v2349_v43 }
0x10ab   : > { %v2003_v60 = vsub.f32 %v2001_v2, %v2002_v11  ;;  %2103 = vmatmul.f32.vlgmr.msrb.gmra.mxu1 %v2002_v11  ;;  %v2224_v43 = vld [vmem:[#allocation2 + $0x30] sm:$0xff]  ;;  %v6915_v2 = vld [vmem:[%s7560_s8 + $0x38] sm:$0xff] }
0x10ac   : > { %6923 = vmatpush.msra.mxu3 %v7925_v44  ;;  %2612 = vmatpush.msrb.mxu1 %v7915_v38 }
0x10ad   : > { %v2004_v20 = vand.u32 4294901760, %v2003_v60  ;;  %2557 = vmatpush.msrb.mxu0 %v2355_v48 }
0x10ae   : > { %6924 = vmatpush.msra.mxu3 %v7933_v49  ;;  %2614 = vmatpush.msrb.mxu1 %v7918_v40 }
0x10af   : > { %2005 = vmatmul.f32.vlgmr.msra.gmra.mxu2 %v2004_v20  ;;  %2161 = vmatmul.f32.vlgmr.msrb.gmra.mxu3 %v2000_v7 }
0x10b0   : > { %2418 = vmatpush.msra.mxu2 %v7921_v41  ;;  %2616 = vmatpush.msrb.mxu1 %v7925_v44 }
0x10b1   : > { %2275 = vmatmul.f32.vlgmr.msra.gmra.mxu0 %v2274_v63 }
0x10b2   : > { %2421 = vmatpush.msra.mxu2 %v7928_v45  ;;  %2618 = vmatpush.msrb.mxu1 %v7933_v49  ;;  %v2245_v45 = vsel %vm339_vm4, %v2224_v43, 0 }
0x10b3   : > { %2372 = vmatmul.f32.vlgmr.msra.gmra.mxu1 %v7940_v5  ;;  %2561 = vmatpush.msrb.mxu0 %v2361_v53  ;;  %v7998_v48 = vand.u32 4294901760, %v2245_v45 }
0x10b4   : > { %2424 = vmatpush.msra.mxu2 %v2360_v50 }
0x10b5   : > { %2565 = vmatpush.msrb.mxu0 %v2367_v57  ;;  %v2319_v50 = vsub.f32 %v2245_v45, %v7998_v48 }
0x10b6   : > { %2427 = vmatpush.msra.mxu2 %v2366_v54 }
0x10b7   : > { %2136 = vmatmul.f32.vlgmr.msrb.gmra.mxu2 %v2000_v7  ;;  %2504 = vmatmul.f32.vlgmr.msra.gmra.mxu3 %v2288_v24  ;;  %v2320_v52 = vand.u32 4294901760, %v2319_v50 }
0x10b8   : > { %2482 = vmatpush.msrb.mxu2 %v7915_v38  ;;  %v2242_v38 = vsel %vm339_vm4, %v2223_v35, 0 }
0x10b9   : > { %2283 = vmatmul.f32.gmra.mxu0 %v2282_v28  ;;  %v7992_v41 = vand.u32 4294901760, %v2242_v38  ;;  %v2321_v54 = vsub.f32 %v2319_v50, %v2320_v52 }
0x10ba   : > { %2484 = vmatpush.msrb.mxu2 %v7918_v40  ;;  %v2304_v40 = vand.u32 4294901760, %v2303_v37 }
0x10bb   : > { %2376 = vmatmul.f32.gmra.mxu1 %v7949_v10  ;;  %v2322_v55 = vand.u32 4294901760, %v2321_v54 }
0x10bc   : > { %2486 = vmatpush.msrb.mxu2 %v7925_v44  ;;  %v2311_v44 = vsub.f32 %v2242_v38, %v7992_v41  ;;  %v2305_v46 = vsub.f32 %v2303_v37, %v2304_v40 }
0x10be   : > { %2488 = vmatpush.msrb.mxu2 %v7933_v49  ;;  %v2312_v47 = vand.u32 4294901760, %v2311_v44  ;;  %v2306_v49 = vand.u32 4294901760, %v2305_v46 }
0x10bf   : > { %2430 = vmatmul.f32.vlgmr.msra.gmra.mxu2 %v7943_v14  ;;  %2510 = vmatmul.f32.gmra.mxu3 %v2296_v33 }
0x10c0   : > { %v2313_v51 = vsub.f32 %v2311_v44, %v2312_v47 }
0x10c1   : > { %2291 = vmatmul.f32.gmra.mxu0 %v2290_v25 }
0x10c2   : > { %v2314_v53 = vand.u32 4294901760, %v2313_v51 }
0x10c3   : > { %2380 = vmatmul.f32.gmra.mxu1 %v7962_v62 }
0x10c7   : > { %2435 = vmatmul.f32.gmra.mxu2 %v7958_v19  ;;  %2516 = vmatmul.f32.gmra.mxu3 %v2304_v40 }
0x10c9   : > { %2299 = vmatmul.f32.gmra.mxu0 %v2298_v42 }
0x10cb   : > { %2384 = vmatmul.f32.gmra.mxu1 %v7977_v27 }
0x10cf   : > { %2440 = vmatmul.f32.gmra.mxu2 %v2287_v18  ;;  %2522 = vmatmul.f32.gmra.mxu3 %v2312_v47 }
0x10d1   : > { %2307 = vmatmul.f32.gmra.mxu0 %v2306_v49 }
0x10d3   : > { %2388 = vmatmul.f32.gmra.mxu1 %v7985_v34 }
0x10d7   : > { %2445 = vmatmul.f32.gmra.mxu2 %v2295_v30  ;;  %2528 = vmatmul.f32.gmra.mxu3 %v2320_v52 }
0x10d9   : > { %2315 = vmatmul.f32.gmra.mxu0 %v2314_v53 }
0x10db   : > { %2392 = vmatmul.f32.gmra.mxu1 %v7992_v41 }
0x10df   : > { %2450 = vmatmul.f32.gmra.mxu2 %v2303_v37 }
0x10e1   : > { %2323 = vmatmul.f32.gmra.mxu0 %v2322_v55  ;;  %v2217_v55 = vld [vmem:[#allocation9 + $0x2e0] sm:$0xff] }
0x10e3   : > { %2396 = vmatmul.f32.gmra.mxu1 %v7998_v48 }
0x10e7   : > { %2455 = vmatmul.f32.gmra.mxu2 %v2311_v44 }
0x10ef   : > { %2460 = vmatmul.f32.gmra.mxu2 %v2319_v50 }
0x1126   : > { %v2077_v0 = vpop.f32.mrf.mxu0 }
0x1128   : > { %v2104_v4 = vpop.f32.mrf.mxu1 }
0x112a   : > { %v2047_v56 = vpop.f32.mrf.mxu3 }
0x1132   : > { %v2006_v57 = vpop.f32.mrf.mxu2  ;;  %v2162_v1 = vpop.f32.mrf.mxu3 }
0x1133   : > { %v2007_v58 = vadd.f32 %v7903_v12, %v2006_v57  ;;  %v2216_v57 = vld [vmem:[#allocation9 + $0x2d8] sm:$0xff] }
0x1135   : > { %v2048_v59 = vadd.f32 %v2047_v56, %v2007_v58  ;;  %v2696_v56 = vand.u32 4294901760, %v2217_v55 }
0x1137   : > { %v2078_v3 = vadd.f32 %v2077_v0, %v2048_v59  ;;  %v2782_v58 = vsub.f32 %v2217_v55, %v2696_v56  ;;  %v2698_v59 = vand.u32 4294901760, %v2216_v57  ;;  %2916 = vmatpush.msra.mxu1 %v2696_v56  ;;  %2697 = vmatpush.msra.mxu2 %v2696_v56  ;;  %v2215_v0 = vld [vmem:[#allocation9 + $0x2d0] sm:$0xff] }
0x1139   : > { %v2105_v8 = vadd.f32 %v2104_v4, %v2078_v3  ;;  %v2783_v4 = vand.u32 4294901760, %v2782_v58  ;;  %2852 = vmatpush.msra.mxu0 %v2782_v58  ;;  %2918 = vmatpush.msra.mxu1 %v2698_v59 }
0x113a   : > { %v2137_v13 = vpop.f32.mrf.mxu2  ;;  %2699 = vmatpush.msra.mxu2 %v2698_v59 }
0x113b   : > { %v2138_v9 = vadd.f32 %v2137_v13, %v2105_v8  ;;  %v2788_v8 = vsub.f32 %v2216_v57, %v2698_v59  ;;  %v2700_v13 = vand.u32 4294901760, %v2215_v0 }
0x113d   : > { %v2163_v7 = vadd.f32 %v2162_v1, %v2138_v9  ;;  %v2214_v1 = vld [vmem:[#allocation9 + $0x2c8] sm:$0xff]  ;;  %2855 = vmatpush.msra.mxu0 %v2788_v8  ;;  %2920 = vmatpush.msra.mxu1 %v2700_v13 }
0x113e   : > { %2701 = vmatpush.msra.mxu2 %v2700_v13 }
0x113f   : > { %2186 = vrot.lane.b32.xlu1 %v2163_v7, %s7374_s24  ;;  %v2165_v6 = vadd.f32 %v6915_v2, %v2163_v7  ;;  %v2784_v7 = vsub.f32 %v2782_v58, %v2783_v4 }
0x1141   : > { %v2166_v11 = vsub.f32 0.0, %v2165_v6  ;;  %v2794_v6 = vsub.f32 %v2215_v0, %v2700_v13 }
0x1142   : > { %v8035_v14 = vpop.f32.mrf.mxu2 }
0x1143   : > { %v2167_v16 = vmul.f32 1.442695, %v2166_v11  ;;  %v2702_v11 = vand.u32 4294901760, %v2214_v1  ;;  %2858 = vmatpush.msra.mxu0 %v2794_v6 }
0x1145   : > { %7068 = vpow2.f32 %v2167_v16  ;;  %2922 = vmatpush.msra.mxu1 %v2702_v11  ;;  %2703 = vmatpush.msra.mxu2 %v2702_v11 }
0x114a   : > { %v8041_v19 = vpop.f32.mrf.mxu2 }
0x114b   : > { %v7069_v60 = vpop.eup %7068 }
0x114c   : > { %v2169_v61 = vadd.f32 1.0, %v7069_v60  ;;  %v2785_v60 = vand.u32 4294901760, %v2784_v7 }
0x114e   : > { %7070 = vrcp.f32 %v2169_v61  ;;  %v2181_v21 = vand.u32 2147483648, %v2169_v61  ;;  %vm2175_vm15 = vweird.f32 %v2169_v61  ;;  %v2179_v26 = vand.u32 2147483647, %v2169_v61  ;;  %2786 = vmatpush.msrb.mxu3 %v2785_v60 }
0x1150   : > { %v2182_v28 = vor.u32 1.1754944e-38, %v2181_v21  ;;  %vm2180_vm1 = vcmp.eq.f32.partialorder %v2179_v26, 8.507059e+37 }
0x1154   : > { %v7071_v12 = vpop.eup %7070 }
0x1155   : > { %v2171_v20 = vmul.f32 %v7071_v12, %v2169_v61  ;;  %vm2176_vm14 = vweird.f32 %v7071_v12 }
0x1156   : > { %vm2177_vm0 = vmor %vm2175_vm15, %vm2176_vm14 }
0x1157   : > { %v2172_v63 = vsub.f32 1.0, %v2171_v20  ;;  %v2800_v20 = vsub.f32 %v2214_v1, %v2702_v11 }
0x1159   : > { %v2173_v17 = vmul.f32 %v7071_v12, %v2172_v63  ;;  %2861 = vmatpush.msra.mxu0 %v2800_v20 }
0x115b   : > { %v2174_v18 = vadd.f32 %v7071_v12, %v2173_v17 }
0x115d   : > { %v2178_v24 = vsel %vm2177_vm0, %v7071_v12, %v2174_v18  ;;  %v2795_v12 = vand.u32 4294901760, %v2794_v6  ;;  %v2801_v18 = vand.u32 4294901760, %v2800_v20  ;;  %vm6741_vm0 = vcmask 31744  }
0x115e   : > { %v2183_v30 = vsel %vm2180_vm1, %v2182_v28, %v2178_v24 }
0x115f   : > { %v2196_v35 = vsub.f32 1.0, %v2183_v30  ;;  %v2202_v38 = vmul.f32 %v2183_v30, %v7911_v36  ;;  %v8030_v36 = vpop.f32.mrf.mxu1  ;;  %v2796_v17 = vsub.f32 %v2794_v6, %v2795_v12  ;;  %v2802_v26 = vsub.f32 %v2800_v20, %v2801_v18 }
0x1161   : > { %v2797_v21 = vand.u32 4294901760, %v2796_v17  ;;  %v2803_v28 = vand.u32 4294901760, %v2802_v26 }
0x11b1   : > { %v2187_v29 = vpop.permute.xlu1 %2186 }
0x11b2   : > { %v2189_v31 = vmul.f32 %v2187_v29, %v2183_v30 }
0x11b4   : > { %2191 = vrot.lane.b32.xlu2 %v2189_v31, %s7374_s24 }
0x120e   : > { %v2192_v32 = vpop.permute.xlu2 %2191 }
0x120f   : > { %v2194_v33 = vadd.f32 %v6915_v2, %v2192_v32  ;;  %v2789_v2 = vand.u32 4294901760, %v2788_v8 }
0x1211   : > { %7072 = vtanh.f32 %v2194_v33  ;;  %v2790_v61 = vsub.f32 %v2788_v8, %v2789_v2 }
0x1213   : > { %v2791_v63 = vand.u32 4294901760, %v2790_v61 }
0x1215   : > { %2792 = vmatpush.msrb.mxu3 %v2791_v63 }
0x1217   : > { %v7073_v25 = vpop.eup %7072  ;;  %2798 = vmatpush.msrb.mxu3 %v2797_v21 }
0x1218   : > { %2198 = vrot.lane.b32.xlu0 %v7073_v25, %s7375_s14 }
0x1219   : > { %2804 = vmatpush.msrb.mxu3 %v2803_v28 }
0x121b   : > { %3046 = vmatpush.msra.mxu3 %v2696_v56 }
0x121d   : > { %3048 = vmatpush.msra.mxu3 %v2698_v59 }
0x121f   : > { %3050 = vmatpush.msra.mxu3 %v2700_v13 }
0x1221   : > { %3052 = vmatpush.msra.mxu3 %v2702_v11 }
0x128a   : > { %v2199_v37 = vpop.permute.xlu0 %2198 }
0x128b   : > { %v2201_v39 = vmul.f32 %v2199_v37, %v2196_v35 }
0x128d   : > { %v2203_v40 = vadd.f32 %v2202_v38, %v2201_v39 }
0x128f   : > { %2205 = vrot.lane.b32.xlu1 %v2203_v40, %s7375_s14 }
0x1301   : > { %v2206_v42 = vpop.permute.xlu1 %2205 }
0x1302   : > { %2209 = vst.msk [vmem:[#allocation2 + $0x38] sm:$0xff] %vm339_vm4, %v2206_v42 }
0x1309   : > { %v2225_v43 = vld [vmem:[#allocation2 + $0x38] sm:$0xff] }
0x130a   : > { %v2248_v44 = vsel %vm339_vm4, %v2225_v43, 0 }
0x130b   : > { %v2326_v45 = vand.u32 4294901760, %v2248_v44 }
0x130d   : > { %2400 = vmatmul.f32.gmra.mxu1 %v2326_v45  ;;  %v2327_v46 = vsub.f32 %v2248_v44, %v2326_v45 }
0x130f   : > { %2465 = vmatmul.f32.gmra.mxu2 %v2327_v46  ;;  %v2328_v47 = vand.u32 4294901760, %v2327_v46 }
0x1311   : > { %2534 = vmatmul.f32.gmra.mxu3 %v2328_v47  ;;  %v2329_v49 = vsub.f32 %v2327_v46, %v2328_v47 }
0x1313   : > { %v2330_v50 = vand.u32 4294901760, %v2329_v49 }
0x1315   : > { %2331 = vmatmul.f32.gmra.mxu0 %v2330_v50  ;;  %2620 = vmatmul.f32.vlgmr.msrb.gmra.mxu1 %v7940_v5 }
0x1317   : > { %2492 = vmatmul.f32.vlgmr.msrb.gmra.mxu2 %v2272_v15  ;;  %v8037_v15 = vpop.f32.mrf.mxu1 }
0x1318   : > { %2987 = vmatpush.msrb.mxu2 %v2783_v4 }
0x131a   : > { %2991 = vmatpush.msrb.mxu2 %v2789_v2 }
0x131c   : > { %2995 = vmatpush.msrb.mxu2 %v2795_v12 }
0x131d   : > { %2567 = vmatmul.f32.vlgmr.msrb.gmra.mxu0 %v7940_v5  ;;  %2624 = vmatmul.f32.gmra.mxu1 %v7949_v10  ;;  %v8032_v5 = vpop.f32.mrf.mxu0 }
0x131e   : > { %2999 = vmatpush.msrb.mxu2 %v2801_v18  ;;  %v2374_v25 = vadd.f32 %v8030_v36, %v8032_v5 }
0x131f   : > { %2498 = vmatmul.f32.gmra.mxu2 %v2280_v23 }
0x1320   : > { %v2432_v35 = vadd.f32 %v8035_v14, %v2374_v25 }
0x1325   : > { %2571 = vmatmul.f32.gmra.mxu0 %v7949_v10  ;;  %2628 = vmatmul.f32.gmra.mxu1 %v7962_v62  ;;  %v8039_v10 = vpop.f32.mrf.mxu0 }
0x1326   : > { %v2378_v43 = vadd.f32 %v8037_v15, %v8039_v10 }
0x1328   : > { %v2437_v46 = vadd.f32 %v8041_v19, %v2378_v43 }
0x132d   : > { %2575 = vmatmul.f32.gmra.mxu0 %v7962_v62  ;;  %2632 = vmatmul.f32.gmra.mxu1 %v7977_v27  ;;  %v8043_v62 = vpop.f32.mrf.mxu1  ;;  %v8045_v23 = vpop.f32.mrf.mxu0 }
0x132e   : > { %v2382_v50 = vadd.f32 %v8043_v62, %v8045_v23 }
0x1335   : > { %2579 = vmatmul.f32.gmra.mxu0 %v7977_v27  ;;  %2636 = vmatmul.f32.gmra.mxu1 %v7985_v34  ;;  %v8047_v27 = vpop.f32.mrf.mxu2 }
0x1336   : > { %v2442_v14 = vadd.f32 %v8047_v27, %v2382_v50 }
0x133d   : > { %2583 = vmatmul.f32.gmra.mxu0 %v7985_v34  ;;  %2640 = vmatmul.f32.gmra.mxu1 %v7992_v41  ;;  %v8049_v34 = vpop.f32.mrf.mxu1 }
0x1345   : > { %2587 = vmatmul.f32.gmra.mxu0 %v7992_v41  ;;  %2644 = vmatmul.f32.gmra.mxu1 %v7998_v48  ;;  %v8051_v41 = vpop.f32.mrf.mxu0  ;;  %v8055_v51 = vpop.f32.mrf.mxu1 }
0x1346   : > { %v2386_v0 = vadd.f32 %v8049_v34, %v8051_v41 }
0x134d   : > { %2591 = vmatmul.f32.gmra.mxu0 %v7998_v48  ;;  %2648 = vmatmul.f32.gmra.mxu1 %v2326_v45  ;;  %v8053_v48 = vpop.f32.mrf.mxu2  ;;  %v8057_v52 = vpop.f32.mrf.mxu0 }
0x134e   : > { %v8061_v54 = vpop.f32.mrf.mxu1  ;;  %v2447_v27 = vadd.f32 %v8053_v48, %v2386_v0  ;;  %v2390_v60 = vadd.f32 %v8055_v51, %v8057_v52 }
0x1355   : > { %2595 = vmatmul.f32.gmra.mxu0 %v2326_v45  ;;  %v8059_v53 = vpop.f32.mrf.mxu2  ;;  %v8063_v3 = vpop.f32.mrf.mxu0 }
0x1356   : > { %v8067_v16 = vpop.f32.mrf.mxu1  ;;  %v2505_v45 = vpop.f32.mrf.mxu3  ;;  %v2452_v63 = vadd.f32 %v8059_v53, %v2390_v60 }
0x1357   : > { %v2506_v15 = vadd.f32 %v2505_v45, %v2442_v14 }
0x135d   : > { %v8065_v9 = vpop.f32.mrf.mxu2  ;;  %v8069_v24 = vpop.f32.mrf.mxu0 }
0x135e   : > { %v2511_v19 = vpop.f32.mrf.mxu3 }
0x135f   : > { %v2512_v6 = vadd.f32 %v2511_v19, %v2447_v27 }
0x1365   : > { %v8071_v29 = vpop.f32.mrf.mxu2 }
0x1366   : > { %v2517_v12 = vpop.f32.mrf.mxu3 }
0x1367   : > { %v2518_v52 = vadd.f32 %v2517_v12, %v2452_v63 }
0x138a   : > { %v8073_v30 = vpop.f32.mrf.mxu1 }
0x1392   : > { %v8075_v31 = vpop.f32.mrf.mxu0  ;;  %v8077_v32 = vpop.f32.mrf.mxu2 }
0x1393   : > { %v2621_v33 = vpop.f32.mrf.mxu1 }
0x139a   : > { %v2493_v37 = vpop.f32.mrf.mxu2  ;;  %v2568_v38 = vpop.f32.mrf.mxu0 }
0x139b   : > { %v2494_v39 = vadd.f32 %v2493_v37, %v2432_v35  ;;  %v2625_v40 = vpop.f32.mrf.mxu1  ;;  %v2394_v37 = vadd.f32 %v8061_v54, %v8063_v3 }
0x139d   : > { %v2569_v42 = vadd.f32 %v2568_v38, %v2494_v39 }
0x139f   : > { %v2622_v44 = vadd.f32 %v2621_v33, %v2569_v42 }
0x13a1   : > { %7074 = vtanh.f32 %v2622_v44  ;;  %v2523_v44 = vpop.f32.mrf.mxu3 }
0x13a2   : > { %v2499_v47 = vpop.f32.mrf.mxu2  ;;  %v2572_v49 = vpop.f32.mrf.mxu0 }
0x13a3   : > { %v2500_v36 = vadd.f32 %v2499_v47, %v2437_v46  ;;  %v2629_v5 = vpop.f32.mrf.mxu1 }
0x13a5   : > { %v2573_v55 = vadd.f32 %v2572_v49, %v2500_v36  ;;  %v2398_v36 = vadd.f32 %v8067_v16, %v8069_v24  ;;  %v2402_v16 = vadd.f32 %v8073_v30, %v8075_v31 }
0x13a7   : > { %v7075_v56 = vpop.eup %7074  ;;  %v2626_v57 = vadd.f32 %v2625_v40, %v2573_v55  ;;  %v2457_v40 = vadd.f32 %v8065_v9, %v2394_v37  ;;  %v2462_v55 = vadd.f32 %v8071_v29, %v2398_v36 }
0x13a8   : > { %v2661_v58 = vsel %vm339_vm4, %v7075_v56, 0 }
0x13a9   : > { %7076 = vtanh.f32 %v2626_v57  ;;  %v8089_v10 = vand.u32 4294901760, %v2661_v58  ;;  %v2524_v54 = vadd.f32 %v2523_v44, %v2457_v40  ;;  %v2529_v19 = vpop.f32.mrf.mxu3 }
0x13aa   : > { %v2576_v59 = vpop.f32.mrf.mxu0  ;;  %v2530_v24 = vadd.f32 %v2529_v19, %v2462_v55 }
0x13ab   : > { %v2577_v4 = vadd.f32 %v2576_v59, %v2506_v15  ;;  %v2705_v62 = vsub.f32 %v2661_v58, %v8089_v10  ;;  %2806 = vmatmul.f32.vlgmr.msrb.gmra.mxu3 %v8089_v10  ;;  %v2633_v23 = vpop.f32.mrf.mxu1 }
0x13ad   : > { %v2630_v8 = vadd.f32 %v2629_v5, %v2577_v4  ;;  %2864 = vmatmul.f32.vlgmr.msra.gmra.mxu0 %v2705_v62  ;;  %v2706_v13 = vand.u32 4294901760, %v2705_v62 }
0x13af   : > { %v7077_v1 = vpop.eup %7076  ;;  %7078 = vtanh.f32 %v2630_v8  ;;  %2926 = vmatmul.f32.vlgmr.msra.gmra.mxu1 %v2706_v13  ;;  %v2707_v7 = vsub.f32 %v2705_v62, %v2706_v13  ;;  %v2467_v8 = vadd.f32 %v8077_v32, %v2402_v16 }
0x13b0   : > { %v2664_v2 = vsel %vm339_vm4, %v7077_v1, 0 }
0x13b1   : > { %v2708_v11 = vand.u32 4294901760, %v2707_v7  ;;  %v8097_v34 = vand.u32 4294901760, %v2664_v2  ;;  %v2535_v31 = vpop.f32.mrf.mxu3 }
0x13b2   : > { %v2580_v41 = vpop.f32.mrf.mxu0 }
0x13b3   : > { %v2581_v61 = vadd.f32 %v2580_v41, %v2512_v6  ;;  %2709 = vmatmul.f32.vlgmr.msra.gmra.mxu2 %v2708_v11  ;;  %2810 = vmatmul.f32.gmra.mxu3 %v8097_v34  ;;  %v2713_v48 = vsub.f32 %v2664_v2, %v8097_v34  ;;  %v2637_v21 = vpop.f32.mrf.mxu1  ;;  %v2536_v2 = vadd.f32 %v2535_v31, %v2467_v8 }
0x13b5   : > { %v7079_v20 = vpop.eup %7078  ;;  %v2634_v17 = vadd.f32 %v2633_v23, %v2581_v61  ;;  %2869 = vmatmul.f32.gmra.mxu0 %v2713_v48  ;;  %v2714_v18 = vand.u32 4294901760, %v2713_v48 }
0x13b6   : > { %v2667_v26 = vsel %vm339_vm4, %v7079_v20, 0 }
0x13b7   : > { %7080 = vtanh.f32 %v2634_v17  ;;  %2932 = vmatmul.f32.gmra.mxu1 %v2714_v18  ;;  %v2715_v28 = vsub.f32 %v2713_v48, %v2714_v18  ;;  %v8105_v51 = vand.u32 4294901760, %v2667_v26 }
0x13b9   : > { %v2716_v33 = vand.u32 4294901760, %v2715_v28  ;;  %v2721_v25 = vsub.f32 %v2667_v26, %v8105_v51 }
0x13ba   : > { %v2584_v35 = vpop.f32.mrf.mxu0 }
0x13bb   : > { %v2585_v53 = vadd.f32 %v2584_v35, %v2518_v52  ;;  %2717 = vmatmul.f32.gmra.mxu2 %v2716_v33  ;;  %2814 = vmatmul.f32.gmra.mxu3 %v8105_v51  ;;  %v2722_v38 = vand.u32 4294901760, %v2721_v25  ;;  %v2641_v47 = vpop.f32.mrf.mxu1 }
0x13bd   : > { %v7081_v39 = vpop.eup %7080  ;;  %v2638_v42 = vadd.f32 %v2637_v21, %v2585_v53  ;;  %2874 = vmatmul.f32.gmra.mxu0 %v2721_v25  ;;  %v2723_v43 = vsub.f32 %v2721_v25, %v2722_v38 }
0x13be   : > { %v2670_v45 = vsel %vm339_vm4, %v7081_v39, 0 }
0x13bf   : > { %7082 = vtanh.f32 %v2638_v42  ;;  %2938 = vmatmul.f32.gmra.mxu1 %v2722_v38  ;;  %v8113_v46 = vand.u32 4294901760, %v2670_v45  ;;  %v2724_v3 = vand.u32 4294901760, %v2723_v43 }
0x13c1   : > { %v2729_v49 = vsub.f32 %v2670_v45, %v8113_v46 }
0x13c2   : > { %v2588_v50 = vpop.f32.mrf.mxu0 }
0x13c3   : > { %v2589_v9 = vadd.f32 %v2588_v50, %v2524_v54  ;;  %2725 = vmatmul.f32.gmra.mxu2 %v2724_v3  ;;  %2818 = vmatmul.f32.gmra.mxu3 %v8113_v46  ;;  %v2730_v5 = vand.u32 4294901760, %v2729_v49  ;;  %v2645_v4 = vpop.f32.mrf.mxu1 }
0x13c5   : > { %v7083_v14 = vpop.eup %7082  ;;  %v2642_v56 = vadd.f32 %v2641_v47, %v2589_v9  ;;  %2879 = vmatmul.f32.gmra.mxu0 %v2729_v49  ;;  %v2731_v57 = vsub.f32 %v2729_v49, %v2730_v5 }
0x13c6   : > { %v2673_v58 = vsel %vm339_vm4, %v7083_v14, 0 }
0x13c7   : > { %7084 = vtanh.f32 %v2642_v56  ;;  %2944 = vmatmul.f32.gmra.mxu1 %v2730_v5  ;;  %v8121_v15 = vand.u32 4294901760, %v2673_v58  ;;  %v2732_v59 = vand.u32 4294901760, %v2731_v57 }
0x13c9   : > { %v2737_v0 = vsub.f32 %v2673_v58, %v8121_v15 }
0x13ca   : > { %v2592_v62 = vpop.f32.mrf.mxu0 }
0x13cb   : > { %v2593_v29 = vadd.f32 %v2592_v62, %v2530_v24  ;;  %2733 = vmatmul.f32.gmra.mxu2 %v2732_v59  ;;  %2822 = vmatmul.f32.gmra.mxu3 %v8121_v15  ;;  %v2738_v23 = vand.u32 4294901760, %v2737_v0  ;;  %v2649_v48 = vpop.f32.mrf.mxu1 }
0x13cd   : > { %v7085_v27 = vpop.eup %7084  ;;  %v2646_v13 = vadd.f32 %v2645_v4, %v2593_v29  ;;  %2884 = vmatmul.f32.gmra.mxu0 %v2737_v0  ;;  %v2739_v1 = vsub.f32 %v2737_v0, %v2738_v23 }
0x13ce   : > { %v2676_v7 = vsel %vm339_vm4, %v7085_v27, 0 }
0x13cf   : > { %7086 = vtanh.f32 %v2646_v13  ;;  %2950 = vmatmul.f32.gmra.mxu1 %v2738_v23  ;;  %v2744_v30 = vand.u32 4294901760, %v2676_v7  ;;  %v2740_v6 = vand.u32 4294901760, %v2739_v1 }
0x13d1   : > { %v2745_v11 = vsub.f32 %v2676_v7, %v2744_v30 }
0x13d2   : > { %v2596_v41 = vpop.f32.mrf.mxu0 }
0x13d3   : > { %v2597_v60 = vadd.f32 %v2596_v41, %v2536_v2  ;;  %2741 = vmatmul.f32.gmra.mxu2 %v2740_v6  ;;  %2826 = vmatmul.f32.gmra.mxu3 %v2744_v30  ;;  %v2746_v61 = vand.u32 4294901760, %v2745_v11 }
0x13d5   : > { %v7087_v12 = vpop.eup %7086  ;;  %v2650_v32 = vadd.f32 %v2649_v48, %v2597_v60  ;;  %2889 = vmatmul.f32.gmra.mxu0 %v2745_v11  ;;  %v2747_v20 = vsub.f32 %v2745_v11, %v2746_v61 }
0x13d6   : > { %v2679_v63 = vsel %vm339_vm4, %v7087_v12, 0 }
0x13d7   : > { %7088 = vtanh.f32 %v2650_v32  ;;  %2956 = vmatmul.f32.gmra.mxu1 %v2746_v61  ;;  %v2752_v17 = vand.u32 4294901760, %v2679_v63  ;;  %v2748_v18 = vand.u32 4294901760, %v2747_v20 }
0x13d9   : > { %v2753_v21 = vsub.f32 %v2679_v63, %v2752_v17  ;;  %v7376_v63 = vmov 0  }
0x13da   : > { %7020 = vset.pattern.permute.xlu0 %v7376_v63  ;;  %7019 = vset.pattern.permute.xlu2 %v7376_v63 }
0x13db   : > { %2749 = vmatmul.f32.gmra.mxu2 %v2748_v18  ;;  %2830 = vmatmul.f32.gmra.mxu3 %v2752_v17  ;;  %v2754_v26 = vand.u32 4294901760, %v2753_v21 }
0x13dc   : > { %7021 = vset.pattern.permute.xlu1 %v7376_v63 }
0x13dd   : > { %v7089_v28 = vpop.eup %7088  ;;  %2894 = vmatmul.f32.gmra.mxu0 %v2753_v21  ;;  %v2755_v52 = vsub.f32 %v2753_v21, %v2754_v26 }
0x13de   : > { %v2682_v33 = vsel %vm339_vm4, %v7089_v28, 0 }
0x13df   : > { %2962 = vmatmul.f32.gmra.mxu1 %v2754_v26  ;;  %v2760_v25 = vand.u32 4294901760, %v2682_v33  ;;  %v2756_v35 = vand.u32 4294901760, %v2755_v52 }
0x13e1   : > { %v2761_v37 = vsub.f32 %v2682_v33, %v2760_v25 }
0x13e3   : > { %2757 = vmatmul.f32.gmra.mxu2 %v2756_v35  ;;  %2834 = vmatmul.f32.gmra.mxu3 %v2760_v25  ;;  %v2762_v53 = vand.u32 4294901760, %v2761_v37 }
0x13e5   : > { %2899 = vmatmul.f32.gmra.mxu0 %v2761_v37  ;;  %v2763_v38 = vsub.f32 %v2761_v37, %v2762_v53 }
0x13e7   : > { %2968 = vmatmul.f32.gmra.mxu1 %v2762_v53  ;;  %v2764_v39 = vand.u32 4294901760, %v2763_v38 }
0x13eb   : > { %2765 = vmatmul.f32.gmra.mxu2 %v2764_v39  ;;  %3054 = vmatmul.f32.vlgmr.msra.gmra.mxu3 %v8089_v10 }
0x13f3   : > { %3001 = vmatmul.f32.vlgmr.msrb.gmra.mxu2 %v8089_v10  ;;  %3058 = vmatmul.f32.gmra.mxu3 %v8097_v34 }
0x13fb   : > { %3005 = vmatmul.f32.gmra.mxu2 %v8097_v34  ;;  %3062 = vmatmul.f32.gmra.mxu3 %v8105_v51 }
0x1403   : > { %3009 = vmatmul.f32.gmra.mxu2 %v8105_v51  ;;  %3066 = vmatmul.f32.gmra.mxu3 %v8113_v46 }
0x140b   : > { %3013 = vmatmul.f32.gmra.mxu2 %v8113_v46  ;;  %3070 = vmatmul.f32.gmra.mxu3 %v8121_v15 }
0x1413   : > { %3017 = vmatmul.f32.gmra.mxu2 %v8121_v15  ;;  %3074 = vmatmul.f32.gmra.mxu3 %v2744_v30 }
0x141b   : > { %3021 = vmatmul.f32.gmra.mxu2 %v2744_v30  ;;  %3078 = vmatmul.f32.gmra.mxu3 %v2752_v17 }
0x1423   : > { %3025 = vmatmul.f32.gmra.mxu2 %v2752_v17  ;;  %3082 = vmatmul.f32.gmra.mxu3 %v2760_v25 }
0x142a   : > { %v2865_v50 = vpop.f32.mrf.mxu0 }
0x142b   : > { %3029 = vmatmul.f32.gmra.mxu2 %v2760_v25 }
0x142c   : > { %v2927_v36 = vpop.f32.mrf.mxu1 }
0x142e   : > { %v2807_v10 = vpop.f32.mrf.mxu3 }
0x1432   : > { %v2870_v14 = vpop.f32.mrf.mxu0 }
0x1434   : > { %v2933_v57 = vpop.f32.mrf.mxu1 }
0x1436   : > { %v2710_v34 = vpop.f32.mrf.mxu2  ;;  %v2811_v40 = vpop.f32.mrf.mxu3 }
0x1437   : > { %v2808_v61 = vadd.f32 %v2807_v10, %v2710_v34 }
0x1439   : > { %v2866_v28 = vadd.f32 %v2865_v50, %v2808_v61 }
0x143a   : > { %v2875_v58 = vpop.f32.mrf.mxu0 }
0x143b   : > { %v2928_v10 = vadd.f32 %v2927_v36, %v2866_v28 }
0x143c   : > { %v2939_v16 = vpop.f32.mrf.mxu1 }
0x143e   : > { %v2718_v42 = vpop.f32.mrf.mxu2  ;;  %v2815_v43 = vpop.f32.mrf.mxu3 }
0x143f   : > { %v2812_v6 = vadd.f32 %v2811_v40, %v2718_v42 }
0x1441   : > { %v2871_v17 = vadd.f32 %v2870_v14, %v2812_v6 }
0x1442   : > { %v2880_v0 = vpop.f32.mrf.mxu0 }
0x1443   : > { %v2934_v37 = vadd.f32 %v2933_v57, %v2871_v17 }
0x1444   : > { %v2945_v4 = vpop.f32.mrf.mxu1 }
0x1446   : > { %v2726_v51 = vpop.f32.mrf.mxu2  ;;  %v2819_v44 = vpop.f32.mrf.mxu3 }
0x1447   : > { %v2816_v48 = vadd.f32 %v2815_v43, %v2726_v51 }
0x1449   : > { %v2876_v52 = vadd.f32 %v2875_v58, %v2816_v48 }
0x144a   : > { %v2885_v23 = vpop.f32.mrf.mxu0 }
0x144b   : > { %v2940_v34 = vadd.f32 %v2939_v16, %v2876_v52 }
0x144c   : > { %v2951_v27 = vpop.f32.mrf.mxu1 }
0x144e   : > { %v2734_v45 = vpop.f32.mrf.mxu2  ;;  %v2823_v47 = vpop.f32.mrf.mxu3 }
0x144f   : > { %v2820_v32 = vadd.f32 %v2819_v44, %v2734_v45 }
0x1451   : > { %v2881_v33 = vadd.f32 %v2880_v0, %v2820_v32 }
0x1452   : > { %v2890_v1 = vpop.f32.mrf.mxu0 }
0x1453   : > { %v2946_v44 = vadd.f32 %v2945_v4, %v2881_v33 }
0x1454   : > { %v2957_v30 = vpop.f32.mrf.mxu1 }
0x1456   : > { %v2742_v46 = vpop.f32.mrf.mxu2  ;;  %v2827_v54 = vpop.f32.mrf.mxu3 }
0x1457   : > { %v2824_v11 = vadd.f32 %v2823_v47, %v2742_v46 }
0x1459   : > { %v2886_v18 = vadd.f32 %v2885_v23, %v2824_v11 }
0x145a   : > { %v2895_v41 = vpop.f32.mrf.mxu0 }
0x145b   : > { %v2952_v53 = vadd.f32 %v2951_v27, %v2886_v18 }
0x145c   : > { %v2963_v21 = vpop.f32.mrf.mxu1 }
0x145e   : > { %v2750_v3 = vpop.f32.mrf.mxu2  ;;  %v2831_v49 = vpop.f32.mrf.mxu3 }
0x145f   : > { %v2828_v31 = vadd.f32 %v2827_v54, %v2750_v3  ;;  %v3086_v3 = vld [vmem:[%s7570_s7] sm:$0xff] }
0x1460   : > { %vm3092_vm2 = vcmp.gt.s32.totalorder %v3086_v3, 5  ;;  %vm3088_vm3 = vcmp.gt.s32.totalorder %v3086_v3, 1  ;;  %vm3091_vm5 = vcmp.gt.s32.totalorder %v3086_v3, 4  ;;  %vm3093_vm6 = vcmp.gt.s32.totalorder %v3086_v3, 6 }
0x1461   : > { %v2891_v20 = vadd.f32 %v2890_v1, %v2828_v31  ;;  %vm3087_vm7 = vcmp.gt.s32.totalorder %v3086_v3, 0  ;;  %vm3089_vm9 = vcmp.gt.s32.totalorder %v3086_v3, 2  ;;  %vm3090_vm10 = vcmp.gt.s32.totalorder %v3086_v3, 3 }
0x1462   : > { %v2900_v43 = vpop.f32.mrf.mxu0  ;;  %vm3094_vm11 = vcmp.gt.s32.totalorder %v3086_v3, 7 }
0x1463   : > { %v2958_v25 = vadd.f32 %v2957_v30, %v2891_v20 }
0x1466   : > { %v2758_v9 = vpop.f32.mrf.mxu2  ;;  %v2835_v5 = vpop.f32.mrf.mxu3 }
0x1467   : > { %v2832_v60 = vadd.f32 %v2831_v49, %v2758_v9 }
0x1469   : > { %v2896_v26 = vadd.f32 %v2895_v41, %v2832_v60 }
0x146b   : > { %v2964_v39 = vadd.f32 %v2963_v21, %v2896_v26 }
0x146e   : > { %v2766_v55 = vpop.f32.mrf.mxu2  ;;  %v8141_v56 = vpop.f32.mrf.mxu3 }
0x146f   : > { %v2836_v35 = vadd.f32 %v2835_v5, %v2766_v55  ;;  %v2969_v5 = vpop.f32.mrf.mxu1 }
0x1471   : > { %v2901_v46 = vadd.f32 %v2900_v43, %v2836_v35 }
0x1473   : > { %v2970_v36 = vadd.f32 %v2969_v5, %v2901_v46 }
0x1476   : > { %v3002_v15 = vpop.f32.mrf.mxu2  ;;  %v3059_v19 = vpop.f32.mrf.mxu3 }
0x1477   : > { %v3003_v54 = vadd.f32 %v3002_v15, %v2928_v10 }
0x1479   : > { %v3056_v58 = vadd.f32 %v8141_v56, %v3003_v54 }
0x147e   : > { %v3006_v24 = vpop.f32.mrf.mxu2  ;;  %v8143_v59 = vpop.f32.mrf.mxu3 }
0x147f   : > { %v3007_v51 = vadd.f32 %v3006_v24, %v2934_v37 }
0x1481   : > { %v3060_v14 = vadd.f32 %v3059_v19, %v3007_v51 }
0x1483   : > { %v3096_v4 = vsel %vm3088_vm3, %v3060_v14, -1e+30 }
0x1486   : > { %v3010_v62 = vpop.f32.mrf.mxu2  ;;  %v3067_v29 = vpop.f32.mrf.mxu3 }
0x1487   : > { %v3011_v49 = vadd.f32 %v3010_v62, %v2940_v34 }
0x1489   : > { %v3064_v16 = vadd.f32 %v8143_v59, %v3011_v49  ;;  %v3105_v59 = vsel %vm3103_vm8, %v3096_v4, -inf }
0x148b   : > { %v3097_v1 = vsel %vm3089_vm9, %v3064_v16, -1e+30 }
0x148c   : > { %v3106_v11 = vsel %vm3103_vm8, %v3097_v1, -inf }
0x148e   : > { %v3014_v8 = vpop.f32.mrf.mxu2  ;;  %v3071_v13 = vpop.f32.mrf.mxu3 }
0x148f   : > { %v3015_v50 = vadd.f32 %v3014_v8, %v2946_v44 }
0x1491   : > { %v3068_v24 = vadd.f32 %v3067_v29, %v3015_v50 }
0x1493   : > { %v3098_v56 = vsel %vm3090_vm10, %v3068_v24, -1e+30 }
0x1494   : > { %v3107_v41 = vsel %vm3103_vm8, %v3098_v56, -inf }
0x1496   : > { %v3018_v7 = vpop.f32.mrf.mxu2  ;;  %v3075_v2 = vpop.f32.mrf.mxu3 }
0x1497   : > { %v3019_v45 = vadd.f32 %v3018_v7, %v2952_v53 }
0x1499   : > { %v3072_v55 = vadd.f32 %v3071_v13, %v3019_v45  ;;  %v3095_v13 = vsel %vm3087_vm7, %v3056_v58, -1e+30 }
0x149a   : > { %v3104_v6 = vsel %vm3103_vm8, %v3095_v13, -inf }
0x149b   : > { %v3099_v62 = vsel %vm3091_vm5, %v3072_v55, -1e+30 }
0x149c   : > { %v3108_v29 = vsel %vm3103_vm8, %v3099_v62, -inf }
0x149d   : > { %v3109_v61 = vmax.f32 %v3104_v6, %v3108_v29  ;;  %v3241_v29 = vld [vmem:[#allocation9] sm:$0xff] }
0x149e   : > { %v3022_v12 = vpop.f32.mrf.mxu2  ;;  %v3079_v40 = vpop.f32.mrf.mxu3  ;;  %v3285_v6 = vand.u32 4294901760, %v3241_v29 }
0x149f   : > { %v3023_v38 = vadd.f32 %v3022_v12, %v2958_v25 }
0x14a1   : > { %v3076_v9 = vadd.f32 %v3075_v2, %v3023_v38 }
0x14a3   : > { %v3100_v0 = vsel %vm3092_vm2, %v3076_v9, -1e+30 }
0x14a4   : > { %v3110_v27 = vsel %vm3103_vm8, %v3100_v0, -inf }
0x14a5   : > { %v3111_v31 = vmax.f32 %v3105_v59, %v3110_v27  ;;  %v3243_v27 = vld [vmem:[#allocation9 + $0x10] sm:$0xff] }
0x14a6   : > { %v3026_v42 = vpop.f32.mrf.mxu2  ;;  %v3083_v8 = vpop.f32.mrf.mxu3 }
0x14a7   : > { %v3027_v47 = vadd.f32 %v3026_v42, %v2964_v39  ;;  %v3116_v32 = vmax.f32 %v3109_v61, %v3111_v31 }
0x14a9   : > { %v3080_v57 = vadd.f32 %v3079_v40, %v3027_v47 }
0x14ab   : > { %v3101_v19 = vsel %vm3093_vm6, %v3080_v57, -1e+30 }
0x14ac   : > { %v3112_v30 = vsel %vm3103_vm8, %v3101_v19, -inf }
0x14ad   : > { %v3113_v48 = vmax.f32 %v3106_v11, %v3112_v30 }
0x14ae   : > { %v3030_v15 = vpop.f32.mrf.mxu2 }
0x14af   : > { %v3031_v23 = vadd.f32 %v3030_v15, %v2970_v36 }
0x14b1   : > { %v3084_v7 = vadd.f32 %v3083_v8, %v3031_v23 }
0x14b3   : > { %v3102_v2 = vsel %vm3094_vm11, %v3084_v7, -1e+30 }
0x14b4   : > { %v3114_v60 = vsel %vm3103_vm8, %v3102_v2, -inf }
0x14b5   : > { %v3115_v12 = vmax.f32 %v3107_v41, %v3114_v60 }
0x14b7   : > { %v3117_v20 = vmax.f32 %v3113_v48, %v3115_v12  ;;  %v8179_v48 = vsub.f32 %v3241_v29, %v3285_v6 }
0x14b9   : > { %v3118_v63 = vmax.f32 %v3116_v32, %v3117_v20 }
0x14bb   : > { %v3120_v17 = vsub.f32 %v3096_v4, %v3118_v63  ;;  %v3119_v18 = vsub.f32 %v3095_v13, %v3118_v63  ;;  %v3121_v21 = vsub.f32 %v3097_v1, %v3118_v63  ;;  %v3122_v26 = vsub.f32 %v3098_v56, %v3118_v63  ;;  %v3242_v1 = vld [vmem:[#allocation9 + $0x8] sm:$0xff] }
0x14bc   : > { %v3123_v33 = vsub.f32 %v3099_v62, %v3118_v63  ;;  %v3124_v25 = vsub.f32 %v3100_v0, %v3118_v63  ;;  %v3125_v53 = vsub.f32 %v3101_v19, %v3118_v63  ;;  %v3126_v39 = vsub.f32 %v3102_v2, %v3118_v63  ;;  %v3244_v19 = vld [vmem:[#allocation9 + $0x18] sm:$0xff] }
0x14bd   : > { %v3129_v28 = vmul.f32 1.442695, %v3120_v17  ;;  %v3127_v52 = vmul.f32 1.442695, %v3119_v18  ;;  %v3131_v35 = vmul.f32 1.442695, %v3121_v21 }
0x14be   : > { %v3133_v37 = vmul.f32 1.442695, %v3122_v26  ;;  %v3135_v38 = vmul.f32 1.442695, %v3123_v33  ;;  %v3137_v10 = vmul.f32 1.442695, %v3124_v25 }
0x14bf   : > { %7090 = vpow2.f32 %v3129_v28  ;;  %v3139_v34 = vmul.f32 1.442695, %v3125_v53  ;;  %v3141_v43 = vmul.f32 1.442695, %v3126_v39  ;;  %v3279_v23 = vand.u32 4294901760, %v3244_v19  ;;  %v7125_v21 = vld [vmem:[#allocation2 + $0x8] sm:$0xff] }
0x14c0   : > { %7092 = vpow2.f32 %v3127_v52  ;;  %v3281_v13 = vand.u32 4294901760, %v3243_v27  ;;  %v3283_v59 = vand.u32 4294901760, %v3242_v1  ;;  %v3328_v63 = vand.u32 4294901760, %v8179_v48  ;;  %v7126_v33 = vld [vmem:[#allocation2] sm:$0xff] }
0x14c1   : > { %7094 = vpow2.f32 %v3131_v35  ;;  %v8164_v8 = vsub.f32 %v3244_v19, %v3279_v23  ;;  %3280 = vmatpush.msrb.mxu0 %v3279_v23  ;;  %3380 = vmatpush.msrb.mxu3 %v3279_v23 }
0x14c2   : > { %7096 = vpow2.f32 %v3133_v37  ;;  %v8167_v7 = vsub.f32 %v3243_v27, %v3281_v13  ;;  %v8173_v2 = vsub.f32 %v3242_v1, %v3283_v59  ;;  %v3329_v18 = vsub.f32 %v8179_v48, %v3328_v63 }
0x14c3   : > { %7098 = vpow2.f32 %v3135_v38  ;;  %v3310_v56 = vand.u32 4294901760, %v8164_v8  ;;  %3382 = vmatpush.msrb.mxu3 %v3281_v13  ;;  %3282 = vmatpush.msrb.mxu0 %v3281_v13  ;;  %v7127_v38 = vld [vmem:[#allocation2 + $0x10] sm:$0xff] }
0x14c4   : > { %7100 = vpow2.f32 %v3137_v10  ;;  %v3316_v31 = vand.u32 4294901760, %v8167_v7  ;;  %v3322_v60 = vand.u32 4294901760, %v8173_v2  ;;  %v3330_v52 = vand.u32 4294901760, %v3329_v18 }
0x14c5   : > { %v7091_v40 = vpop.eup %7090  ;;  %7102 = vpow2.f32 %v3139_v34  ;;  %v3311_v30 = vsub.f32 %v8164_v8, %v3310_v56  ;;  %3384 = vmatpush.msrb.mxu3 %v3283_v59  ;;  %3284 = vmatpush.msrb.mxu0 %v3283_v59 }
0x14c6   : > { %v7093_v42 = vpop.eup %7092  ;;  %3165 = vperm.xlu0 %7020, %v7091_v40   ;;  %v3144_v51 = vsel %vm3103_vm8, %v7091_v40, 0.0  ;;  %7104 = vpow2.f32 %v3141_v43  ;;  %v3317_v41 = vsub.f32 %v8167_v7, %v3316_v31  ;;  %v3323_v32 = vsub.f32 %v8173_v2, %v3322_v60 }
0x14c7   : > { %3160 = vperm.xlu2 %7019, %v7093_v42   ;;  %v3143_v44 = vsel %vm3103_vm8, %v7093_v42, 0.0  ;;  %v7095_v45 = vpop.eup %7094  ;;  %v3312_v11 = vand.u32 4294901760, %v3311_v30  ;;  %3386 = vmatpush.msrb.mxu3 %v3285_v6 }
0x14c8   : > { %v3145_v47 = vadd.f32 %v3144_v51, %v3143_v44  ;;  %v7097_v46 = vpop.eup %7096  ;;  %v3146_v54 = vsel %vm3103_vm8, %v7095_v45, 0.0  ;;  %3286 = vmatpush.msrb.mxu0 %v3285_v6  ;;  %v3318_v12 = vand.u32 4294901760, %v3317_v41  ;;  %v3324_v17 = vand.u32 4294901760, %v3323_v32  ;;  %v7128_v51 = vld [vmem:[#allocation2 + $0x20] sm:$0xff] }
0x14c9   : > { %v7099_v3 = vpop.eup %7098  ;;  %v3148_v50 = vsel %vm3103_vm8, %v7097_v46, 0.0  ;;  %3313 = vmatpush.msrb.mxu1 %v3312_v11  ;;  %v3260_v11 = vld [vmem:[#allocation9 + $0x98] sm:$0xff] }
0x14ca   : > { %v3147_v49 = vadd.f32 %v3146_v54, %v3145_v47  ;;  %v7101_v9 = vpop.eup %7100  ;;  %v3150_v14 = vsel %vm3103_vm8, %v7099_v3, 0.0  ;;  %3351 = vmatpush.msra.mxu0 %v8164_v8  ;;  %v3258_v8 = vld [vmem:[#allocation9 + $0x88] sm:$0xff] }
0x14cb   : > { %v7103_v55 = vpop.eup %7102  ;;  %v3152_v36 = vsel %vm3103_vm8, %v7101_v9, 0.0  ;;  %3319 = vmatpush.msrb.mxu1 %v3318_v12  ;;  %v8202_v12 = vand.u32 4294901760, %v3260_v11 }
0x14cc   : > { %v3149_v5 = vadd.f32 %v3148_v50, %v3147_v49  ;;  %v7105_v58 = vpop.eup %7104  ;;  %v3154_v24 = vsel %vm3103_vm8, %v7103_v55, 0.0  ;;  %3354 = vmatpush.msra.mxu0 %v8167_v7  ;;  %v8238_v7 = vand.u32 4294901760, %v3258_v8 }
0x14cd   : > { %v3156_v15 = vsel %vm3103_vm8, %v7105_v58, 0.0  ;;  %3325 = vmatpush.msrb.mxu1 %v3324_v17  ;;  %v8208_v18 = vsub.f32 %v3260_v11, %v8202_v12 }
0x14ce   : > { %3185 = vperm.xlu0 %7020, %v7101_v9   ;;  %v3151_v57 = vadd.f32 %v3150_v14, %v3149_v5  ;;  %3357 = vmatpush.msra.mxu0 %v8173_v2  ;;  %v7130_v14 = vld [vmem:[#allocation2 + $0x28] sm:$0xff] }
0x14cf   : > { %3170 = vperm.xlu2 %7019, %v7095_v45   ;;  %3331 = vmatpush.msrb.mxu1 %v3330_v52  ;;  %v7129_v45 = vld [vmem:[#allocation2 + $0x18] sm:$0xff] }
0x14d0   : > { %v3153_v16 = vadd.f32 %v3152_v36, %v3151_v57  ;;  %3360 = vmatpush.msra.mxu0 %v8179_v48 }
0x14d1   : > { %3440 = vmatpush.msra.mxu1 %v3279_v23 }
0x14d2   : > { %v3155_v0 = vadd.f32 %v3154_v24, %v3153_v16  ;;  %v7131_v24 = vld [vmem:[#allocation2 + $0x38] sm:$0xff] }
0x14d3   : > { %3442 = vmatpush.msra.mxu1 %v3281_v13 }
0x14d4   : > { %v3157_v4 = vadd.f32 %v3156_v15, %v3155_v0 }
0x14d5   : > { %3444 = vmatpush.msra.mxu1 %v3283_v59 }
0x14d6   : > { %3223 = vperm.xlu1 %7021, %v3157_v4  }
0x14d7   : > { %3180 = vperm.xlu2 %7019, %v7099_v3   ;;  %3446 = vmatpush.msra.mxu1 %v3285_v6  ;;  %v3261_v6 = vld [vmem:[#allocation9 + $0xa0] sm:$0xff] }
0x14de   : > { %3175 = vperm.xlu1 %7021, %v7097_v46  }
0x14df   : > { %3195 = vperm.xlu2 %7019, %v7105_v58  }
0x14e6   : > { %3190 = vperm.xlu1 %7021, %v7103_v55  }
0x1521   : > { %v3161_v62 = vpop.permute.xlu2 %3160 }
0x1522   : > { %v3198_v25 = vmul.f32 %v7126_v33, %v3161_v62  ;;  %v7132_v62 = vld [vmem:[#allocation2 + $0x30] sm:$0xff] }
0x1524   : > { %v3206_v53 = vsel %vm339_vm4, %v3198_v25, 0.0 }
0x1529   : > { %v3171_v61 = vpop.permute.xlu2 %3170 }
0x152a   : > { %v3200_v39 = vmul.f32 %v7127_v38, %v3171_v61  ;;  %v8200_v61 = vand.u32 4294901760, %v3261_v6 }
0x152c   : > { %v3209_v43 = vsel %vm339_vm4, %v3200_v39, 0.0  ;;  %v8205_v17 = vsub.f32 %v3261_v6, %v8200_v61  ;;  %3463 = vmatpush.msra.mxu2 %v8200_v61 }
0x152e   : > { %3465 = vmatpush.msra.mxu2 %v8202_v12 }
0x1531   : > { %v3181_v37 = vpop.permute.xlu2 %3180 }
0x1532   : > { %v3202_v44 = vmul.f32 %v7128_v51, %v3181_v37 }
0x1534   : > { %v3213_v5 = vsel %vm339_vm4, %v3202_v44, 0.0 }
0x1538   : > { %v3166_v20 = vpop.permute.xlu0 %3165 }
0x1539   : > { %v3199_v26 = vmul.f32 %v7125_v21, %v3166_v20  ;;  %v3196_v57 = vpop.permute.xlu2 %3195 }
0x153a   : > { %v3205_v0 = vmul.f32 %v7131_v24, %v3196_v57 }
0x153b   : > { %v3207_v35 = vsel %vm339_vm4, %v3199_v26, 0.0  ;;  %v3505_v26 = vand.u32 4294901760, %v8205_v17 }
0x153c   : > { %v3208_v10 = vadd.f32 %v3207_v35, %v3206_v53  ;;  %v3219_v29 = vsel %vm339_vm4, %v3205_v0, 0.0 }
0x153d   : > { %v3506_v33 = vsub.f32 %v8205_v17, %v3505_v26 }
0x153e   : > { %v3210_v3 = vadd.f32 %v3209_v43, %v3208_v10 }
0x153f   : > { %v3507_v37 = vand.u32 4294901760, %v3506_v33 }
0x1540   : > { %v3186_v46 = vpop.permute.xlu0 %3185 }
0x1541   : > { %v3203_v55 = vmul.f32 %v7130_v14, %v3186_v46  ;;  %3508 = vmatpush.msra.mxu3 %v3507_v37 }
0x1543   : > { %v3215_v15 = vsel %vm339_vm4, %v3203_v55, 0.0 }
0x1548   : > { %v3224_v28 = vpop.permute.xlu1 %3223 }
0x1549   : > { %7106 = vrcp.f32 %v3224_v28  ;;  %v3237_v4 = vand.u32 2147483648, %v3224_v28  ;;  %vm3231_vm13 = vweird.f32 %v3224_v28  ;;  %v3235_v23 = vand.u32 2147483647, %v3224_v28 }
0x154b   : > { %v3238_v30 = vor.u32 1.1754944e-38, %v3237_v4  ;;  %vm3236_vm15 = vcmp.eq.f32.partialorder %v3235_v23, 8.507059e+37  ;;  %v3252_v4 = vld [vmem:[#allocation9 + $0x58] sm:$0xff] }
0x154f   : > { %v7107_v34 = vpop.eup %7106 }
0x1550   : > { %v3227_v40 = vmul.f32 %v7107_v34, %v3224_v28  ;;  %v3176_v42 = vpop.permute.xlu1 %3175  ;;  %vm3232_vm12 = vweird.f32 %v7107_v34  ;;  %v3511_v28 = vand.u32 4294901760, %v8208_v18 }
0x1551   : > { %v3201_v47 = vmul.f32 %v7129_v45, %v3176_v42  ;;  %vm3233_vm14 = vmor %vm3231_vm13, %vm3232_vm12  ;;  %v3255_v45 = vld [vmem:[#allocation9 + $0x70] sm:$0xff] }
0x1552   : > { %v3228_v54 = vsub.f32 1.0, %v3227_v40  ;;  %v3512_v25 = vsub.f32 %v8208_v18, %v3511_v28 }
0x1553   : > { %v3211_v49 = vsel %vm339_vm4, %v3201_v47, 0.0 }
0x1554   : > { %v3229_v50 = vmul.f32 %v7107_v34, %v3228_v54  ;;  %v3212_v9 = vadd.f32 %v3211_v49, %v3210_v3  ;;  %v3513_v53 = vand.u32 4294901760, %v3512_v25  ;;  %v8272_v49 = vand.u32 4294901760, %v3255_v45  ;;  %v3249_v25 = vld [vmem:[#allocation9 + $0x40] sm:$0xff] }
0x1556   : > { %v3214_v36 = vadd.f32 %v3213_v5, %v3212_v9  ;;  %v3230_v58 = vadd.f32 %v7107_v34, %v3229_v50  ;;  %3514 = vmatpush.msra.mxu3 %v3513_v53  ;;  %v3254_v50 = vld [vmem:[#allocation9 + $0x68] sm:$0xff]  ;;  %v8283_v57 = vsub.f32 %v3255_v45, %v8272_v49  ;;  %v3247_v45 = vld [vmem:[#allocation9 + $0x30] sm:$0xff] }
0x1557   : > { %v8279_v55 = vand.u32 4294901760, %v3254_v50 }
0x1558   : > { %v3191_v16 = vpop.permute.xlu1 %3190  ;;  %v3216_v27 = vadd.f32 %v3215_v15, %v3214_v36  ;;  %v3234_v1 = vsel %vm3233_vm14, %v7107_v34, %v3230_v58  ;;  %v3259_v34 = vld [vmem:[#allocation9 + $0x90] sm:$0xff]  ;;  %v3253_v36 = vld [vmem:[#allocation9 + $0x60] sm:$0xff]  ;;  %v3541_v15 = vand.u32 4294901760, %v8283_v57 }
0x1559   : > { %v3204_v19 = vmul.f32 %v7132_v62, %v3191_v16  ;;  %v3239_v32 = vsel %vm3236_vm15, %v3238_v30, %v3234_v1  ;;  %v8233_v40 = vand.u32 4294901760, %v3259_v34  ;;  %v8291_v24 = vsub.f32 %v3254_v50, %v8279_v55  ;;  %v3251_v1 = vld [vmem:[#allocation9 + $0x50] sm:$0xff] }
0x155a   : > { %v8293_v0 = vand.u32 4294901760, %v3253_v36  ;;  %v8317_v6 = vand.u32 4294901760, %v3251_v1 }
0x155b   : > { %v3217_v13 = vsel %vm339_vm4, %v3204_v19, 0.0  ;;  %3467 = vmatpush.msra.mxu2 %v8233_v40  ;;  %v3547_v19 = vand.u32 4294901760, %v8291_v24 }
0x155c   : > { %v3218_v59 = vadd.f32 %v3217_v13, %v3216_v27  ;;  %v8300_v23 = vsub.f32 %v3253_v36, %v8293_v0  ;;  %v8302_v27 = vand.u32 4294901760, %v3252_v4  ;;  %v3542_v13 = vsub.f32 %v8283_v57, %v3541_v15  ;;  %v3246_v36 = vld [vmem:[#allocation9 + $0x28] sm:$0xff] }
0x155d   : > { %3469 = vmatpush.msra.mxu2 %v8238_v7 }
0x155e   : > { %v3220_v41 = vadd.f32 %v3219_v29, %v3218_v59  ;;  %v3548_v59 = vsub.f32 %v8291_v24, %v3547_v19  ;;  %v3553_v29 = vand.u32 4294901760, %v8300_v23  ;;  %v8315_v30 = vsub.f32 %v3252_v4, %v8302_v27 }
0x155f   : > { %v3543_v11 = vand.u32 4294901760, %v3542_v13 }
0x1560   : > { %v3240_v20 = vmul.f32 %v3239_v32, %v3220_v41  ;;  %v3250_v41 = vld [vmem:[#allocation9 + $0x48] sm:$0xff]  ;;  %v3549_v32 = vand.u32 4294901760, %v3548_v59 }
0x1561   : > { %v8330_v33 = vand.u32 4294901760, %v3250_v41 }
0x1562   : > { %v3265_v21 = vsel %vm339_vm4, %v3240_v20, 0  ;;  %v3554_v20 = vsub.f32 %v8300_v23, %v3553_v29  ;;  %vm6737_vm4 = vcmask 64512  }
0x1563   : > { %v3287_v52 = vand.u32 4294901760, %v3265_v21 }
0x1565   : > { %v3288_v35 = vsub.f32 %v3265_v21, %v3287_v52  ;;  %3333 = vmatmul.f32.vlgmr.msrb.gmra.mxu1 %v3287_v52  ;;  %v3559_v21 = vand.u32 4294901760, %v8315_v30 }
0x1566   : > { %3659 = vmatpush.msrb.mxu1 %v8200_v61 }
0x1567   : > { %v3289_v38 = vand.u32 4294901760, %v3288_v35  ;;  %v3560_v37 = vsub.f32 %v8315_v30, %v3559_v21 }
0x1568   : > { %3661 = vmatpush.msrb.mxu1 %v8202_v12 }
0x1569   : > { %3390 = vmatmul.f32.vlgmr.msrb.gmra.mxu3 %v3289_v38  ;;  %v3290_v39 = vsub.f32 %v3288_v35, %v3289_v38  ;;  %v8337_v38 = vand.u32 4294901760, %v3249_v25 }
0x156a   : > { %3663 = vmatpush.msrb.mxu1 %v8233_v40 }
0x156b   : > { %v3291_v10 = vand.u32 4294901760, %v3290_v39  ;;  %v8342_v39 = vsub.f32 %v3250_v41, %v8330_v33 }
0x156c   : > { %3665 = vmatpush.msrb.mxu1 %v8238_v7 }
0x156d   : > { %3292 = vmatmul.f32.vlgmr.msrb.gmra.mxu0 %v3291_v10  ;;  %3448 = vmatmul.f32.vlgmr.msra.gmra.mxu1 %v3287_v52  ;;  %v3248_v10 = vld [vmem:[#allocation9 + $0x38] sm:$0xff] }
0x156e   : > { %3409 = vmatpush.msrb.mxu0 %v3310_v56  ;;  %v8236_v56 = vsub.f32 %v3259_v34, %v8233_v40  ;;  %v3561_v34 = vand.u32 4294901760, %v3560_v37 }
0x1570   : > { %3413 = vmatpush.msrb.mxu0 %v3316_v31  ;;  %v3257_v31 = vld [vmem:[#allocation9 + $0x80] sm:$0xff]  ;;  %v3517_v2 = vand.u32 4294901760, %v8236_v56 }
0x1571   : > { %v8246_v48 = vand.u32 4294901760, %v3257_v31 }
0x1572   : > { %3417 = vmatpush.msrb.mxu0 %v3322_v60  ;;  %v8244_v60 = vsub.f32 %v3258_v8, %v8238_v7  ;;  %v3518_v42 = vsub.f32 %v8236_v56, %v3517_v2 }
0x1573   : > { %v8256_v51 = vsub.f32 %v3257_v31, %v8246_v48  ;;  %3471 = vmatpush.msra.mxu2 %v8246_v48  ;;  %3667 = vmatpush.msrb.mxu1 %v8246_v48  ;;  %v8349_v31 = vsub.f32 %v3249_v25, %v8337_v38 }
0x1574   : > { %3421 = vmatpush.msrb.mxu0 %v3328_v63  ;;  %v3256_v63 = vld [vmem:[#allocation9 + $0x78] sm:$0xff]  ;;  %v3523_v43 = vand.u32 4294901760, %v8244_v60  ;;  %v3519_v47 = vand.u32 4294901760, %v3518_v42  ;;  %v3571_v42 = vand.u32 4294901760, %v8342_v39 }
0x1575   : > { %3363 = vmatmul.f32.vlgmr.msra.gmra.mxu0 %v3288_v35  ;;  %v8258_v44 = vand.u32 4294901760, %v3256_v63  ;;  %v3529_v54 = vand.u32 4294901760, %v8256_v51  ;;  %v3555_v35 = vand.u32 4294901760, %v3554_v20 }
0x1576   : > { %3606 = vmatpush.msra.mxu0 %v8205_v17  ;;  %v3524_v46 = vsub.f32 %v8244_v60, %v3523_v43  ;;  %3520 = vmatpush.msra.mxu3 %v3519_v47 }
0x1577   : > { %v8268_v3 = vsub.f32 %v3256_v63, %v8258_v44  ;;  %3473 = vmatpush.msra.mxu2 %v8258_v44  ;;  %3669 = vmatpush.msrb.mxu1 %v8258_v44  ;;  %v3530_v5 = vsub.f32 %v8256_v51, %v3529_v54  ;;  %v8351_v63 = vand.u32 4294901760, %v3248_v10 }
0x1578   : > { %3609 = vmatpush.msra.mxu0 %v8208_v18  ;;  %v3525_v9 = vand.u32 4294901760, %v3524_v46  ;;  %v3577_v46 = vand.u32 4294901760, %v8349_v31 }
0x1579   : > { %v3535_v14 = vand.u32 4294901760, %v8268_v3  ;;  %3475 = vmatpush.msra.mxu2 %v8272_v49  ;;  %3671 = vmatpush.msrb.mxu1 %v8272_v49  ;;  %v3531_v58 = vand.u32 4294901760, %v3530_v5  ;;  %v8359_v50 = vsub.f32 %v3248_v10, %v8351_v63  ;;  %v3572_v5 = vsub.f32 %v8342_v39, %v3571_v42 }
0x157a   : > { %3612 = vmatpush.msra.mxu0 %v8236_v56  ;;  %3526 = vmatpush.msra.mxu3 %v3525_v9  ;;  %v8361_v9 = vand.u32 4294901760, %v3247_v45 }
0x157b   : > { %v3536_v16 = vsub.f32 %v8268_v3, %v3535_v14  ;;  %3477 = vmatpush.msra.mxu2 %v8279_v55  ;;  %3673 = vmatpush.msrb.mxu1 %v8279_v55  ;;  %v3573_v13 = vand.u32 4294901760, %v3572_v5 }
0x157c   : > { %3615 = vmatpush.msra.mxu0 %v8244_v60  ;;  %3532 = vmatpush.msra.mxu3 %v3531_v58  ;;  %v3578_v58 = vsub.f32 %v8349_v31, %v3577_v46  ;;  %v3588_v4 = vsub.f32 %v3247_v45, %v8361_v9 }
0x157d   : > { %3423 = vmatmul.f32.vlgmr.msrb.gmra.mxu0 %v3287_v52  ;;  %v3537_v62 = vand.u32 4294901760, %v3536_v16  ;;  %3479 = vmatpush.msra.mxu2 %v8293_v0  ;;  %v8327_v52 = vsub.f32 %v3251_v1, %v8317_v6  ;;  %v3583_v16 = vand.u32 4294901760, %v8359_v50 }
0x157e   : > { %3618 = vmatpush.msra.mxu0 %v8256_v51  ;;  %3675 = vmatpush.msrb.mxu1 %v8293_v0  ;;  %v3579_v1 = vand.u32 4294901760, %v3578_v58 }
0x157f   : > { %3538 = vmatpush.msra.mxu3 %v3537_v62  ;;  %3481 = vmatpush.msra.mxu2 %v8302_v27  ;;  %v3565_v53 = vand.u32 4294901760, %v8327_v52  ;;  %v8374_v62 = vand.u32 4294901760, %v3246_v36  ;;  %v3584_v59 = vsub.f32 %v8359_v50, %v3583_v16 }
0x1580   : > { %3621 = vmatpush.msra.mxu0 %v8268_v3  ;;  %3677 = vmatpush.msrb.mxu1 %v8302_v27 }
0x1581   : > { %3544 = vmatpush.msra.mxu3 %v3543_v11  ;;  %3483 = vmatpush.msra.mxu2 %v8317_v6  ;;  %v3566_v8 = vsub.f32 %v8327_v52, %v3565_v53  ;;  %v3589_v11 = vand.u32 4294901760, %v3588_v4  ;;  %v3594_v41 = vsub.f32 %v3246_v36, %v8374_v62 }
0x1582   : > { %3624 = vmatpush.msra.mxu0 %v8283_v57  ;;  %3679 = vmatpush.msrb.mxu1 %v8317_v6 }
0x1583   : > { %3550 = vmatpush.msra.mxu3 %v3549_v32  ;;  %3485 = vmatpush.msra.mxu2 %v8330_v33  ;;  %v3567_v47 = vand.u32 4294901760, %v3566_v8  ;;  %v3585_v32 = vand.u32 4294901760, %v3584_v59  ;;  %v3590_v20 = vsub.f32 %v3588_v4, %v3589_v11  ;;  %v3595_v25 = vand.u32 4294901760, %v3594_v41 }
0x1584   : > { %3627 = vmatpush.msra.mxu0 %v8291_v24  ;;  %3681 = vmatpush.msrb.mxu1 %v8330_v33 }
0x1585   : > { %3556 = vmatpush.msra.mxu3 %v3555_v35  ;;  %3487 = vmatpush.msra.mxu2 %v8337_v38  ;;  %v3591_v35 = vand.u32 4294901760, %v3590_v20  ;;  %v3596_v37 = vsub.f32 %v3594_v41, %v3595_v25 }
0x1586   : > { %3630 = vmatpush.msra.mxu0 %v8300_v23  ;;  %3683 = vmatpush.msrb.mxu1 %v8337_v38  ;;  %v3847_v23 = vld [vmem:[#allocation11 + $0x160] sm:$0xff] }
0x1587   : > { %3562 = vmatpush.msra.mxu3 %v3561_v34  ;;  %3489 = vmatpush.msra.mxu2 %v8351_v63  ;;  %v3597_v10 = vand.u32 4294901760, %v3596_v37 }
0x1588   : > { %3633 = vmatpush.msra.mxu0 %v8315_v30  ;;  %3685 = vmatpush.msrb.mxu1 %v8351_v63  ;;  %v8435_v30 = vand.u32 4294901760, %v3847_v23 }
0x1589   : > { %3568 = vmatpush.msra.mxu3 %v3567_v47  ;;  %3491 = vmatpush.msra.mxu2 %v8361_v9 }
0x158a   : > { %3636 = vmatpush.msra.mxu0 %v8327_v52  ;;  %3687 = vmatpush.msrb.mxu1 %v8361_v9  ;;  %v8453_v34 = vsub.f32 %v3847_v23, %v8435_v30 }
0x158b   : > { %3574 = vmatpush.msra.mxu3 %v3573_v13  ;;  %3493 = vmatpush.msra.mxu2 %v8374_v62 }
0x158c   : > { %3639 = vmatpush.msra.mxu0 %v8342_v39  ;;  %3689 = vmatpush.msrb.mxu1 %v8374_v62 }
0x158d   : > { %3700 = vmatpush.msrb.mxu2 %v3505_v26  ;;  %3580 = vmatpush.msra.mxu3 %v3579_v1 }
0x158e   : > { %3642 = vmatpush.msra.mxu0 %v8349_v31 }
0x158f   : > { %3704 = vmatpush.msrb.mxu2 %v3511_v28  ;;  %3586 = vmatpush.msra.mxu3 %v3585_v32  ;;  %v3823_v32 = vld [vmem:[#allocation11 + $0xa0] sm:$0xff] }
0x1590   : > { %3645 = vmatpush.msra.mxu0 %v8359_v50  ;;  %v3945_v50 = vand.u32 4294901760, %v8453_v34 }
0x1591   : > { %3708 = vmatpush.msrb.mxu2 %v3517_v2  ;;  %3592 = vmatpush.msra.mxu3 %v3591_v35 }
0x1592   : > { %3648 = vmatpush.msra.mxu0 %v3588_v4  ;;  %v3831_v4 = vld [vmem:[#allocation11 + $0xe0] sm:$0xff]  ;;  %v3946_v35 = vsub.f32 %v8453_v34, %v3945_v50 }
0x1593   : > { %3712 = vmatpush.msrb.mxu2 %v3523_v43  ;;  %3598 = vmatpush.msra.mxu3 %v3597_v10 }
0x1594   : > { %3651 = vmatpush.msra.mxu0 %v3594_v41 }
0x1595   : > { %3767 = vmatpush.msrb.mxu3 %v8200_v61  ;;  %3716 = vmatpush.msrb.mxu2 %v3529_v54  ;;  %v7023_v61 = vld [vmem:[#allocation9 + $0x20] ss:$0 sm:$0xff] }
0x1597   : > { %3769 = vmatpush.msrb.mxu3 %v8202_v12  ;;  %3720 = vmatpush.msrb.mxu2 %v3535_v14  ;;  %v3859_v14 = vld [vmem:[#allocation11 + $0x1c0] sm:$0xff] }
0x1599   : > { %3771 = vmatpush.msrb.mxu3 %v8233_v40  ;;  %3724 = vmatpush.msrb.mxu2 %v3541_v15 }
0x159b   : > { %3773 = vmatpush.msrb.mxu3 %v8238_v7  ;;  %3728 = vmatpush.msrb.mxu2 %v3547_v19  ;;  %v3851_v19 = vld [vmem:[#allocation11 + $0x180] sm:$0xff] }
0x159d   : > { %3775 = vmatpush.msrb.mxu3 %v8246_v48  ;;  %3732 = vmatpush.msrb.mxu2 %v3553_v29  ;;  %v8433_v29 = vand.u32 4294901760, %v3851_v19 }
0x159f   : > { %3777 = vmatpush.msrb.mxu3 %v8258_v44  ;;  %3736 = vmatpush.msrb.mxu2 %v3559_v21  ;;  %v3839_v21 = vld [vmem:[#allocation11 + $0x120] sm:$0xff]  ;;  %v8450_v39 = vsub.f32 %v3851_v19, %v8433_v29 }
0x15a0   : > { %v8458_v31 = vand.u32 4294901760, %v3839_v21 }
0x15a1   : > { %3779 = vmatpush.msrb.mxu3 %v8272_v49  ;;  %3740 = vmatpush.msrb.mxu2 %v3565_v53  ;;  %v3863_v49 = vld [vmem:[#allocation11 + $0x1e0] sm:$0xff] }
0x15a2   : > { %v8427_v24 = vand.u32 4294901760, %v3863_v49  ;;  %v8479_v58 = vsub.f32 %v3839_v21, %v8458_v31 }
0x15a3   : > { %3781 = vmatpush.msrb.mxu3 %v8279_v55  ;;  %3744 = vmatpush.msrb.mxu2 %v3571_v42  ;;  %v3855_v55 = vld [vmem:[#allocation11 + $0x1a0] sm:$0xff] }
0x15a4   : > { %v8431_v15 = vand.u32 4294901760, %v3855_v55  ;;  %v8440_v52 = vsub.f32 %v3863_v49, %v8427_v24  ;;  %3879 = vmatpush.msrb.mxu0 %v8427_v24  ;;  %v3957_v10 = vand.u32 4294901760, %v8479_v58 }
0x15a5   : > { %3783 = vmatpush.msrb.mxu3 %v8293_v0  ;;  %3748 = vmatpush.msrb.mxu2 %v3577_v46  ;;  %v8429_v0 = vand.u32 4294901760, %v3859_v14  ;;  %v3939_v46 = vand.u32 4294901760, %v8450_v39 }
0x15a6   : > { %v8446_v53 = vsub.f32 %v3855_v55, %v8431_v15 }
0x15a7   : > { %3785 = vmatpush.msrb.mxu3 %v8302_v27  ;;  %3752 = vmatpush.msrb.mxu2 %v3583_v16  ;;  %v3843_v27 = vld [vmem:[#allocation11 + $0x140] sm:$0xff] }
0x15a8   : > { %v3933_v45 = vand.u32 4294901760, %v8446_v53  ;;  %3881 = vmatpush.msrb.mxu0 %v8429_v0 }
0x15a9   : > { %3787 = vmatpush.msrb.mxu3 %v8317_v6  ;;  %3756 = vmatpush.msrb.mxu2 %v3589_v11  ;;  %v8437_v6 = vand.u32 4294901760, %v3843_v27  ;;  %v3940_v11 = vsub.f32 %v8450_v39, %v3939_v46 }
0x15aa   : > { %v3934_v36 = vsub.f32 %v8446_v53, %v3933_v45  ;;  %3883 = vmatpush.msrb.mxu0 %v8431_v15 }
0x15ab   : > { %3789 = vmatpush.msrb.mxu3 %v8330_v33  ;;  %3760 = vmatpush.msrb.mxu2 %v3595_v25  ;;  %v8443_v33 = vsub.f32 %v3859_v14, %v8429_v0  ;;  %v8456_v8 = vsub.f32 %v3843_v27, %v8437_v6  ;;  %v3807_v27 = vld [vmem:[#allocation11 + $0x20] sm:$0xff] }
0x15ac   : > { %3885 = vmatpush.msrb.mxu0 %v8433_v29  ;;  %v3935_v37 = vand.u32 4294901760, %v3934_v36 }
0x15ad   : > { %3791 = vmatpush.msrb.mxu3 %v8337_v38  ;;  %v3835_v38 = vld [vmem:[#allocation11 + $0x100] sm:$0xff]  ;;  %v3927_v42 = vand.u32 4294901760, %v8443_v33  ;;  %v3951_v16 = vand.u32 4294901760, %v8456_v8 }
0x15ae   : > { %v8464_v47 = vand.u32 4294901760, %v3835_v38  ;;  %3887 = vmatpush.msrb.mxu0 %v8435_v30 }
0x15af   : > { %3793 = vmatpush.msrb.mxu3 %v8351_v63  ;;  %v3921_v63 = vand.u32 4294901760, %v8440_v52  ;;  %v3928_v5 = vsub.f32 %v8443_v33, %v3927_v42 }
0x15b0   : > { %v8487_v41 = vsub.f32 %v3835_v38, %v8464_v47  ;;  %3889 = vmatpush.msrb.mxu0 %v8437_v6 }
0x15b1   : > { %3795 = vmatpush.msrb.mxu3 %v8361_v9  ;;  %v3922_v9 = vsub.f32 %v8440_v52, %v3921_v63  ;;  %v3929_v59 = vand.u32 4294901760, %v3928_v5 }
0x15b2   : > { %3891 = vmatpush.msrb.mxu0 %v8458_v31 }
0x15b3   : > { %3797 = vmatpush.msrb.mxu3 %v8374_v62  ;;  %v3827_v62 = vld [vmem:[#allocation11 + $0xc0] sm:$0xff]  ;;  %v3923_v1 = vand.u32 4294901760, %v3922_v9 }
0x15b4   : > { %3893 = vmatpush.msrb.mxu0 %v8464_v47 }
0x15b5   : > { %3924 = vmatpush.msra.mxu1 %v3923_v1 }
0x15b7   : > { %3930 = vmatpush.msra.mxu1 %v3929_v59  ;;  %v8546_v59 = vand.u32 4294901760, %v3807_v27 }
0x15b9   : > { %3936 = vmatpush.msra.mxu1 %v3935_v37 }
0x15e2   : > { %v3334_v18 = vpop.f32.mrf.mxu1 }
0x15ea   : > { %v3293_v17 = vpop.f32.mrf.mxu0  ;;  %v3449_v48 = vpop.f32.mrf.mxu1 }
0x15eb   : > { %v3294_v12 = vadd.f32 %v7023_v61, %v3293_v17  ;;  %v8494_v17 = vand.u32 4294901760, %v3831_v4  ;;  %v8496_v61 = vand.u32 4294901760, %v3827_v62 }
0x15ec   : > { %v3391_v56 = vpop.f32.mrf.mxu3 }
0x15ed   : > { %v3335_v28 = vadd.f32 %v3334_v18, %v3294_v12  ;;  %v3819_v12 = vld [vmem:[#allocation11 + $0x80] sm:$0xff]  ;;  %3895 = vmatpush.msrb.mxu0 %v8494_v17 }
0x15ef   : > { %3897 = vmatpush.msrb.mxu0 %v8496_v61 }
0x15f2   : > { %v3364_v26 = vpop.f32.mrf.mxu0 }
0x15f3   : > { %v3365_v40 = vadd.f32 %v3364_v26, %v3335_v28  ;;  %v3952_v26 = vsub.f32 %v8456_v8, %v3951_v16  ;;  %v8501_v28 = vand.u32 4294901760, %v3823_v32 }
0x15f5   : > { %v3392_v7 = vadd.f32 %v3391_v56, %v3365_v40  ;;  %v3941_v40 = vand.u32 4294901760, %v3940_v11  ;;  %v3963_v56 = vand.u32 4294901760, %v8487_v41  ;;  %3899 = vmatpush.msrb.mxu0 %v8501_v28 }
0x15f7   : > { %3942 = vmatpush.msra.mxu1 %v3941_v40  ;;  %v3964_v19 = vsub.f32 %v8487_v41, %v3963_v56  ;;  %v8566_v40 = vsub.f32 %v3807_v27, %v8546_v59 }
0x15f9   : > { %v3965_v11 = vand.u32 4294901760, %v3964_v19  ;;  %v4005_v19 = vand.u32 4294901760, %v8566_v40 }
0x15fa   : > { %v3424_v2 = vpop.f32.mrf.mxu0 }
0x15fb   : > { %v3425_v60 = vadd.f32 %v3424_v2, %v3392_v7  ;;  %v8505_v7 = vsub.f32 %v3831_v4, %v8494_v17  ;;  %v8508_v2 = vand.u32 4294901760, %v3819_v12  ;;  %v3803_v4 = vld [vmem:[#allocation11] sm:$0xff] }
0x15fc   : > { %v8557_v37 = vand.u32 4294901760, %v3803_v4 }
0x15fd   : > { %v3450_v43 = vadd.f32 %v3449_v48, %v3425_v60  ;;  %v3815_v60 = vld [vmem:[#allocation11 + $0x60] sm:$0xff]  ;;  %v3969_v14 = vand.u32 4294901760, %v8505_v7  ;;  %v8532_v23 = vsub.f32 %v3819_v12, %v8508_v2  ;;  %3901 = vmatpush.msrb.mxu0 %v8508_v2 }
0x15fe   : > { %v8525_v55 = vand.u32 4294901760, %v3815_v60 }
0x15ff   : > { %v3454_v51 = vmul.f32 0.044715, %v3450_v43  ;;  %v3453_v54 = vmul.f32 0.7978846, %v3450_v43  ;;  %v3452_v20 = vmul.f32 0.5, %v3450_v43 }
0x1600   : > { %v8544_v1 = vsub.f32 %v3815_v60, %v8525_v55  ;;  %3903 = vmatpush.msrb.mxu0 %v8525_v55 }
0x1601   : > { %v3455_v44 = vmul.f32 %v3454_v51, %v3450_v43  ;;  %v8513_v43 = vsub.f32 %v3827_v62, %v8496_v61  ;;  %v3947_v51 = vand.u32 4294901760, %v3946_v35 }
0x1603   : > { %v3456_v3 = vadd.f32 1.0, %v3455_v44  ;;  %v3958_v44 = vsub.f32 %v8479_v58, %v3957_v10  ;;  %v3975_v38 = vand.u32 4294901760, %v8513_v43  ;;  %3948 = vmatpush.msra.mxu1 %v3947_v51 }
0x1605   : > { %v3457_v57 = vmul.f32 %v3456_v3, %v3453_v54  ;;  %v8520_v54 = vsub.f32 %v3823_v32, %v8501_v28  ;;  %v3811_v3 = vld [vmem:[#allocation11 + $0x40] sm:$0xff]  ;;  %v3959_v5 = vand.u32 4294901760, %v3958_v44  ;;  %v3987_v32 = vand.u32 4294901760, %v8532_v23 }
0x1606   : > { %v8535_v9 = vand.u32 4294901760, %v3811_v3 }
0x1607   : > { %7108 = vtanh.f32 %v3457_v57  ;;  %v3953_v57 = vand.u32 4294901760, %v3952_v26  ;;  %v3981_v36 = vand.u32 4294901760, %v8520_v54  ;;  %v3993_v26 = vand.u32 4294901760, %v8544_v1 }
0x1608   : > { %v8555_v35 = vsub.f32 %v3811_v3, %v8535_v9  ;;  %v3988_v51 = vsub.f32 %v8532_v23, %v3987_v32  ;;  %v8576_v3 = vsub.f32 %v3803_v4, %v8557_v37  ;;  %3905 = vmatpush.msrb.mxu0 %v8535_v9 }
0x1609   : > { %3954 = vmatpush.msra.mxu1 %v3953_v57  ;;  %v3994_v57 = vsub.f32 %v8544_v1, %v3993_v26 }
0x160a   : > { %v3999_v44 = vand.u32 4294901760, %v8555_v35  ;;  %v3989_v27 = vand.u32 4294901760, %v3988_v51  ;;  %3907 = vmatpush.msrb.mxu0 %v8546_v59 }
0x160b   : > { %3960 = vmatpush.msra.mxu1 %v3959_v5  ;;  %v4011_v5 = vand.u32 4294901760, %v8576_v3  ;;  %v3995_v4 = vand.u32 4294901760, %v3994_v57 }
0x160c   : > { %3909 = vmatpush.msrb.mxu0 %v8557_v37 }
0x160d   : > { %v7109_v13 = vpop.eup %7108  ;;  %3966 = vmatpush.msra.mxu1 %v3965_v11  ;;  %v4012_v11 = vsub.f32 %v8576_v3, %v4011_v5 }
0x160e   : > { %v3459_v25 = vadd.f32 1.0, %v7109_v13  ;;  %v3970_v13 = vsub.f32 %v8505_v7, %v3969_v14 }
0x1610   : > { %v3460_v18 = vmul.f32 %v3459_v25, %v3452_v20  ;;  %v3976_v25 = vsub.f32 %v8513_v43, %v3975_v38  ;;  %v3971_v12 = vand.u32 4294901760, %v3970_v13 }
0x1612   : > { %v8510_v48 = vand.u32 4294901760, %v3460_v18  ;;  %v3977_v60 = vand.u32 4294901760, %v3976_v25  ;;  %3972 = vmatpush.msra.mxu1 %v3971_v12 }
0x1614   : > { %3600 = vmatmul.f32.vlgmr.msra.gmra.mxu3 %v8510_v48  ;;  %v3495_v49 = vsub.f32 %v3460_v18, %v8510_v48  ;;  %v3982_v18 = vsub.f32 %v8520_v54, %v3981_v36  ;;  %3978 = vmatpush.msra.mxu1 %v3977_v60 }
0x1615   : > { %4075 = vmatpush.msra.mxu3 %v8427_v24 }
0x1616   : > { %3654 = vmatmul.f32.vlgmr.msra.gmra.mxu0 %v3495_v49  ;;  %v3496_v21 = vand.u32 4294901760, %v3495_v49 }
0x1617   : > { %4077 = vmatpush.msra.mxu3 %v8429_v0  ;;  %4116 = vmatpush.msra.mxu0 %v3921_v63 }
0x1618   : > { %3693 = vmatmul.f32.vlgmr.msrb.gmra.mxu1 %v3496_v21  ;;  %v3497_v62 = vsub.f32 %v3495_v49, %v3496_v21  ;;  %v3983_v49 = vand.u32 4294901760, %v3982_v18  ;;  %v4000_v21 = vsub.f32 %v8555_v35, %v3999_v44  ;;  %v3828_v18 = vld [vmem:[#allocation11 + $0xc8] sm:$0xff] }
0x1619   : > { %4079 = vmatpush.msra.mxu3 %v8431_v15  ;;  %4120 = vmatpush.msra.mxu0 %v3927_v42  ;;  %v3848_v42 = vld [vmem:[#allocation11 + $0x168] sm:$0xff]  ;;  %v8752_v60 = vand.u32 4294901760, %v3828_v18 }
0x161a   : > { %v3498_v20 = vand.u32 4294901760, %v3497_v62  ;;  %3984 = vmatpush.msra.mxu1 %v3983_v49  ;;  %v4006_v62 = vsub.f32 %v8566_v40, %v4005_v19  ;;  %v4001_v13 = vand.u32 4294901760, %v4000_v21 }
0x161b   : > { %4081 = vmatpush.msra.mxu3 %v8433_v29  ;;  %4124 = vmatpush.msra.mxu0 %v3933_v45 }
0x161c   : > { %3499 = vmatmul.f32.vlgmr.msra.gmra.mxu2 %v3498_v20  ;;  %3799 = vmatmul.f32.vlgmr.msrb.gmra.mxu3 %v8510_v48  ;;  %v4013_v20 = vand.u32 4294901760, %v4012_v11 }
0x161d   : > { %4022 = vmatpush.msra.mxu2 %v8440_v52  ;;  %4083 = vmatpush.msra.mxu3 %v8435_v30 }
0x161e   : > { %3990 = vmatpush.msra.mxu1 %v3989_v27  ;;  %4128 = vmatpush.msra.mxu0 %v3939_v46  ;;  %v8763_v27 = vsub.f32 %v3828_v18, %v8752_v60 }
0x161f   : > { %4025 = vmatpush.msra.mxu2 %v8443_v33  ;;  %4085 = vmatpush.msra.mxu3 %v8437_v6 }
0x1620   : > { %3996 = vmatpush.msra.mxu1 %v3995_v4  ;;  %4132 = vmatpush.msra.mxu0 %v3945_v50  ;;  %v8703_v50 = vand.u32 4294901760, %v3848_v42 }
0x1621   : > { %4028 = vmatpush.msra.mxu2 %v8446_v53  ;;  %4087 = vmatpush.msra.mxu3 %v8458_v31 }
0x1622   : > { %4002 = vmatpush.msra.mxu1 %v4001_v13  ;;  %4136 = vmatpush.msra.mxu0 %v3951_v16  ;;  %v3844_v16 = vld [vmem:[#allocation11 + $0x148] sm:$0xff] }
0x1623   : > { %4031 = vmatpush.msra.mxu2 %v8450_v39  ;;  %4089 = vmatpush.msra.mxu3 %v8464_v47  ;;  %v3852_v39 = vld [vmem:[#allocation11 + $0x188] sm:$0xff] }
0x1624   : > { %3762 = vmatmul.f32.vlgmr.msrb.gmra.mxu2 %v8510_v48  ;;  %v4007_v48 = vand.u32 4294901760, %v4006_v62  ;;  %4140 = vmatpush.msra.mxu0 %v3957_v10  ;;  %v4316_v62 = vand.u32 4294901760, %v8763_v27 }
0x1625   : > { %4034 = vmatpush.msra.mxu2 %v8453_v34  ;;  %4091 = vmatpush.msra.mxu3 %v8494_v17 }
0x1626   : > { %4008 = vmatpush.msra.mxu1 %v4007_v48  ;;  %4144 = vmatpush.msra.mxu0 %v3963_v56 }
0x1627   : > { %4037 = vmatpush.msra.mxu2 %v8456_v8  ;;  %4093 = vmatpush.msra.mxu3 %v8496_v61 }
0x1628   : > { %4014 = vmatpush.msra.mxu1 %v4013_v20  ;;  %4148 = vmatpush.msra.mxu0 %v3969_v14  ;;  %v3816_v20 = vld [vmem:[#allocation11 + $0x68] sm:$0xff] }
0x1629   : > { %4040 = vmatpush.msra.mxu2 %v8479_v58  ;;  %4095 = vmatpush.msra.mxu3 %v8501_v28 }
0x162a   : > { %4183 = vmatpush.msrb.mxu1 %v8427_v24  ;;  %v3864_v24 = vld [vmem:[#allocation11 + $0x1e8] sm:$0xff]  ;;  %4152 = vmatpush.msra.mxu0 %v3975_v38 }
0x162b   : > { %4043 = vmatpush.msra.mxu2 %v8487_v41  ;;  %4097 = vmatpush.msra.mxu3 %v8508_v2  ;;  %v3840_v41 = vld [vmem:[#allocation11 + $0x128] sm:$0xff] }
0x162c   : > { %4185 = vmatpush.msrb.mxu1 %v8429_v0  ;;  %v8641_v0 = vand.u32 4294901760, %v3864_v24  ;;  %4156 = vmatpush.msra.mxu0 %v3981_v36 }
0x162d   : > { %4046 = vmatpush.msra.mxu2 %v8505_v7  ;;  %4099 = vmatpush.msra.mxu3 %v8525_v55  ;;  %v8718_v7 = vand.u32 4294901760, %v3840_v41 }
0x162e   : > { %4187 = vmatpush.msrb.mxu1 %v8431_v15  ;;  %4160 = vmatpush.msra.mxu0 %v3987_v32  ;;  %v8677_v15 = vsub.f32 %v3864_v24, %v8641_v0 }
0x162f   : > { %4049 = vmatpush.msra.mxu2 %v8513_v43  ;;  %4101 = vmatpush.msra.mxu3 %v8535_v9  ;;  %v8736_v36 = vsub.f32 %v3840_v41, %v8718_v7 }
0x1630   : > { %4189 = vmatpush.msrb.mxu1 %v8433_v29  ;;  %4164 = vmatpush.msra.mxu0 %v3993_v26  ;;  %v3860_v29 = vld [vmem:[#allocation11 + $0x1c8] sm:$0xff]  ;;  %v4262_v52 = vand.u32 4294901760, %v8677_v15 }
0x1631   : > { %4052 = vmatpush.msra.mxu2 %v8520_v54  ;;  %4103 = vmatpush.msra.mxu3 %v8546_v59 }
0x1632   : > { %4191 = vmatpush.msrb.mxu1 %v8435_v30  ;;  %4168 = vmatpush.msra.mxu0 %v3999_v44  ;;  %v8679_v30 = vand.u32 4294901760, %v3860_v29  ;;  %v4263_v34 = vsub.f32 %v8677_v15, %v4262_v52 }
0x1633   : > { %4055 = vmatpush.msra.mxu2 %v8532_v23  ;;  %4105 = vmatpush.msra.mxu3 %v8557_v37 }
0x1634   : > { %4193 = vmatpush.msrb.mxu1 %v8437_v6  ;;  %4172 = vmatpush.msra.mxu0 %v4005_v19  ;;  %v3856_v6 = vld [vmem:[#allocation11 + $0x1a8] sm:$0xff]  ;;  %v8686_v53 = vsub.f32 %v3860_v29, %v8679_v30  ;;  %v4264_v45 = vand.u32 4294901760, %v4263_v34  ;;  %v4317_v29 = vsub.f32 %v8763_v27, %v4316_v62 }
0x1635   : > { %4058 = vmatpush.msra.mxu2 %v8544_v1  ;;  %v8683_v33 = vand.u32 4294901760, %v3856_v6 }
0x1636   : > { %4195 = vmatpush.msrb.mxu1 %v8458_v31  ;;  %4176 = vmatpush.msra.mxu0 %v4011_v5  ;;  %v4268_v8 = vand.u32 4294901760, %v8686_v53  ;;  %v8693_v31 = vand.u32 4294901760, %v3852_v39  ;;  %v3820_v5 = vld [vmem:[#allocation11 + $0x88] sm:$0xff] }
0x1637   : > { %4061 = vmatpush.msra.mxu2 %v8555_v35  ;;  %v8696_v63 = vsub.f32 %v3856_v6, %v8683_v33  ;;  %4265 = vmatpush.msrb.mxu3 %v4264_v45  ;;  %v4298_v35 = vand.u32 4294901760, %v8736_v36  ;;  %v8773_v13 = vand.u32 4294901760, %v3820_v5  ;;  %v4318_v45 = vand.u32 4294901760, %v4317_v29 }
0x1638   : > { %4197 = vmatpush.msrb.mxu1 %v8464_v47  ;;  %v4269_v47 = vsub.f32 %v8686_v53, %v4268_v8  ;;  %v8706_v58 = vsub.f32 %v3852_v39, %v8693_v31  ;;  %v8783_v39 = vand.u32 4294901760, %v3816_v20 }
0x1639   : > { %4064 = vmatpush.msra.mxu2 %v8566_v40  ;;  %v4274_v46 = vand.u32 4294901760, %v8696_v63  ;;  %v4299_v40 = vsub.f32 %v8736_v36, %v4298_v35  ;;  %v8786_v34 = vsub.f32 %v3820_v5, %v8773_v13 }
0x163a   : > { %4199 = vmatpush.msrb.mxu1 %v8494_v17  ;;  %v4270_v10 = vand.u32 4294901760, %v4269_v47  ;;  %v4280_v56 = vand.u32 4294901760, %v8706_v58  ;;  %v8795_v41 = vsub.f32 %v3816_v20, %v8783_v39 }
0x163b   : > { %4067 = vmatpush.msra.mxu2 %v8576_v3  ;;  %v4275_v17 = vsub.f32 %v8696_v63, %v4274_v46  ;;  %v3824_v3 = vld [vmem:[#allocation11 + $0xa8] sm:$0xff]  ;;  %v4300_v49 = vand.u32 4294901760, %v4299_v40 }
0x163c   : > { %4201 = vmatpush.msrb.mxu1 %v8496_v61  ;;  %v8712_v61 = vand.u32 4294901760, %v3844_v16  ;;  %4271 = vmatpush.msrb.mxu3 %v4270_v10  ;;  %v4281_v14 = vsub.f32 %v8706_v58, %v4280_v56  ;;  %v8760_v19 = vand.u32 4294901760, %v3824_v3  ;;  %v4328_v10 = vand.u32 4294901760, %v8786_v34 }
0x163d   : > { %4220 = vmatpush.msrb.mxu2 %v8641_v0 }
0x163e   : > { %4203 = vmatpush.msrb.mxu1 %v8501_v28  ;;  %v8715_v28 = vsub.f32 %v3848_v42, %v8703_v50  ;;  %v8723_v54 = vsub.f32 %v3844_v16, %v8712_v61  ;;  %v4282_v1 = vand.u32 4294901760, %v4281_v14  ;;  %v8776_v11 = vsub.f32 %v3824_v3, %v8760_v19  ;;  %v3812_v42 = vld [vmem:[#allocation11 + $0x48] sm:$0xff] }
0x163f   : > { %4222 = vmatpush.msrb.mxu2 %v8679_v30  ;;  %v8792_v16 = vand.u32 4294901760, %v3812_v42  ;;  %v4334_v14 = vand.u32 4294901760, %v8795_v41 }
0x1640   : > { %4205 = vmatpush.msrb.mxu1 %v8508_v2  ;;  %v4276_v2 = vand.u32 4294901760, %v4275_v17  ;;  %v4286_v43 = vand.u32 4294901760, %v8715_v28  ;;  %v4292_v38 = vand.u32 4294901760, %v8723_v54  ;;  %v4322_v6 = vand.u32 4294901760, %v8776_v11  ;;  %v3808_v17 = vld [vmem:[#allocation11 + $0x28] sm:$0xff] }
0x1641   : > { %4224 = vmatpush.msrb.mxu2 %v8683_v33 }
0x1642   : > { %4207 = vmatpush.msrb.mxu1 %v8525_v55  ;;  %v3836_v55 = vld [vmem:[#allocation11 + $0x108] sm:$0xff]  ;;  %4277 = vmatpush.msrb.mxu3 %v4276_v2  ;;  %v4287_v23 = vsub.f32 %v8715_v28, %v4286_v43  ;;  %v4293_v25 = vsub.f32 %v8723_v54, %v4292_v38  ;;  %v4323_v47 = vsub.f32 %v8776_v11, %v4322_v6 }
0x1643   : > { %4226 = vmatpush.msrb.mxu2 %v8693_v31 }
0x1644   : > { %4209 = vmatpush.msrb.mxu1 %v8535_v9  ;;  %v8733_v9 = vand.u32 4294901760, %v3836_v55  ;;  %v4288_v32 = vand.u32 4294901760, %v4287_v23  ;;  %4283 = vmatpush.msrb.mxu3 %v4282_v1  ;;  %v4294_v26 = vand.u32 4294901760, %v4293_v25  ;;  %v4324_v2 = vand.u32 4294901760, %v4323_v47 }
0x1645   : > { %4228 = vmatpush.msrb.mxu2 %v8703_v50  ;;  %v8803_v23 = vsub.f32 %v3812_v42, %v8792_v16  ;;  %v4329_v1 = vsub.f32 %v8786_v34, %v4328_v10 }
0x1646   : > { %4211 = vmatpush.msrb.mxu1 %v8546_v59  ;;  %v3832_v59 = vld [vmem:[#allocation11 + $0xe8] sm:$0xff]  ;;  %v8746_v12 = vsub.f32 %v3836_v55, %v8733_v9  ;;  %4289 = vmatpush.msrb.mxu3 %v4288_v32  ;;  %v8800_v55 = vand.u32 4294901760, %v3808_v17  ;;  %v4335_v32 = vsub.f32 %v8795_v41, %v4334_v14 }
0x1647   : > { %4230 = vmatpush.msrb.mxu2 %v8712_v61  ;;  %v4340_v25 = vand.u32 4294901760, %v8803_v23  ;;  %v4330_v40 = vand.u32 4294901760, %v4329_v1 }
0x1648   : > { %4213 = vmatpush.msrb.mxu1 %v8557_v37  ;;  %v8743_v37 = vand.u32 4294901760, %v3832_v59  ;;  %v4304_v44 = vand.u32 4294901760, %v8746_v12  ;;  %4295 = vmatpush.msrb.mxu3 %v4294_v26  ;;  %v8816_v26 = vsub.f32 %v3808_v17, %v8800_v55  ;;  %v4336_v3 = vand.u32 4294901760, %v4335_v32 }
0x1649   : > { %4232 = vmatpush.msrb.mxu2 %v8718_v7 }
0x164a   : > { %v8755_v51 = vsub.f32 %v3832_v59, %v8743_v37  ;;  %v4305_v21 = vsub.f32 %v8746_v12, %v4304_v44  ;;  %4301 = vmatpush.msrb.mxu3 %v4300_v49  ;;  %v3804_v59 = vld [vmem:[#allocation11 + $0x8] sm:$0xff]  ;;  %v4341_v49 = vsub.f32 %v8803_v23, %v4340_v25 }
0x164b   : > { %4234 = vmatpush.msrb.mxu2 %v8733_v9  ;;  %v8813_v18 = vand.u32 4294901760, %v3804_v59 }
0x164c   : > { %v4310_v57 = vand.u32 4294901760, %v8755_v51  ;;  %v4306_v48 = vand.u32 4294901760, %v4305_v21  ;;  %v10519_v21 = vand.u32 4294901760, %v8816_v26 }
0x164d   : > { %4236 = vmatpush.msrb.mxu2 %v8743_v37  ;;  %v8824_v5 = vsub.f32 %v3804_v59, %v8813_v18 }
0x164e   : > { %v4311_v4 = vsub.f32 %v8755_v51, %v4310_v57  ;;  %4307 = vmatpush.msrb.mxu3 %v4306_v48  ;;  %v4347_v48 = vsub.f32 %v8816_v26, %v10519_v21 }
0x164f   : > { %4238 = vmatpush.msrb.mxu2 %v8752_v60  ;;  %v10520_v20 = vand.u32 4294901760, %v8824_v5 }
0x1650   : > { %v4312_v24 = vand.u32 4294901760, %v4311_v4  ;;  %v4342_v4 = vand.u32 4294901760, %v4341_v49 }
0x1651   : > { %4240 = vmatpush.msrb.mxu2 %v8760_v19  ;;  %v4353_v29 = vsub.f32 %v8824_v5, %v10520_v20 }
0x1652   : > { %4313 = vmatpush.msrb.mxu3 %v4312_v24  ;;  %v4348_v24 = vand.u32 4294901760, %v4347_v48 }
0x1653   : > { %4242 = vmatpush.msrb.mxu2 %v8773_v13  ;;  %v4354_v42 = vand.u32 4294901760, %v4353_v29 }
0x1654   : > { %4319 = vmatpush.msrb.mxu3 %v4318_v45  ;;  %v7024_v45 = vld [vmem:[#allocation9 + $0x21] ss:$0 sm:$0xff] }
0x1655   : > { %4244 = vmatpush.msrb.mxu2 %v8783_v39 }
0x1656   : > { %4325 = vmatpush.msrb.mxu3 %v4324_v2 }
0x1657   : > { %4246 = vmatpush.msrb.mxu2 %v8792_v16 }
0x1658   : > { %4331 = vmatpush.msrb.mxu3 %v4330_v40 }
0x1659   : > { %4248 = vmatpush.msrb.mxu2 %v8800_v55 }
0x165a   : > { %4337 = vmatpush.msrb.mxu3 %v4336_v3 }
0x165b   : > { %4250 = vmatpush.msrb.mxu2 %v8813_v18 }
0x165c   : > { %4343 = vmatpush.msrb.mxu3 %v4342_v4 }
0x165e   : > { %4349 = vmatpush.msrb.mxu3 %v4348_v24 }
0x1660   : > { %4355 = vmatpush.msrb.mxu3 %v4354_v42 }
0x1693   : > { %v3655_v59 = vpop.f32.mrf.mxu0 }
0x1695   : > { %v3694_v40 = vpop.f32.mrf.mxu1 }
0x1697   : > { %v3601_v47 = vpop.f32.mrf.mxu3 }
0x169f   : > { %v3500_v17 = vpop.f32.mrf.mxu2  ;;  %v3800_v48 = vpop.f32.mrf.mxu3 }
0x16a0   : > { %v3501_v2 = vadd.f32 %v7024_v45, %v3500_v17  ;;  %v3825_v45 = vld [vmem:[#allocation11 + $0xb0] sm:$0xff] }
0x16a2   : > { %v3602_v1 = vadd.f32 %v3601_v47, %v3501_v2 }
0x16a4   : > { %v3656_v32 = vadd.f32 %v3655_v59, %v3602_v1  ;;  %v3821_v59 = vld [vmem:[#allocation11 + $0x90] sm:$0xff] }
0x16a6   : > { %v3695_v49 = vadd.f32 %v3694_v40, %v3656_v32  ;;  %v9004_v32 = vand.u32 4294901760, %v3825_v45 }
0x16a7   : > { %v3763_v22 = vpop.f32.mrf.mxu2 }
0x16a8   : > { %v3764_v3 = vadd.f32 %v3763_v22, %v3695_v49 }
0x16aa   : > { %v8833_v21 = vadd.f32 %v3800_v48, %v3764_v3  ;;  %v3817_v3 = vld [vmem:[#allocation11 + $0x70] sm:$0xff] }
0x16ac   : > { %10631 = vst [vmem:[#allocation20_spill] sm:$0xff] %v8833_v21  ;;  %v8836_v20 = vand.u32 4294901760, %v8833_v21 }
0x16ae   : > { %v8840_v4 = vsub.f32 %v8833_v21, %v8836_v20  ;;  %4016 = vmatmul.f32.vlgmr.msra.gmra.mxu1 %v8836_v20  ;;  %v3822_v21 = vld [vmem:[#allocation11 + $0x98] sm:$0xff] }
0x16af   : > { %4416 = vmatpush.msra.mxu1 %v8641_v0 }
0x16b0   : > { %10632 = vst [vmem:[#allocation21_spill] sm:$0xff] %v8840_v4  ;;  %4070 = vmatmul.f32.vlgmr.msra.gmra.mxu2 %v8840_v4  ;;  %v8846_v24 = vand.u32 4294901760, %v8840_v4 }
0x16b1   : > { %4418 = vmatpush.msra.mxu1 %v8679_v30  ;;  %4457 = vmatpush.msra.mxu2 %v4262_v52  ;;  %v3857_v52 = vld [vmem:[#allocation11 + $0x1b0] sm:$0xff] }
0x16b2   : > { %10633 = vst [vmem:[#allocation22_spill] sm:$0xff] %v8846_v24  ;;  %4109 = vmatmul.f32.vlgmr.msra.gmra.mxu3 %v8846_v24  ;;  %v3913_v22 = vsub.f32 %v8840_v4, %v8846_v24 }
0x16b3   : > { %4420 = vmatpush.msra.mxu1 %v8683_v33  ;;  %4461 = vmatpush.msra.mxu2 %v4268_v8 }
0x16b4   : > { %4524 = vmatpush.msra.mxu3 %v8641_v0  ;;  %v8858_v29 = vand.u32 4294901760, %v3913_v22  ;;  %v3865_v0 = vld [vmem:[#allocation11 + $0x1f0] sm:$0xff]  ;;  %v9016_v22 = vand.u32 4294901760, %v3821_v59 }
0x16b5   : > { %4422 = vmatpush.msra.mxu1 %v8693_v31  ;;  %4465 = vmatpush.msra.mxu2 %v4274_v46 }
0x16b6   : > { %4526 = vmatpush.msra.mxu3 %v8679_v30  ;;  %3915 = vmatmul.f32.vlgmr.msrb.gmra.mxu0 %v8858_v29  ;;  %v8884_v30 = vand.u32 4294901760, %v3865_v0 }
0x16b7   : > { %4215 = vmatmul.f32.vlgmr.msrb.gmra.mxu1 %v8836_v20  ;;  %4363 = vmatpush.msrb.mxu0 %v8677_v15  ;;  %v3861_v15 = vld [vmem:[#allocation11 + $0x1d0] sm:$0xff] }
0x16b8   : > { %4424 = vmatpush.msra.mxu1 %v8703_v50  ;;  %4469 = vmatpush.msra.mxu2 %v4280_v56  ;;  %v8899_v8 = vsub.f32 %v3865_v0, %v8884_v30  ;;  %v3845_v56 = vld [vmem:[#allocation11 + $0x150] sm:$0xff] }
0x16b9   : > { %4528 = vmatpush.msra.mxu3 %v8683_v33  ;;  %4256 = vmatmul.f32.vlgmr.msrb.gmra.mxu2 %v8858_v29  ;;  %v8891_v33 = vand.u32 4294901760, %v3861_v15 }
0x16ba   : > { %4366 = vmatpush.msrb.mxu0 %v8686_v53  ;;  %4426 = vmatpush.msra.mxu1 %v8712_v61  ;;  %v3853_v53 = vld [vmem:[#allocation11 + $0x190] sm:$0xff] }
0x16bb   : > { %4473 = vmatpush.msra.mxu2 %v4286_v43  ;;  %4530 = vmatpush.msra.mxu3 %v8693_v31  ;;  %v8901_v31 = vand.u32 4294901760, %v3857_v52  ;;  %v8909_v46 = vsub.f32 %v3861_v15, %v8891_v33 }
0x16bc   : > { %4357 = vmatmul.f32.vlgmr.msrb.gmra.mxu3 %v8836_v20  ;;  %4369 = vmatpush.msrb.mxu0 %v8696_v63  ;;  %v3849_v63 = vld [vmem:[#allocation11 + $0x170] sm:$0xff] }
0x16bd   : > { %4428 = vmatpush.msra.mxu1 %v8718_v7  ;;  %4477 = vmatpush.msra.mxu2 %v4292_v38  ;;  %v10537_v43 = vand.u32 4294901760, %v8909_v46  ;;  %v8935_v38 = vand.u32 4294901760, %v3845_v56 }
0x16be   : > { %4532 = vmatpush.msra.mxu3 %v8703_v50  ;;  %4372 = vmatpush.msrb.mxu0 %v8706_v58  ;;  %v8911_v50 = vand.u32 4294901760, %v3853_v53  ;;  %v10538_v58 = vand.u32 4294901760, %v8899_v8 }
0x16bf   : > { %4430 = vmatpush.msra.mxu1 %v8733_v9  ;;  %4481 = vmatpush.msra.mxu2 %v4298_v35 }
0x16c0   : > { %4534 = vmatpush.msra.mxu3 %v8712_v61  ;;  %4178 = vmatmul.f32.vlgmr.msra.gmra.mxu0 %v8836_v20  ;;  %v8920_v61 = vsub.f32 %v3857_v52, %v8901_v31  ;;  %v9026_v52 = vsub.f32 %v3825_v45, %v9004_v32 }
0x16c1   : > { %4375 = vmatpush.msrb.mxu0 %v8715_v28  ;;  %4432 = vmatpush.msra.mxu1 %v8743_v37  ;;  %v8922_v28 = vand.u32 4294901760, %v3849_v63 }
0x16c2   : > { %4485 = vmatpush.msra.mxu2 %v4304_v44  ;;  %4536 = vmatpush.msra.mxu3 %v8718_v7  ;;  %v3841_v7 = vld [vmem:[#allocation11 + $0x130] sm:$0xff]  ;;  %v10535_v35 = vand.u32 4294901760, %v8920_v61 }
0x16c3   : > { %4378 = vmatpush.msrb.mxu0 %v8723_v54  ;;  %4434 = vmatpush.msra.mxu1 %v8752_v60  ;;  %v8931_v54 = vsub.f32 %v3853_v53, %v8911_v50  ;;  %v9028_v53 = vand.u32 4294901760, %v3817_v3 }
0x16c4   : > { %4489 = vmatpush.msra.mxu2 %v4310_v57  ;;  %4538 = vmatpush.msra.mxu3 %v8733_v9  ;;  %v3837_v9 = vld [vmem:[#allocation11 + $0x110] sm:$0xff] }
0x16c5   : > { %4381 = vmatpush.msrb.mxu0 %v8736_v36  ;;  %4436 = vmatpush.msra.mxu1 %v8760_v19  ;;  %v4604_v36 = vsub.f32 %v8899_v8, %v10538_v58  ;;  %v8958_v44 = vand.u32 4294901760, %v3837_v9  ;;  %v3833_v57 = vld [vmem:[#allocation11 + $0xf0] sm:$0xff] }
0x16c6   : > { %4493 = vmatpush.msra.mxu2 %v4316_v62  ;;  %4540 = vmatpush.msra.mxu3 %v8743_v37  ;;  %v8945_v37 = vsub.f32 %v3849_v63, %v8922_v28  ;;  %v4616_v62 = vsub.f32 %v8920_v61, %v10535_v35  ;;  %v3826_v35 = vld [vmem:[#allocation11 + $0xb8] sm:$0xff] }
0x16c7   : > { %4384 = vmatpush.msrb.mxu0 %v8746_v12  ;;  %4438 = vmatpush.msra.mxu1 %v8773_v13  ;;  %v8947_v12 = vand.u32 4294901760, %v3841_v7  ;;  %v8986_v42 = vsub.f32 %v3837_v9, %v8958_v44 }
0x16c8   : > { %4497 = vmatpush.msra.mxu2 %v4322_v6  ;;  %4542 = vmatpush.msra.mxu3 %v8752_v60  ;;  %v4610_v60 = vsub.f32 %v8909_v46, %v10537_v43  ;;  %v4617_v17 = vand.u32 4294901760, %v4616_v62  ;;  %v10526_v62 = vand.u32 4294901760, %v9026_v52 }
0x16c9   : > { %4387 = vmatpush.msrb.mxu0 %v8755_v51  ;;  %4440 = vmatpush.msra.mxu1 %v8783_v39  ;;  %v10534_v51 = vand.u32 4294901760, %v8931_v54  ;;  %v8973_v6 = vsub.f32 %v3841_v7, %v8947_v12  ;;  %v10529_v49 = vand.u32 4294901760, %v8986_v42 }
0x16ca   : > { %4501 = vmatpush.msra.mxu2 %v4328_v10  ;;  %4544 = vmatpush.msra.mxu3 %v8760_v19  ;;  %v8963_v19 = vsub.f32 %v3845_v56, %v8935_v38  ;;  %v8977_v10 = vand.u32 4294901760, %v3833_v57  ;;  %v3809_v56 = vld [vmem:[#allocation11 + $0x30] sm:$0xff] }
0x16cb   : > { %4390 = vmatpush.msrb.mxu0 %v8763_v27  ;;  %4442 = vmatpush.msra.mxu1 %v8792_v16  ;;  %v4605_v27 = vand.u32 4294901760, %v4604_v36  ;;  %v10530_v1 = vand.u32 4294901760, %v8973_v6  ;;  %v4646_v63 = vsub.f32 %v8986_v42, %v10529_v49  ;;  %v9038_v36 = vsub.f32 %v3821_v59, %v9016_v22  ;;  %v3838_v49 = vld [vmem:[#allocation11 + $0x118] sm:$0xff] }
0x16cc   : > { %4505 = vmatpush.msra.mxu2 %v4334_v14  ;;  %4546 = vmatpush.msra.mxu3 %v8773_v13  ;;  %v10533_v13 = vand.u32 4294901760, %v8945_v37  ;;  %v10634_v14 = vand.u32 4294901760, %v8816_v26 }
0x16cd   : > { %4393 = vmatpush.msrb.mxu0 %v8776_v11  ;;  %4444 = vmatpush.msra.mxu1 %v8800_v55  ;;  %v3829_v11 = vld [vmem:[#allocation11 + $0xd0] sm:$0xff]  ;;  %v4640_v15 = vsub.f32 %v8973_v6, %v10530_v1 }
0x16ce   : > { %4509 = vmatpush.msra.mxu2 %v4340_v25  ;;  %4548 = vmatpush.msra.mxu3 %v8783_v39  ;;  %v4611_v39 = vand.u32 4294901760, %v4610_v60  ;;  %v4622_v25 = vsub.f32 %v8931_v54, %v10534_v51  ;;  %v8991_v47 = vand.u32 4294901760, %v3829_v11  ;;  %v4628_v2 = vsub.f32 %v8945_v37, %v10533_v13 }
0x16cf   : > { %4396 = vmatpush.msrb.mxu0 %v8786_v34  ;;  %4446 = vmatpush.msra.mxu1 %v8813_v18  ;;  %v10531_v34 = vand.u32 4294901760, %v8963_v19  ;;  %v9172_v13 = vand.u32 4294901760, %v3838_v49 }
0x16d0   : > { %4513 = vmatpush.msra.mxu2 %v10634_v14  ;;  %4550 = vmatpush.msra.mxu3 %v8792_v16  ;;  %v10635_v16 = vand.u32 4294901760, %v8824_v5  ;;  %v4623_v40 = vand.u32 4294901760, %v4622_v25  ;;  %v9014_v48 = vsub.f32 %v3829_v11, %v8991_v47  ;;  %v4629_v0 = vand.u32 4294901760, %v4628_v2 }
0x16d1   : > { %4450 = vmatmul.f32.vlgmr.msra.gmra.mxu1 %v8846_v24  ;;  %4399 = vmatpush.msrb.mxu0 %v8795_v41  ;;  %v9002_v41 = vsub.f32 %v3833_v57, %v8977_v10  ;;  %v3805_v57 = vld [vmem:[#allocation11 + $0x10] sm:$0xff]  ;;  %v9050_v11 = vsub.f32 %v3817_v3, %v9028_v53  ;;  %v9052_v14 = vand.u32 4294901760, %v3809_v56  ;;  %v10524_v25 = vand.u32 4294901760, %v9038_v36 }
0x16d2   : > { %4606 = vmatpush.msrb.mxu1 %v4605_v27  ;;  %4517 = vmatpush.msra.mxu2 %v10635_v16  ;;  %v10527_v9 = vand.u32 4294901760, %v9014_v48  ;;  %v9064_v16 = vand.u32 4294901760, %v3805_v57  ;;  %v4664_v2 = vsub.f32 %v9026_v52, %v10526_v62 }
0x16d3   : > { %4552 = vmatpush.msra.mxu3 %v8800_v55  ;;  %4519 = vmatmul.f32.vlgmr.msra.gmra.mxu2 %v8836_v20  ;;  %v4634_v55 = vsub.f32 %v8963_v19, %v10531_v34  ;;  %v10522_v59 = vand.u32 4294901760, %v9050_v11 }
0x16d4   : > { %4612 = vmatpush.msrb.mxu1 %v4611_v39  ;;  %4704 = vmatpush.msrb.mxu2 %v8899_v8  ;;  %v4658_v39 = vsub.f32 %v9014_v48, %v10527_v9 }
0x16d5   : > { %4402 = vmatpush.msrb.mxu0 %v8803_v23  ;;  %4554 = vmatpush.msra.mxu3 %v8813_v18  ;;  %v3813_v23 = vld [vmem:[#allocation11 + $0x50] sm:$0xff]  ;;  %v10528_v18 = vand.u32 4294901760, %v9002_v41  ;;  %v4635_v7 = vand.u32 4294901760, %v4634_v55  ;;  %v4670_v55 = vsub.f32 %v9038_v36, %v10524_v25  ;;  %v3850_v25 = vld [vmem:[#allocation11 + $0x178] sm:$0xff] }
0x16d6   : > { %4556 = vmatmul.f32.vlgmr.msra.gmra.mxu3 %v8836_v20  ;;  %4618 = vmatpush.msrb.mxu1 %v4617_v17  ;;  %v9040_v60 = vand.u32 4294901760, %v3813_v23  ;;  %v4659_v3 = vand.u32 4294901760, %v4658_v39 }
0x16d7   : > { %4707 = vmatpush.msrb.mxu2 %v8909_v46  ;;  %4757 = vmatpush.msrb.mxu3 %v8884_v30  ;;  %v4652_v27 = vsub.f32 %v9002_v41, %v10528_v18  ;;  %v3842_v18 = vld [vmem:[#allocation11 + $0x138] sm:$0xff] }
0x16d8   : > { %4405 = vmatpush.msrb.mxu0 %v8816_v26  ;;  %4624 = vmatpush.msrb.mxu1 %v4623_v40  ;;  %v4641_v26 = vand.u32 4294901760, %v4640_v15  ;;  %v9062_v45 = vsub.f32 %v3813_v23, %v9040_v60  ;;  %v9074_v40 = vsub.f32 %v3809_v56, %v9052_v14  ;;  %v9084_v15 = vsub.f32 %v3805_v57, %v9064_v16  ;;  %v3866_v23 = vld [vmem:[#allocation11 + $0x1f8] sm:$0xff] }
0x16d9   : > { %4710 = vmatpush.msrb.mxu2 %v8920_v61  ;;  %4759 = vmatpush.msrb.mxu3 %v8891_v33  ;;  %v4653_v17 = vand.u32 4294901760, %v4652_v27  ;;  %v4676_v56 = vsub.f32 %v9050_v11, %v10522_v59  ;;  %v4671_v57 = vand.u32 4294901760, %v4670_v55  ;;  %v9100_v39 = vand.u32 4294901760, %v3866_v23  ;;  %v3858_v55 = vld [vmem:[#allocation11 + $0x1b8] sm:$0xff] }
0x16da   : > { %4408 = vmatpush.msrb.mxu0 %v8824_v5  ;;  %4630 = vmatpush.msrb.mxu1 %v4629_v0  ;;  %v4647_v5 = vand.u32 4294901760, %v4646_v63  ;;  %v10521_v0 = vand.u32 4294901760, %v9062_v45  ;;  %v4665_v63 = vand.u32 4294901760, %v4664_v2  ;;  %v3854_v59 = vld [vmem:[#allocation11 + $0x198] sm:$0xff]  ;;  %v9159_v34 = vand.u32 4294901760, %v3842_v18 }
0x16db   : > { %4411 = vmatmul.f32.vlgmr.msrb.gmra.mxu0 %v8840_v4  ;;  %4713 = vmatpush.msrb.mxu2 %v8931_v54 }
0x16dc   : > { %4561 = vmatpush.msra.mxu0 %v8884_v30  ;;  %4761 = vmatpush.msrb.mxu3 %v8901_v31  ;;  %v4682_v27 = vsub.f32 %v9062_v45, %v10521_v0 }
0x16dd   : > { %4636 = vmatpush.msrb.mxu1 %v4635_v7  ;;  %4716 = vmatpush.msrb.mxu2 %v8945_v37  ;;  %v10523_v7 = vand.u32 4294901760, %v9074_v40 }
0x16de   : > { %4563 = vmatpush.msra.mxu0 %v8891_v33  ;;  %4763 = vmatpush.msrb.mxu3 %v8911_v50  ;;  %v4683_v0 = vand.u32 4294901760, %v4682_v27 }
0x16df   : > { %4642 = vmatpush.msrb.mxu1 %v4641_v26  ;;  %4719 = vmatpush.msrb.mxu2 %v8963_v19  ;;  %v3862_v26 = vld [vmem:[#allocation11 + $0x1d8] sm:$0xff]  ;;  %v4688_v2 = vsub.f32 %v9074_v40, %v10523_v7  ;;  %v9121_v7 = vand.u32 4294901760, %v3858_v55 }
0x16e0   : > { %4565 = vmatpush.msra.mxu0 %v8901_v31  ;;  %4765 = vmatpush.msrb.mxu3 %v8922_v28 }
0x16e1   : > { %4648 = vmatpush.msrb.mxu1 %v4647_v5  ;;  %4722 = vmatpush.msrb.mxu2 %v8973_v6  ;;  %v10525_v5 = vand.u32 4294901760, %v9084_v15 }
0x16e2   : > { %4567 = vmatpush.msra.mxu0 %v8911_v50  ;;  %4767 = vmatpush.msrb.mxu3 %v8935_v38 }
0x16e3   : > { %4654 = vmatpush.msrb.mxu1 %v4653_v17  ;;  %4725 = vmatpush.msrb.mxu2 %v8986_v42  ;;  %v4677_v17 = vand.u32 4294901760, %v4676_v56  ;;  %v9117_v56 = vsub.f32 %v3866_v23, %v9100_v39  ;;  %v9129_v23 = vand.u32 4294901760, %v3854_v59 }
0x16e4   : > { %4569 = vmatpush.msra.mxu0 %v8922_v28  ;;  %4769 = vmatpush.msrb.mxu3 %v8947_v12 }
0x16e5   : > { %4660 = vmatpush.msrb.mxu1 %v4659_v3  ;;  %4728 = vmatpush.msrb.mxu2 %v9002_v41  ;;  %v9108_v3 = vand.u32 4294901760, %v3862_v26  ;;  %v10532_v9 = vand.u32 4294901760, %v9117_v56 }
0x16e6   : > { %4571 = vmatpush.msra.mxu0 %v8935_v38  ;;  %4771 = vmatpush.msrb.mxu3 %v8958_v44 }
0x16e7   : > { %4666 = vmatpush.msrb.mxu1 %v4665_v63  ;;  %4731 = vmatpush.msrb.mxu2 %v9014_v48  ;;  %v4694_v63 = vsub.f32 %v9084_v15, %v10525_v5  ;;  %v9125_v27 = vsub.f32 %v3862_v26, %v9108_v3  ;;  %v3846_v5 = vld [vmem:[#allocation11 + $0x158] sm:$0xff]  ;;  %v9138_v26 = vsub.f32 %v3858_v55, %v9121_v7 }
0x16e8   : > { %4573 = vmatpush.msra.mxu0 %v8947_v12  ;;  %4773 = vmatpush.msrb.mxu3 %v8977_v10  ;;  %v4945_v55 = vsub.f32 %v9117_v56, %v10532_v9 }
0x16e9   : > { %4672 = vmatpush.msrb.mxu1 %v4671_v57  ;;  %4734 = vmatpush.msrb.mxu2 %v9026_v52  ;;  %v4689_v57 = vand.u32 4294901760, %v4688_v2  ;;  %v4695_v62 = vand.u32 4294901760, %v4694_v63  ;;  %v10536_v2 = vand.u32 4294901760, %v9125_v27  ;;  %v9147_v63 = vsub.f32 %v3854_v59, %v9129_v23  ;;  %v3834_v59 = vld [vmem:[#allocation11 + $0xf8] sm:$0xff] }
0x16ea   : > { %4575 = vmatpush.msra.mxu0 %v8958_v44  ;;  %4775 = vmatpush.msrb.mxu3 %v8991_v47  ;;  %v10539_v1 = vand.u32 4294901760, %v9138_v26  ;;  %v4946_v51 = vand.u32 4294901760, %v4945_v55  ;;  %v9185_v43 = vand.u32 4294901760, %v3834_v59 }
0x16eb   : > { %4678 = vmatpush.msrb.mxu1 %v4677_v17  ;;  %4737 = vmatpush.msrb.mxu2 %v9038_v36  ;;  %v9133_v17 = vand.u32 4294901760, %v3850_v25  ;;  %v10541_v9 = vand.u32 4294901760, %v9147_v63 }
0x16ec   : > { %4577 = vmatpush.msra.mxu0 %v8977_v10  ;;  %4777 = vmatpush.msrb.mxu3 %v9004_v32 }
0x16ed   : > { %4684 = vmatpush.msrb.mxu1 %v4683_v0  ;;  %4740 = vmatpush.msrb.mxu2 %v9050_v11  ;;  %v9142_v0 = vand.u32 4294901760, %v3846_v5 }
0x16ee   : > { %4579 = vmatpush.msra.mxu0 %v8991_v47  ;;  %4779 = vmatpush.msrb.mxu3 %v9016_v22 }
0x16ef   : > { %4690 = vmatpush.msrb.mxu1 %v4689_v57  ;;  %4743 = vmatpush.msrb.mxu2 %v9062_v45  ;;  %v9154_v57 = vsub.f32 %v3850_v25, %v9133_v17  ;;  %v9167_v25 = vsub.f32 %v3846_v5, %v9142_v0  ;;  %v9183_v5 = vsub.f32 %v3842_v18, %v9159_v34 }
0x16f0   : > { %4581 = vmatpush.msra.mxu0 %v9004_v32  ;;  %4781 = vmatpush.msrb.mxu3 %v9028_v53  ;;  %v9196_v18 = vsub.f32 %v3838_v49, %v9172_v13  ;;  %v9208_v49 = vsub.f32 %v3834_v59, %v9185_v43 }
0x16f1   : > { %4696 = vmatpush.msrb.mxu1 %v4695_v62  ;;  %4746 = vmatpush.msrb.mxu2 %v9074_v40  ;;  %10636 = vst [vmem:[#allocation23_spill] sm:$0xff] %v9154_v57  ;;  %v4951_v62 = vsub.f32 %v9125_v27, %v10536_v2  ;;  %v3830_v2 = vld [vmem:[#allocation11 + $0xd8] sm:$0xff] }
0x16f2   : > { %4583 = vmatpush.msra.mxu0 %v9016_v22  ;;  %4783 = vmatpush.msrb.mxu3 %v9040_v60  ;;  %10637 = vst [vmem:[#allocation24_spill] sm:$0xff] %v9167_v25 }
0x16f3   : > { %4698 = vmatmul.f32.vlgmr.msrb.gmra.mxu1 %v8836_v20  ;;  %4749 = vmatpush.msrb.mxu2 %v9084_v15  ;;  %10638 = vst [vmem:[#allocation25_spill] sm:$0xff] %v9183_v5  ;;  %v4952_v55 = vand.u32 4294901760, %v4951_v62  ;;  %v10639_v62 = vand.u32 4294901760, %v9154_v57 }
0x16f4   : > { %4865 = vmatpush.msra.mxu1 %v8884_v30  ;;  %4585 = vmatpush.msra.mxu0 %v9028_v53  ;;  %v4957_v30 = vsub.f32 %v9138_v26, %v10539_v1  ;;  %v9198_v1 = vand.u32 4294901760, %v3830_v2 }
0x16f5   : > { %4785 = vmatpush.msrb.mxu3 %v9052_v14  ;;  %4752 = vmatmul.f32.vlgmr.msrb.gmra.mxu2 %v8840_v4  ;;  %v4969_v58 = vsub.f32 %v9154_v57, %v10639_v62  ;;  %v9210_v4 = vand.u32 4294901760, %v3826_v35  ;;  %v3814_v57 = vld [vmem:[#allocation11 + $0x58] sm:$0xff] }
0x16f6   : > { %4867 = vmatpush.msra.mxu1 %v8891_v33  ;;  %4902 = vmatpush.msra.mxu2 %v9100_v39  ;;  %v4963_v33 = vsub.f32 %v9147_v63, %v10541_v9  ;;  %v9220_v59 = vsub.f32 %v3830_v2, %v9198_v1  ;;  %v9222_v9 = vand.u32 4294901760, %v3822_v21 }
0x16f7   : > { %4587 = vmatpush.msra.mxu0 %v9040_v60  ;;  %4787 = vmatpush.msrb.mxu3 %v9064_v16  ;;  %v9233_v2 = vsub.f32 %v3826_v35, %v9210_v4 }
0x16f8   : > { %4791 = vmatmul.f32.vlgmr.msrb.gmra.mxu3 %v8846_v24  ;;  %4869 = vmatpush.msra.mxu1 %v8901_v31  ;;  %v4958_v31 = vand.u32 4294901760, %v4957_v30  ;;  %v3818_v24 = vld [vmem:[#allocation11 + $0x78] sm:$0xff]  ;;  %v9246_v35 = vsub.f32 %v3822_v21, %v9222_v9  ;;  %v9248_v30 = vand.u32 4294901760, %v3814_v57 }
0x16f9   : > { %4904 = vmatpush.msra.mxu2 %v9108_v3  ;;  %4947 = vmatpush.msra.mxu3 %v4946_v51  ;;  %v10640_v51 = vand.u32 4294901760, %v9167_v25 }
0x16fa   : > { %4589 = vmatpush.msra.mxu0 %v9052_v14  ;;  %4871 = vmatpush.msra.mxu1 %v8911_v50  ;;  %v4964_v50 = vand.u32 4294901760, %v4963_v33 }
0x16fb   : > { %4906 = vmatpush.msra.mxu2 %v9121_v7  ;;  %4953 = vmatpush.msra.mxu3 %v4952_v55  ;;  %v4975_v62 = vsub.f32 %v9167_v25, %v10640_v51  ;;  %v4970_v55 = vand.u32 4294901760, %v4969_v58  ;;  %v10641_v51 = vand.u32 4294901760, %v8899_v8  ;;  %v9235_v25 = vand.u32 4294901760, %v3818_v24 }
0x16fc   : > { %4591 = vmatpush.msra.mxu0 %v9064_v16  ;;  %4873 = vmatpush.msra.mxu1 %v8922_v28  ;;  %v10642_v28 = vand.u32 4294901760, %v9183_v5  ;;  %v10643_v8 = vand.u32 4294901760, %v8909_v46  ;;  %v10645_v46 = vand.u32 4294901760, %v8920_v61  ;;  %v10647_v61 = vand.u32 4294901760, %v8931_v54 }
0x16fd   : > { %4597 = vmatmul.f32.vlgmr.msra.gmra.mxu0 %v8858_v29  ;;  %4908 = vmatpush.msra.mxu2 %v9129_v23  ;;  %v4976_v58 = vand.u32 4294901760, %v4975_v62  ;;  %v10646_v62 = vand.u32 4294901760, %v9208_v49  ;;  %v9259_v21 = vsub.f32 %v3818_v24, %v9235_v25  ;;  %v9272_v24 = vsub.f32 %v3814_v57, %v9248_v30 }
0x16fe   : > { %4798 = vmatpush.msrb.mxu0 %v10641_v51  ;;  %4959 = vmatpush.msra.mxu3 %v4958_v31  ;;  %v4981_v33 = vsub.f32 %v9183_v5, %v10642_v28  ;;  %v10644_v31 = vand.u32 4294901760, %v9196_v18  ;;  %v4998_v28 = vand.u32 4294901760, %v9220_v59  ;;  %v3810_v5 = vld [vmem:[#allocation11 + $0x38] sm:$0xff]  ;;  %v10648_v54 = vand.u32 4294901760, %v8945_v37 }
0x16ff   : > { %4875 = vmatpush.msra.mxu1 %v8935_v38  ;;  %4910 = vmatpush.msra.mxu2 %v9133_v17  ;;  %v10649_v57 = vand.u32 4294901760, %v8963_v19 }
0x1700   : > { %4802 = vmatpush.msrb.mxu0 %v10643_v8  ;;  %4965 = vmatpush.msra.mxu3 %v4964_v50  ;;  %v4987_v51 = vsub.f32 %v9196_v18, %v10644_v31  ;;  %v4982_v38 = vand.u32 4294901760, %v4981_v33  ;;  %v4993_v50 = vsub.f32 %v9208_v49, %v10646_v62  ;;  %v5004_v8 = vand.u32 4294901760, %v9233_v2  ;;  %v3806_v31 = vld [vmem:[#allocation11 + $0x18] sm:$0xff] }
0x1701   : > { %4877 = vmatpush.msra.mxu1 %v8947_v12  ;;  %4912 = vmatpush.msra.mxu2 %v9142_v0  ;;  %v9263_v12 = vand.u32 4294901760, %v3810_v5  ;;  %v4999_v33 = vsub.f32 %v9220_v59, %v4998_v28  ;;  %v5016_v62 = vand.u32 4294901760, %v9259_v21 }
0x1702   : > { %4806 = vmatpush.msrb.mxu0 %v10645_v46  ;;  %4971 = vmatpush.msra.mxu3 %v4970_v55  ;;  %v4988_v55 = vand.u32 4294901760, %v4987_v51  ;;  %v5010_v46 = vand.u32 4294901760, %v9246_v35  ;;  %v5005_v51 = vsub.f32 %v9233_v2, %v5004_v8 }
0x1703   : > { %4879 = vmatpush.msra.mxu1 %v8958_v44  ;;  %4914 = vmatpush.msra.mxu2 %v9159_v34  ;;  %v9276_v44 = vand.u32 4294901760, %v3806_v31  ;;  %v5000_v37 = vand.u32 4294901760, %v4999_v33 }
0x1704   : > { %4810 = vmatpush.msrb.mxu0 %v10647_v61  ;;  %4977 = vmatpush.msra.mxu3 %v4976_v58  ;;  %v4994_v58 = vand.u32 4294901760, %v4993_v50  ;;  %v5022_v50 = vand.u32 4294901760, %v9272_v24  ;;  %v5006_v19 = vand.u32 4294901760, %v5005_v51  ;;  %v5017_v61 = vsub.f32 %v9259_v21, %v5016_v62 }
0x1705   : > { %4881 = vmatpush.msra.mxu1 %v8977_v10  ;;  %4916 = vmatpush.msra.mxu2 %v9172_v13  ;;  %v9287_v10 = vsub.f32 %v3810_v5, %v9263_v12  ;;  %v10650_v5 = vand.u32 4294901760, %v8973_v6  ;;  %v10655_v51 = vand.u32 4294901760, %v9038_v36  ;;  %v10658_v36 = vand.u32 4294901760, %v9062_v45 }
0x1706   : > { %4814 = vmatpush.msrb.mxu0 %v10648_v54  ;;  %4983 = vmatpush.msra.mxu3 %v4982_v38  ;;  %v5011_v38 = vsub.f32 %v9246_v35, %v5010_v46  ;;  %v5023_v6 = vsub.f32 %v9272_v24, %v5022_v50  ;;  %v5018_v54 = vand.u32 4294901760, %v5017_v61  ;;  %v10662_v45 = vand.u32 4294901760, %v9084_v15  ;;  %v10666_v15 = vld [vmem:[#allocation24_spill] sm:$0xff] }
0x1707   : > { %4883 = vmatpush.msra.mxu1 %v8991_v47  ;;  %4918 = vmatpush.msra.mxu2 %v9185_v43  ;;  %v9298_v47 = vsub.f32 %v3806_v31, %v9276_v44  ;;  %v10670_v61 = vand.u32 4294901760, %v9196_v18 }
0x1708   : > { %4818 = vmatpush.msrb.mxu0 %v10649_v57  ;;  %4989 = vmatpush.msra.mxu3 %v4988_v55  ;;  %v10651_v55 = vand.u32 4294901760, %v8986_v42  ;;  %v5012_v31 = vand.u32 4294901760, %v5011_v38  ;;  %v10659_v57 = vand.u32 4294901760, %v9125_v27 }
0x1709   : > { %4885 = vmatpush.msra.mxu1 %v9004_v32  ;;  %4920 = vmatpush.msra.mxu2 %v9198_v1  ;;  %v5028_v32 = vand.u32 4294901760, %v9287_v10  ;;  %v5034_v33 = vand.u32 4294901760, %v9298_v47 }
0x170a   : > { %4822 = vmatpush.msrb.mxu0 %v10650_v5  ;;  %4995 = vmatpush.msra.mxu3 %v4994_v58  ;;  %v10653_v58 = vand.u32 4294901760, %v9014_v48 }
0x170b   : > { %4887 = vmatpush.msra.mxu1 %v9016_v22  ;;  %4922 = vmatpush.msra.mxu2 %v9210_v4  ;;  %v10652_v22 = vand.u32 4294901760, %v9002_v41  ;;  %v5029_v42 = vsub.f32 %v9287_v10, %v5028_v32  ;;  %v5035_v41 = vsub.f32 %v9298_v47, %v5034_v33 }
0x170c   : > { %4826 = vmatpush.msrb.mxu0 %v10651_v55  ;;  %5001 = vmatpush.msra.mxu3 %v5000_v37  ;;  %v10663_v37 = vand.u32 4294901760, %v9147_v63 }
0x170d   : > { %4889 = vmatpush.msra.mxu1 %v9028_v53  ;;  %4924 = vmatpush.msra.mxu2 %v9222_v9  ;;  %v5024_v53 = vand.u32 4294901760, %v5023_v6  ;;  %v5030_v48 = vand.u32 4294901760, %v5029_v42  ;;  %v9419_v42 = vld [vmem:[#allocation11 + $0x200] ss:$8 sm:$0xf] }
0x170e   : > { %4830 = vmatpush.msrb.mxu0 %v10652_v22  ;;  %5007 = vmatpush.msra.mxu3 %v5006_v19 }
0x170f   : > { %4891 = vmatpush.msra.mxu1 %v9040_v60  ;;  %4926 = vmatpush.msra.mxu2 %v9235_v25  ;;  %v10654_v60 = vand.u32 4294901760, %v9026_v52  ;;  %v10656_v52 = vand.u32 4294901760, %v9050_v11  ;;  %v10661_v11 = vand.u32 4294901760, %v9138_v26 }
0x1710   : > { %4834 = vmatpush.msrb.mxu0 %v10653_v58  ;;  %5013 = vmatpush.msra.mxu3 %v5012_v31 }
0x1711   : > { %4893 = vmatpush.msra.mxu1 %v9052_v14  ;;  %4928 = vmatpush.msra.mxu2 %v9248_v30  ;;  %v5036_v14 = vand.u32 4294901760, %v5035_v41  ;;  %v5286_v41 = vld [vmem:[#allocation9 + $0xe8] sm:$0xff] }
0x1712   : > { %4838 = vmatpush.msrb.mxu0 %v10654_v60  ;;  %5019 = vmatpush.msra.mxu3 %v5018_v54  ;;  %v5288_v54 = vld [vmem:[#allocation9 + $0xf8] sm:$0xff]  ;;  %v3870_v60 = vperm.slane %v9419_v42, 0 }
0x1713   : > { %4895 = vmatpush.msra.mxu1 %v9064_v16  ;;  %4930 = vmatpush.msra.mxu2 %v9263_v12  ;;  %v10657_v16 = vand.u32 4294901760, %v9117_v56 }
0x1714   : > { %4842 = vmatpush.msrb.mxu0 %v10655_v51  ;;  %5025 = vmatpush.msra.mxu3 %v5024_v53  ;;  %v9433_v53 = vand.u32 4294901760, %v5288_v54  ;;  %v5285_v51 = vld [vmem:[#allocation9 + $0xe0] sm:$0xff] }
0x1715   : > { %4897 = vmatmul.f32.vlgmr.msra.gmra.mxu1 %v8836_v20  ;;  %4932 = vmatpush.msra.mxu2 %v9276_v44 }
0x1716   : > { %5098 = vmatpush.msrb.mxu1 %v9100_v39  ;;  %4846 = vmatpush.msrb.mxu0 %v10656_v52 }
0x1717   : > { %5031 = vmatpush.msra.mxu3 %v5030_v48  ;;  %4938 = vmatmul.f32.vlgmr.msra.gmra.mxu2 %v8858_v29  ;;  %v10660_v29 = vand.u32 4294901760, %v9074_v40  ;;  %v5293_v40 = vld [vmem:[#allocation9 + $0x120] sm:$0xff] }
0x1718   : > { %5100 = vmatpush.msrb.mxu1 %v9108_v3  ;;  %5139 = vmatpush.msrb.mxu2 %v10657_v16  ;;  %v9374_v5 = vand.u32 4294901760, %v5293_v40 }
0x1719   : > { %4850 = vmatpush.msrb.mxu0 %v10658_v36  ;;  %5037 = vmatpush.msra.mxu3 %v5036_v14 }
0x171a   : > { %5039 = vmatmul.f32.vlgmr.msra.gmra.mxu3 %v8836_v20  ;;  %5102 = vmatpush.msrb.mxu1 %v9121_v7 }
0x171b   : > { %5143 = vmatpush.msrb.mxu2 %v10659_v57  ;;  %5206 = vmatpush.msrb.mxu3 %v9100_v39  ;;  %v10664_v39 = vld [vmem:[#allocation23_spill] sm:$0xff] }
0x171c   : > { %4854 = vmatpush.msrb.mxu0 %v10660_v29  ;;  %5104 = vmatpush.msrb.mxu1 %v9129_v23  ;;  %v10665_v38 = vand.u32 4294901760, %v10664_v39  ;;  %10672 = vst [vmem:[#allocation23_spill] sm:$0xff] %v9419_v42 }
0x171d   : > { %5147 = vmatpush.msrb.mxu2 %v10661_v11  ;;  %5208 = vmatpush.msrb.mxu3 %v9108_v3  ;;  %v10667_v3 = vand.u32 4294901760, %v10666_v15 }
0x171e   : > { %4858 = vmatpush.msrb.mxu0 %v10662_v45  ;;  %5106 = vmatpush.msrb.mxu1 %v9133_v17 }
0x171f   : > { %4860 = vmatmul.f32.vlgmr.msrb.gmra.mxu0 %v8836_v20  ;;  %5151 = vmatpush.msrb.mxu2 %v10663_v37  ;;  %v5283_v37 = vld [vmem:[#allocation9 + $0xd0] sm:$0xff] }
0x1720   : > { %5045 = vmatpush.msra.mxu0 %v9117_v56  ;;  %5210 = vmatpush.msrb.mxu3 %v9121_v7  ;;  %v5292_v56 = vld [vmem:[#allocation9 + $0x118] sm:$0xff]  ;;  %v10668_v7 = vld [vmem:[#allocation25_spill] sm:$0xff] }
0x1721   : > { %5108 = vmatpush.msrb.mxu1 %v9142_v0  ;;  %5155 = vmatpush.msrb.mxu2 %v10665_v38  ;;  %v10669_v19 = vand.u32 4294901760, %v10668_v7 }
0x1722   : > { %5048 = vmatpush.msra.mxu0 %v9125_v27  ;;  %5212 = vmatpush.msrb.mxu3 %v9129_v23  ;;  %v5291_v27 = vld [vmem:[#allocation9 + $0x110] sm:$0xff]  ;;  %v9383_v23 = vand.u32 4294901760, %v5292_v56 }
0x1723   : > { %5110 = vmatpush.msrb.mxu1 %v9159_v34  ;;  %5159 = vmatpush.msrb.mxu2 %v10667_v3  ;;  %v9393_v55 = vand.u32 4294901760, %v5291_v27 }
0x1724   : > { %5051 = vmatpush.msra.mxu0 %v9138_v26  ;;  %5214 = vmatpush.msrb.mxu3 %v9133_v17  ;;  %v9389_v26 = vsub.f32 %v5293_v40, %v9374_v5  ;;  %v5290_v17 = vld [vmem:[#allocation9 + $0x108] sm:$0xff]  ;;  %v9401_v31 = vsub.f32 %v5292_v56, %v9383_v23 }
0x1725   : > { %5112 = vmatpush.msrb.mxu1 %v9172_v13  ;;  %5163 = vmatpush.msrb.mxu2 %v10669_v19  ;;  %v9403_v6 = vand.u32 4294901760, %v5290_v17  ;;  %v9412_v22 = vsub.f32 %v5291_v27, %v9393_v55  ;;  %v10673_v40 = vld [vmem:[#allocation22_spill] sm:$0xff]  ;;  %v9499_v19 = vand.u32 4294901760, %v5283_v37 }
0x1726   : > { %5054 = vmatpush.msra.mxu0 %v9147_v63  ;;  %5216 = vmatpush.msrb.mxu3 %v9142_v0  ;;  %v10671_v0 = vand.u32 4294901760, %v9208_v49  ;;  %v5289_v63 = vld [vmem:[#allocation9 + $0x100] sm:$0xff]  ;;  %v5282_v56 = vld [vmem:[#allocation9 + $0xc8] sm:$0xff] }
0x1727   : > { %5114 = vmatpush.msrb.mxu1 %v9185_v43  ;;  %5167 = vmatpush.msrb.mxu2 %v10670_v61  ;;  %v9425_v58 = vsub.f32 %v5290_v17, %v9403_v6  ;;  %v5281_v17 = vld [vmem:[#allocation9 + $0xc0] sm:$0xff] }
0x1728   : > { %5057 = vmatpush.msra.mxu0 %v10664_v39  ;;  %5218 = vmatpush.msrb.mxu3 %v9159_v34  ;;  %v10568_v34 = vand.u32 4294901760, %v9389_v26 }
0x1729   : > { %5116 = vmatpush.msrb.mxu1 %v9198_v1  ;;  %5171 = vmatpush.msrb.mxu2 %v10671_v0 }
0x172a   : > { %5060 = vmatpush.msra.mxu0 %v10666_v15  ;;  %5220 = vmatpush.msrb.mxu3 %v9172_v13  ;;  %v9414_v13 = vand.u32 4294901760, %v5289_v63 }
0x172b   : > { %5118 = vmatpush.msrb.mxu1 %v9210_v4  ;;  %5175 = vmatpush.msrb.mxu2 %v4998_v28  ;;  %v5287_v28 = vld [vmem:[#allocation9 + $0xf0] sm:$0xff]  ;;  %v4017_v57 = vpop.f32.mrf.mxu1 }
0x172c   : > { %5063 = vmatpush.msra.mxu0 %v10668_v7  ;;  %5222 = vmatpush.msrb.mxu3 %v9185_v43  ;;  %v10566_v43 = vand.u32 4294901760, %v9401_v31  ;;  %v9442_v48 = vand.u32 4294901760, %v5287_v28 }
0x172d   : > { %5120 = vmatpush.msrb.mxu1 %v9222_v9  ;;  %5179 = vmatpush.msrb.mxu2 %v5004_v8  ;;  %v5388_v8 = vsub.f32 %v9389_v26, %v10568_v34 }
0x172e   : > { %5066 = vmatpush.msra.mxu0 %v9196_v18  ;;  %5224 = vmatpush.msrb.mxu3 %v9198_v1  ;;  %v10565_v1 = vand.u32 4294901760, %v9412_v22  ;;  %v9439_v18 = vsub.f32 %v5289_v63, %v9414_v13  ;;  %v9468_v36 = vsub.f32 %v5287_v28, %v9442_v48  ;;  %v9511_v63 = vand.u32 4294901760, %v5282_v56 }
0x172f   : > { %5122 = vmatpush.msrb.mxu1 %v9235_v25  ;;  %5183 = vmatpush.msrb.mxu2 %v5010_v46  ;;  %v9453_v46 = vand.u32 4294901760, %v5286_v41  ;;  %v5389_v14 = vand.u32 4294901760, %v5388_v8 }
0x1730   : > { %5069 = vmatpush.msra.mxu0 %v9208_v49  ;;  %5226 = vmatpush.msrb.mxu3 %v9210_v4  ;;  %v5394_v4 = vsub.f32 %v9401_v31, %v10566_v43  ;;  %v10563_v49 = vand.u32 4294901760, %v9425_v58  ;;  %v10562_v52 = vand.u32 4294901760, %v9439_v18  ;;  %v10559_v3 = vand.u32 4294901760, %v9468_v36 }
0x1731   : > { %5124 = vmatpush.msrb.mxu1 %v9248_v30  ;;  %5187 = vmatpush.msrb.mxu2 %v5016_v62  ;;  %v9481_v45 = vsub.f32 %v5286_v41, %v9453_v46  ;;  %v9521_v41 = vsub.f32 %v5283_v37, %v9499_v19 }
0x1732   : > { %5072 = vmatpush.msra.mxu0 %v9220_v59  ;;  %5228 = vmatpush.msrb.mxu3 %v9222_v9  ;;  %v9459_v59 = vsub.f32 %v5288_v54, %v9433_v53  ;;  %v5400_v9 = vsub.f32 %v9412_v22, %v10565_v1  ;;  %v5406_v29 = vsub.f32 %v9425_v58, %v10563_v49 }
0x1733   : > { %5126 = vmatpush.msrb.mxu1 %v9263_v12  ;;  %5191 = vmatpush.msrb.mxu2 %v5022_v50  ;;  %v3916_v62 = vpop.f32.mrf.mxu0  ;;  %v5284_v50 = vld [vmem:[#allocation9 + $0xd8] sm:$0xff]  ;;  %v5412_v38 = vsub.f32 %v9439_v18, %v10562_v52  ;;  %v10558_v61 = vand.u32 4294901760, %v9481_v45  ;;  %v5424_v28 = vsub.f32 %v9468_v36, %v10559_v3  ;;  %v10554_v37 = vand.u32 4294901760, %v9521_v41 }
0x1734   : > { %5075 = vmatpush.msra.mxu0 %v9233_v2  ;;  %5230 = vmatpush.msrb.mxu3 %v9235_v25  ;;  %v3917_v16 = vadd.f32 %v3916_v62, %v3870_v60  ;;  %v9473_v2 = vand.u32 4294901760, %v5285_v51  ;;  %v5395_v25 = vand.u32 4294901760, %v5394_v4  ;;  %v9487_v39 = vand.u32 4294901760, %v5284_v50 }
0x1735   : > { %5128 = vmatpush.msrb.mxu1 %v9276_v44  ;;  %5195 = vmatpush.msrb.mxu2 %v5028_v32  ;;  %v4071_v32 = vpop.f32.mrf.mxu2  ;;  %v5413_v54 = vand.u32 4294901760, %v5412_v38  ;;  %v9523_v60 = vand.u32 4294901760, %v5281_v17 }
0x1736   : > { %5078 = vmatpush.msra.mxu0 %v9246_v35  ;;  %5232 = vmatpush.msrb.mxu3 %v9248_v30  ;;  %v4018_v11 = vadd.f32 %v4017_v57, %v3917_v16  ;;  %v10560_v35 = vand.u32 4294901760, %v9459_v59  ;;  %v5401_v30 = vand.u32 4294901760, %v5400_v9  ;;  %v9497_v7 = vsub.f32 %v5285_v51, %v9473_v2  ;;  %v5279_v51 = vld [vmem:[#allocation9 + $0xb0] sm:$0xff] }
0x1737   : > { %5132 = vmatmul.f32.vlgmr.msrb.gmra.mxu1 %v10673_v40  ;;  %5199 = vmatpush.msrb.mxu2 %v5034_v33  ;;  %v4110_v33 = vpop.f32.mrf.mxu3  ;;  %v9509_v0 = vsub.f32 %v5284_v50, %v9487_v39  ;;  %v9533_v16 = vsub.f32 %v5282_v56, %v9511_v63  ;;  %v9547_v40 = vsub.f32 %v5281_v17, %v9523_v60 }
0x1738   : > { %5390 = vmatpush.msra.mxu1 %v5389_v14  ;;  %5081 = vmatpush.msra.mxu0 %v9259_v21  ;;  %v4072_v15 = vadd.f32 %v4071_v32, %v4018_v11  ;;  %v5407_v21 = vand.u32 4294901760, %v5406_v29  ;;  %v4216_v14 = vpop.f32.mrf.mxu1  ;;  %v10674_v29 = vld [vmem:[#allocation21_spill] sm:$0xff]  ;;  %v9549_v32 = vand.u32 4294901760, %v5279_v51  ;;  %v5448_v17 = vsub.f32 %v9521_v41, %v10554_v37 }
0x1739   : > { %5234 = vmatpush.msrb.mxu3 %v9263_v12  ;;  %5201 = vmatmul.f32.vlgmr.msrb.gmra.mxu2 %v8836_v20  ;;  %v5418_v12 = vsub.f32 %v9459_v59, %v10560_v35  ;;  %v10556_v9 = vand.u32 4294901760, %v9509_v0  ;;  %v5305_v37 = vld [vmem:[#allocation9 + $0x180] sm:$0xff]  ;;  %v5302_v35 = vld [vmem:[#allocation9 + $0x168] sm:$0xff] }
0x173a   : > { %5396 = vmatpush.msra.mxu1 %v5395_v25  ;;  %5488 = vmatpush.msra.mxu2 %v9389_v26  ;;  %v4111_v27 = vadd.f32 %v4110_v33, %v4072_v15  ;;  %v5278_v25 = vld [vmem:[#allocation9 + $0xa8] sm:$0xff]  ;;  %v10553_v15 = vand.u32 4294901760, %v9533_v16 }
0x173b   : > { %5084 = vmatpush.msra.mxu0 %v9272_v24  ;;  %5236 = vmatpush.msrb.mxu3 %v9276_v44  ;;  %v5280_v24 = vld [vmem:[#allocation9 + $0xb8] sm:$0xff]  ;;  %v10557_v44 = vand.u32 4294901760, %v9497_v7  ;;  %v5419_v62 = vand.u32 4294901760, %v5418_v12  ;;  %v5442_v38 = vsub.f32 %v9509_v0, %v10556_v9  ;;  %v9562_v33 = vand.u32 4294901760, %v5278_v25 }
0x173c   : > { %5238 = vmatmul.f32.vlgmr.msrb.gmra.mxu3 %v8836_v20  ;;  %5402 = vmatpush.msra.mxu1 %v5401_v30  ;;  %v5430_v20 = vsub.f32 %v9481_v45, %v10558_v61  ;;  %v9535_v50 = vand.u32 4294901760, %v5280_v24  ;;  %v10552_v12 = vand.u32 4294901760, %v9547_v40 }
0x173d   : > { %5491 = vmatpush.msra.mxu2 %v9401_v31  ;;  %5541 = vmatpush.msra.mxu3 %v9374_v5  ;;  %v4179_v8 = vpop.f32.mrf.mxu0  ;;  %v5436_v11 = vsub.f32 %v9497_v7, %v10557_v44  ;;  %v5304_v44 = vld [vmem:[#allocation9 + $0x178] sm:$0xff] }
0x173e   : > { %5087 = vmatpush.msra.mxu0 %v9287_v10  ;;  %5408 = vmatpush.msra.mxu1 %v5407_v21  ;;  %v4180_v4 = vadd.f32 %v4179_v8, %v4111_v27  ;;  %v5425_v10 = vand.u32 4294901760, %v5424_v28  ;;  %v9560_v56 = vsub.f32 %v5280_v24, %v9535_v50  ;;  %v5443_v8 = vand.u32 4294901760, %v5442_v38 }
0x173f   : > { %5494 = vmatpush.msra.mxu2 %v9412_v22  ;;  %5543 = vmatpush.msra.mxu3 %v9383_v23  ;;  %v5437_v27 = vand.u32 4294901760, %v5436_v11 }
0x1740   : > { %5090 = vmatpush.msra.mxu0 %v9298_v47  ;;  %5414 = vmatpush.msra.mxu1 %v5413_v54  ;;  %v9538_v57 = vadd.f32 %v4216_v14, %v4180_v4  ;;  %v5431_v47 = vand.u32 4294901760, %v5430_v20  ;;  %v9573_v54 = vsub.f32 %v5279_v51, %v9549_v32  ;;  %v5454_v20 = vsub.f32 %v9533_v16, %v10553_v15  ;;  %v5309_v14 = vld [vmem:[#allocation9 + $0x1a0] sm:$0xff] }
0x1741   : > { %5093 = vmatmul.f32.vlgmr.msra.gmra.mxu0 %v10674_v29  ;;  %5497 = vmatpush.msra.mxu2 %v9425_v58  ;;  %v10550_v4 = vand.u32 4294901760, %v9560_v56  ;;  %v9584_v51 = vsub.f32 %v5278_v25, %v9562_v33  ;;  %v5460_v29 = vsub.f32 %v9547_v40, %v10552_v12  ;;  %v9595_v25 = vand.u32 4294901760, %v5309_v14  ;;  %v4257_v12 = vpop.f32.mrf.mxu2 }
0x1742   : > { %5345 = vmatpush.msrb.mxu0 %v9374_v5  ;;  %5545 = vmatpush.msra.mxu3 %v9393_v55  ;;  %v5250_v30 = vmul.f32 0.044715, %v9538_v57  ;;  %v5246_v28 = vmul.f32 0.7978846, %v9538_v57  ;;  %v10551_v11 = vand.u32 4294901760, %v9573_v54 }
0x1743   : > { %5420 = vmatpush.msra.mxu1 %v5419_v62  ;;  %5500 = vmatpush.msra.mxu2 %v9439_v18  ;;  %v5466_v38 = vsub.f32 %v9560_v56, %v10550_v4  ;;  %v3871_v4 = vperm.slane %v9419_v42, 1 }
0x1744   : > { %5347 = vmatpush.msrb.mxu0 %v9383_v23  ;;  %5547 = vmatpush.msra.mxu3 %v9403_v6  ;;  %v5254_v21 = vmul.f32 %v5250_v30, %v9538_v57  ;;  %v5455_v30 = vand.u32 4294901760, %v5454_v20  ;;  %v9613_v20 = vsub.f32 %v5309_v14, %v9595_v25 }
0x1745   : > { %5426 = vmatpush.msra.mxu1 %v5425_v10  ;;  %5503 = vmatpush.msra.mxu2 %v9459_v59  ;;  %v5449_v10 = vand.u32 4294901760, %v5448_v17 }
0x1746   : > { %5349 = vmatpush.msrb.mxu0 %v9393_v55  ;;  %5549 = vmatpush.msra.mxu3 %v9414_v13  ;;  %v5258_v24 = vadd.f32 1.0, %v5254_v21  ;;  %v10555_v21 = vand.u32 4294901760, %v9584_v51 }
0x1747   : > { %5432 = vmatpush.msra.mxu1 %v5431_v47  ;;  %5506 = vmatpush.msra.mxu2 %v9468_v36  ;;  %v5308_v47 = vld [vmem:[#allocation9 + $0x198] sm:$0xff] }
0x1748   : > { %5351 = vmatpush.msrb.mxu0 %v9403_v6  ;;  %5551 = vmatpush.msra.mxu3 %v9433_v53  ;;  %v5262_v62 = vmul.f32 %v5258_v24, %v5246_v28  ;;  %v9604_v17 = vand.u32 4294901760, %v5308_v47  ;;  %v5461_v28 = vand.u32 4294901760, %v5460_v29  ;;  %v5472_v24 = vsub.f32 %v9573_v54, %v10551_v11 }
0x1749   : > { %5438 = vmatpush.msra.mxu1 %v5437_v27  ;;  %5509 = vmatpush.msra.mxu2 %v9481_v45  ;;  %v5307_v27 = vld [vmem:[#allocation9 + $0x190] sm:$0xff]  ;;  %v5478_v29 = vsub.f32 %v9584_v51, %v10555_v21  ;;  %v10561_v21 = vand.u32 4294901760, %v9613_v20 }
0x174a   : > { %5353 = vmatpush.msrb.mxu0 %v9414_v13  ;;  %5553 = vmatpush.msra.mxu3 %v9442_v48  ;;  %7110 = vtanh.f32 %v5262_v62  ;;  %v9615_v62 = vand.u32 4294901760, %v5307_v27  ;;  %v9625_v14 = vsub.f32 %v5308_v47, %v9604_v17  ;;  %v4258_v47 = vadd.f32 %v4257_v12, %v3871_v4  ;;  %v5303_v4 = vld [vmem:[#allocation9 + $0x170] sm:$0xff] }
0x174b   : > { %5444 = vmatpush.msra.mxu1 %v5443_v8  ;;  %5512 = vmatpush.msra.mxu2 %v9497_v7  ;;  %v5306_v8 = vld [vmem:[#allocation9 + $0x188] sm:$0xff]  ;;  %v5479_v61 = vand.u32 4294901760, %v5478_v29  ;;  %v9647_v12 = vand.u32 4294901760, %v5304_v44  ;;  %v9665_v52 = vand.u32 4294901760, %v5303_v4 }
0x174c   : > { %5355 = vmatpush.msrb.mxu0 %v9433_v53  ;;  %5555 = vmatpush.msra.mxu3 %v9453_v46  ;;  %v9627_v15 = vand.u32 4294901760, %v5306_v8  ;;  %v9634_v9 = vsub.f32 %v5307_v27, %v9615_v62  ;;  %v10564_v3 = vand.u32 4294901760, %v9625_v14 }
0x174d   : > { %5450 = vmatpush.msra.mxu1 %v5449_v10  ;;  %5515 = vmatpush.msra.mxu2 %v9509_v0  ;;  %v5467_v10 = vand.u32 4294901760, %v5466_v38  ;;  %10676 = vst [vmem:[#allocation25_spill] sm:$0xff] %v9647_v12  ;;  %v9690_v34 = vsub.f32 %v5303_v4, %v9665_v52 }
0x174e   : > { %5357 = vmatpush.msrb.mxu0 %v9442_v48  ;;  %5557 = vmatpush.msra.mxu3 %v9473_v2  ;;  %v9644_v27 = vsub.f32 %v5306_v8, %v9627_v15  ;;  %v10567_v29 = vand.u32 4294901760, %v9634_v9  ;;  %v4451_v49 = vpop.f32.mrf.mxu1 }
0x174f   : > { %5456 = vmatpush.msra.mxu1 %v5455_v30  ;;  %5518 = vmatpush.msra.mxu2 %v9521_v41  ;;  %v5473_v30 = vand.u32 4294901760, %v5472_v24  ;;  %v5242_v24 = vmul.f32 0.5, %v9538_v57  ;;  %v5729_v57 = vsub.f32 %v9613_v20, %v10561_v21  ;;  %10679 = vst [vmem:[#allocation26_spill] sm:$0xff] %v9690_v34 }
0x1750   : > { %v7111_v11 = vpop.eup %7110  ;;  %5359 = vmatpush.msrb.mxu0 %v9453_v46  ;;  %5559 = vmatpush.msra.mxu3 %v9487_v39  ;;  %10675 = vst [vmem:[#allocation24_spill] sm:$0xff] %v9644_v27  ;;  %v10569_v21 = vand.u32 4294901760, %v9644_v27  ;;  %v5741_v1 = vsub.f32 %v9634_v9, %v10567_v29 }
0x1751   : > { %5462 = vmatpush.msra.mxu1 %v5461_v28  ;;  %5521 = vmatpush.msra.mxu2 %v9533_v16  ;;  %v5270_v38 = vadd.f32 1.0, %v7111_v11  ;;  %v9637_v28 = vand.u32 4294901760, %v5305_v37  ;;  %v4358_v11 = vpop.f32.mrf.mxu3 }
0x1752   : > { %5361 = vmatpush.msrb.mxu0 %v9473_v2  ;;  %5561 = vmatpush.msra.mxu3 %v9499_v19  ;;  %v4359_v8 = vadd.f32 %v4358_v11, %v4258_v47  ;;  %v9672_v47 = vand.u32 4294901760, %v5302_v35  ;;  %v5301_v11 = vld [vmem:[#allocation9 + $0x160] sm:$0xff]  ;;  %v5747_v29 = vsub.f32 %v9644_v27, %v10569_v21  ;;  %v5742_v21 = vand.u32 4294901760, %v5741_v1 }
0x1753   : > { %5468 = vmatpush.msra.mxu1 %v5467_v10  ;;  %5524 = vmatpush.msra.mxu2 %v9547_v40  ;;  %v5274_v10 = vmul.f32 %v5270_v38, %v5242_v24  ;;  %v5735_v38 = vsub.f32 %v9625_v14, %v10564_v3  ;;  %v5730_v3 = vand.u32 4294901760, %v5729_v57 }
0x1754   : > { %5363 = vmatpush.msrb.mxu0 %v9487_v39  ;;  %5563 = vmatpush.msra.mxu3 %v9511_v63  ;;  %v5748_v1 = vand.u32 4294901760, %v5747_v29  ;;  %v5296_v29 = vld [vmem:[#allocation9 + $0x138] sm:$0xff] }
0x1755   : > { %5474 = vmatpush.msra.mxu1 %v5473_v30  ;;  %5527 = vmatpush.msra.mxu2 %v9560_v56  ;;  %v9657_v30 = vsub.f32 %v5305_v37, %v9637_v28  ;;  %v9670_v37 = vsub.f32 %v5304_v44, %v9647_v12  ;;  %v5736_v43 = vand.u32 4294901760, %v5735_v38  ;;  %v5299_v38 = vld [vmem:[#allocation9 + $0x150] sm:$0xff] }
0x1756   : > { %5365 = vmatpush.msrb.mxu0 %v9499_v19  ;;  %5565 = vmatpush.msra.mxu3 %v9523_v60  ;;  %v4520_v57 = vpop.f32.mrf.mxu2 }
0x1757   : > { %5480 = vmatpush.msra.mxu1 %v5479_v61  ;;  %5530 = vmatpush.msra.mxu2 %v9573_v54  ;;  %10677 = vst [vmem:[#allocation22_spill] sm:$0xff] %v9657_v30 }
0x1758   : > { %5367 = vmatpush.msrb.mxu0 %v9511_v63  ;;  %5567 = vmatpush.msra.mxu3 %v9535_v50  ;;  %v4412_v24 = vpop.f32.mrf.mxu0  ;;  %10678 = vst [vmem:[#allocation21_spill] sm:$0xff] %v9670_v37 }
0x1759   : > { %5649 = vmatpush.msrb.mxu1 %v9374_v5  ;;  %5533 = vmatpush.msra.mxu2 %v9584_v51  ;;  %v4413_v61 = vadd.f32 %v4412_v24, %v4359_v8  ;;  %v9679_v5 = vand.u32 4294901760, %v5274_v10  ;;  %v5300_v24 = vld [vmem:[#allocation9 + $0x158] sm:$0xff]  ;;  %v9698_v8 = vsub.f32 %v5302_v35, %v9672_v47  ;;  %v4557_v42 = vpop.f32.mrf.mxu3  ;;  %v10681_v35 = vand.u32 4294901760, %v9657_v30 }
0x175a   : > { %5369 = vmatpush.msrb.mxu0 %v9523_v60  ;;  %5569 = vmatpush.msra.mxu3 %v9549_v32  ;;  %v9704_v27 = vand.u32 4294901760, %v5300_v24 }
0x175b   : > { %5651 = vmatpush.msrb.mxu1 %v9383_v23  ;;  %5686 = vmatpush.msrb.mxu2 %v9595_v25  ;;  %v4452_v44 = vadd.f32 %v4451_v49, %v4413_v61  ;;  %v9692_v23 = vand.u32 4294901760, %v5301_v11  ;;  %10680 = vst [vmem:[#allocation27_spill] sm:$0xff] %v9698_v8  ;;  %v9702_v4 = vsub.f32 %v5274_v10, %v9679_v5  ;;  %v9718_v61 = vand.u32 4294901760, %v5299_v38 }
0x175c   : > { %5371 = vmatpush.msrb.mxu0 %v9535_v50  ;;  %5571 = vmatpush.msra.mxu3 %v9562_v33  ;;  %v9731_v10 = vsub.f32 %v5300_v24, %v9704_v27 }
0x175d   : > { %5653 = vmatpush.msrb.mxu1 %v9393_v55  ;;  %5688 = vmatpush.msrb.mxu2 %v9604_v17  ;;  %v4521_v49 = vadd.f32 %v4520_v57, %v4452_v44  ;;  %v5753_v44 = vsub.f32 %v9657_v30, %v10681_v35  ;;  %v9716_v57 = vsub.f32 %v5301_v11, %v9692_v23  ;;  %v5297_v35 = vld [vmem:[#allocation9 + $0x140] sm:$0xff]  ;;  %v5378_v11 = vand.u32 4294901760, %v9702_v4 }
0x175e   : > { %5731 = vmatpush.msrb.mxu3 %v5730_v3  ;;  %5373 = vmatpush.msrb.mxu0 %v9549_v32  ;;  %v5298_v3 = vld [vmem:[#allocation9 + $0x148] sm:$0xff]  ;;  %v9745_v30 = vsub.f32 %v5299_v38, %v9718_v61 }
0x175f   : > { %5655 = vmatpush.msrb.mxu1 %v9403_v6  ;;  %5690 = vmatpush.msrb.mxu2 %v9615_v62  ;;  %v9708_v55 = vadd.f32 %v4557_v42, %v4521_v49  ;;  %v10682_v6 = vand.u32 4294901760, %v9389_v26  ;;  %v10683_v49 = vand.u32 4294901760, %v9670_v37  ;;  %v9733_v26 = vand.u32 4294901760, %v5298_v3 }
0x1760   : > { %5737 = vmatpush.msrb.mxu3 %v5736_v43  ;;  %5375 = vmatpush.msrb.mxu0 %v9562_v33  ;;  %v5379_v38 = vsub.f32 %v9702_v4, %v5378_v11 }
0x1761   : > { %5657 = vmatpush.msrb.mxu1 %v9414_v13  ;;  %v5251_v42 = vmul.f32 0.044715, %v9708_v55  ;;  %v5759_v43 = vsub.f32 %v9670_v37, %v10683_v49  ;;  %5692 = vmatpush.msrb.mxu2 %v9627_v15  ;;  %v10684_v13 = vand.u32 4294901760, %v9401_v31  ;;  %v5754_v49 = vand.u32 4294901760, %v5753_v44 }
0x1762   : > { %5582 = vmatpush.msra.mxu0 %v10682_v6  ;;  %5743 = vmatpush.msrb.mxu3 %v5742_v21  ;;  %v10685_v21 = vand.u32 4294901760, %v9690_v34  ;;  %v9747_v31 = vand.u32 4294901760, %v5297_v35  ;;  %v10686_v44 = vand.u32 4294901760, %v9412_v22  ;;  %v5295_v22 = vld [vmem:[#allocation9 + $0x130] sm:$0xff] }
0x1763   : > { %5659 = vmatpush.msrb.mxu1 %v9433_v53  ;;  %v5255_v6 = vmul.f32 %v5251_v42, %v9708_v55  ;;  %5694 = vmatpush.msrb.mxu2 %v9637_v28  ;;  %v5247_v53 = vmul.f32 0.7978846, %v9708_v55  ;;  %v10687_v42 = vand.u32 4294901760, %v9698_v8 }
0x1764   : > { %5586 = vmatpush.msra.mxu0 %v10684_v13  ;;  %5749 = vmatpush.msrb.mxu3 %v5748_v1  ;;  %v5765_v37 = vsub.f32 %v9690_v34, %v10685_v21  ;;  %v5760_v1 = vand.u32 4294901760, %v5759_v43  ;;  %v9763_v34 = vand.u32 4294901760, %v5296_v29  ;;  %v10688_v43 = vand.u32 4294901760, %v9425_v58 }
0x1765   : > { %v5259_v13 = vadd.f32 1.0, %v5255_v6  ;;  %5482 = vmatmul.f32.vlgmr.msra.gmra.mxu1 %v9679_v5  ;;  %v5771_v21 = vsub.f32 %v9698_v8, %v10687_v42  ;;  %5696 = vmatpush.msrb.mxu2 %v9647_v12  ;;  %v9761_v6 = vsub.f32 %v5298_v3, %v9733_v26  ;;  %v10689_v42 = vand.u32 4294901760, %v9716_v57  ;;  %v5294_v12 = vld [vmem:[#allocation9 + $0x128] sm:$0xff] }
0x1766   : > { %5590 = vmatpush.msra.mxu0 %v10686_v44  ;;  %5661 = vmatpush.msrb.mxu1 %v9442_v48  ;;  %v5766_v48 = vand.u32 4294901760, %v5765_v37  ;;  %v5788_v3 = vand.u32 4294901760, %v9745_v30  ;;  %v9774_v8 = vsub.f32 %v5297_v35, %v9747_v31  ;;  %v9777_v58 = vand.u32 4294901760, %v5295_v22 }
0x1767   : > { %v5263_v44 = vmul.f32 %v5259_v13, %v5247_v53  ;;  %5755 = vmatpush.msrb.mxu3 %v5754_v49  ;;  %5536 = vmatmul.f32.vlgmr.msra.gmra.mxu2 %v9702_v4  ;;  %v5777_v24 = vsub.f32 %v9716_v57, %v10689_v42  ;;  %v5772_v4 = vand.u32 4294901760, %v5771_v21  ;;  %v5380_v37 = vand.u32 4294901760, %v5379_v38 }
0x1768   : > { %5594 = vmatpush.msra.mxu0 %v10688_v43  ;;  %5663 = vmatpush.msrb.mxu1 %v9453_v46  ;;  %v10690_v46 = vand.u32 4294901760, %v9439_v18  ;;  %v10691_v49 = vand.u32 4294901760, %v9731_v10  ;;  %v5794_v35 = vand.u32 4294901760, %v9761_v6  ;;  %v9786_v13 = vsub.f32 %v5296_v29, %v9763_v34 }
0x1769   : > { %7112 = vtanh.f32 %v5263_v44  ;;  %5698 = vmatpush.msrb.mxu2 %v9665_v52  ;;  %5761 = vmatpush.msrb.mxu3 %v5760_v1  ;;  %v9790_v1 = vand.u32 4294901760, %v5294_v12  ;;  %v10692_v18 = vand.u32 4294901760, %v9459_v59  ;;  %v5789_v21 = vsub.f32 %v9745_v30, %v5788_v3 }
0x176a   : > { %5575 = vmatmul.f32.vlgmr.msra.gmra.mxu3 %v5378_v11  ;;  %5598 = vmatpush.msra.mxu0 %v10690_v46  ;;  %v5783_v53 = vsub.f32 %v9731_v10, %v10691_v49  ;;  %v5778_v11 = vand.u32 4294901760, %v5777_v24  ;;  %v5800_v38 = vand.u32 4294901760, %v9774_v8  ;;  %v5795_v59 = vsub.f32 %v9761_v6, %v5794_v35 }
0x176b   : > { %5665 = vmatpush.msrb.mxu1 %v9473_v2  ;;  %5700 = vmatpush.msrb.mxu2 %v9672_v47  ;;  %v9801_v2 = vsub.f32 %v5295_v22, %v9777_v58  ;;  %v5806_v24 = vand.u32 4294901760, %v9786_v13  ;;  %v10693_v43 = vand.u32 4294901760, %v9468_v36  ;;  %v10696_v49 = vand.u32 4294901760, %v9509_v0 }
0x176c   : > { %5767 = vmatpush.msrb.mxu3 %v5766_v48  ;;  %5602 = vmatpush.msra.mxu0 %v10692_v18  ;;  %v5784_v29 = vand.u32 4294901760, %v5783_v53  ;;  %v5790_v48 = vand.u32 4294901760, %v5789_v21  ;;  %v5801_v42 = vsub.f32 %v9774_v8, %v5800_v38  ;;  %v10698_v18 = vand.u32 4294901760, %v9533_v16 }
0x176d   : > { %5667 = vmatpush.msrb.mxu1 %v9487_v39  ;;  %5702 = vmatpush.msrb.mxu2 %v9692_v23  ;;  %v9811_v39 = vsub.f32 %v5294_v12, %v9790_v1  ;;  %v5812_v36 = vand.u32 4294901760, %v9801_v2  ;;  %v5796_v12 = vand.u32 4294901760, %v5795_v59  ;;  %v5807_v46 = vsub.f32 %v9786_v13, %v5806_v24 }
0x176e   : > { %5773 = vmatpush.msrb.mxu3 %v5772_v4  ;;  %5381 = vmatmul.f32.vlgmr.msrb.gmra.mxu0 %v5380_v37  ;;  %v10694_v4 = vand.u32 4294901760, %v9481_v45  ;;  %v10695_v37 = vand.u32 4294901760, %v9497_v7  ;;  %v10700_v16 = vand.u32 4294901760, %v9613_v20  ;;  %v10703_v59 = vand.u32 4294901760, %v9573_v54 }
0x176f   : > { %v7113_v44 = vpop.eup %7112  ;;  %5606 = vmatpush.msra.mxu0 %v10693_v43  ;;  %5669 = vmatpush.msrb.mxu1 %v9499_v19  ;;  %v5243_v19 = vmul.f32 0.5, %v9708_v55  ;;  %v5818_v45 = vand.u32 4294901760, %v9811_v39  ;;  %v5802_v55 = vand.u32 4294901760, %v5801_v42  ;;  %v5813_v53 = vsub.f32 %v9801_v2, %v5812_v36  ;;  %v5324_v42 = vld [vmem:[#allocation9 + $0x218] sm:$0xff] }
0x1770   : > { %v5271_v22 = vadd.f32 1.0, %v7113_v44  ;;  %5704 = vmatpush.msrb.mxu2 %v9704_v27  ;;  %5779 = vmatpush.msrb.mxu3 %v5778_v11  ;;  %v5808_v7 = vand.u32 4294901760, %v5807_v46  ;;  %v10704_v44 = vand.u32 4294901760, %v9634_v9  ;;  %v9904_v46 = vand.u32 4294901760, %v5324_v42 }
0x1771   : > { %5610 = vmatpush.msra.mxu0 %v10694_v4  ;;  %5671 = vmatpush.msrb.mxu1 %v9511_v63  ;;  %v5819_v0 = vsub.f32 %v9811_v39, %v5818_v45  ;;  %v5814_v11 = vand.u32 4294901760, %v5813_v53 }
0x1772   : > { %5706 = vmatpush.msrb.mxu2 %v9718_v61  ;;  %5785 = vmatpush.msrb.mxu3 %v5784_v29  ;;  %v5275_v63 = vmul.f32 %v5271_v22, %v5243_v19  ;;  %v10709_v22 = vld [vmem:[#allocation22_spill] sm:$0xff] }
0x1773   : > { %5614 = vmatpush.msra.mxu0 %v10695_v37  ;;  %5673 = vmatpush.msrb.mxu1 %v9523_v60  ;;  %v10697_v60 = vand.u32 4294901760, %v9521_v41  ;;  %v10699_v41 = vand.u32 4294901760, %v9547_v40  ;;  %v10702_v40 = vand.u32 4294901760, %v9625_v14  ;;  %v5323_v37 = vld [vmem:[#allocation9 + $0x210] sm:$0xff] }
0x1774   : > { %5708 = vmatpush.msrb.mxu2 %v9733_v26  ;;  %5791 = vmatpush.msrb.mxu3 %v5790_v48  ;;  %v9915_v53 = vand.u32 4294901760, %v5323_v37 }
0x1775   : > { %5618 = vmatpush.msra.mxu0 %v10696_v49  ;;  %5675 = vmatpush.msrb.mxu1 %v9535_v50  ;;  %v9845_v50 = vand.u32 4294901760, %v5275_v63 }
0x1776   : > { %5710 = vmatpush.msrb.mxu2 %v9747_v31  ;;  %5797 = vmatpush.msrb.mxu3 %v5796_v12 }
0x1777   : > { %5622 = vmatpush.msra.mxu0 %v10697_v60  ;;  %5677 = vmatpush.msrb.mxu1 %v9549_v32  ;;  %v5820_v32 = vand.u32 4294901760, %v5819_v0  ;;  %v9857_v21 = vsub.f32 %v5275_v63, %v9845_v50  ;;  %v5322_v63 = vld [vmem:[#allocation9 + $0x208] sm:$0xff]  ;;  %v9920_v60 = vsub.f32 %v5324_v42, %v9904_v46  ;;  %v5321_v0 = vld [vmem:[#allocation9 + $0x200] sm:$0xff] }
0x1778   : > { %5712 = vmatpush.msrb.mxu2 %v9763_v34  ;;  %5803 = vmatpush.msrb.mxu3 %v5802_v55  ;;  %v10716_v55 = vld [vmem:[#allocation27_spill] sm:$0xff] }
0x1779   : > { %5626 = vmatpush.msra.mxu0 %v10698_v18  ;;  %5679 = vmatpush.msrb.mxu1 %v9562_v33  ;;  %v10701_v33 = vand.u32 4294901760, %v9560_v56  ;;  %v5719_v29 = vand.u32 4294901760, %v9857_v21  ;;  %v10705_v56 = vand.u32 4294901760, %v9584_v51  ;;  %v5325_v51 = vld [vmem:[#allocation9 + $0x220] sm:$0xff]  ;;  %v10717_v49 = vand.u32 4294901760, %v10716_v55 }
0x177a   : > { %5714 = vmatpush.msrb.mxu2 %v9777_v58  ;;  %5809 = vmatpush.msrb.mxu3 %v5808_v7  ;;  %v10718_v18 = vand.u32 4294901760, %v9716_v57 }
0x177b   : > { %5681 = vmatmul.f32.vlgmr.msrb.gmra.mxu1 %v9679_v5  ;;  %5630 = vmatpush.msra.mxu0 %v10699_v41  ;;  %v5720_v54 = vsub.f32 %v9857_v21, %v5719_v29  ;;  %v5320_v41 = vld [vmem:[#allocation9 + $0x1f8] sm:$0xff]  ;;  %v4792_v42 = vpop.f32.mrf.mxu3 }
0x177c   : > { %5882 = vmatpush.msra.mxu1 %v9595_v25  ;;  %5716 = vmatpush.msrb.mxu2 %v9790_v1 }
0x177d   : > { %5815 = vmatpush.msrb.mxu3 %v5814_v11  ;;  %5634 = vmatpush.msra.mxu0 %v10701_v33  ;;  %v5721_v48 = vand.u32 4294901760, %v5720_v54  ;;  %v9925_v11 = vand.u32 4294901760, %v5322_v63  ;;  %v9934_v33 = vsub.f32 %v5323_v37, %v9915_v53 }
0x177e   : > { %5923 = vmatpush.msra.mxu2 %v10700_v16  ;;  %5884 = vmatpush.msra.mxu1 %v9604_v17  ;;  %v10719_v16 = vand.u32 4294901760, %v9731_v10 }
0x177f   : > { %5821 = vmatpush.msrb.mxu3 %v5820_v32  ;;  %5638 = vmatpush.msra.mxu0 %v10703_v59  ;;  %v4699_v32 = vpop.f32.mrf.mxu1  ;;  %v10599_v59 = vand.u32 4294901760, %v9920_v60 }
0x1780   : > { %5927 = vmatpush.msra.mxu2 %v10702_v40  ;;  %5886 = vmatpush.msra.mxu1 %v9615_v62  ;;  %v9936_v40 = vand.u32 4294901760, %v5321_v0 }
0x1781   : > { %5990 = vmatpush.msra.mxu3 %v9595_v25  ;;  %5642 = vmatpush.msra.mxu0 %v10705_v56  ;;  %v10706_v25 = vld [vmem:[#allocation24_spill] sm:$0xff]  ;;  %v9947_v56 = vand.u32 4294901760, %v5320_v41 }
0x1782   : > { %5931 = vmatpush.msra.mxu2 %v10704_v44  ;;  %5888 = vmatpush.msra.mxu1 %v9627_v15  ;;  %v10707_v43 = vand.u32 4294901760, %v10706_v25  ;;  %v5319_v44 = vld [vmem:[#allocation9 + $0x1f0] sm:$0xff] }
0x1783   : > { %5992 = vmatpush.msra.mxu3 %v9604_v17  ;;  %5644 = vmatmul.f32.vlgmr.msra.gmra.mxu0 %v9679_v5  ;;  %v10708_v17 = vld [vmem:[#allocation25_spill] sm:$0xff]  ;;  %v10710_v5 = vand.u32 4294901760, %v10709_v22 }
0x1784   : > { %5823 = vmatmul.f32.vlgmr.msrb.gmra.mxu3 %v9845_v50  ;;  %5890 = vmatpush.msra.mxu1 %v9637_v28 }
0x1785   : > { %5829 = vmatpush.msrb.mxu0 %v9613_v20  ;;  %5935 = vmatpush.msra.mxu2 %v10707_v43  ;;  %v10711_v20 = vld [vmem:[#allocation21_spill] sm:$0xff]  ;;  %v4753_v43 = vpop.f32.mrf.mxu2 }
0x1786   : > { %5994 = vmatpush.msra.mxu3 %v9615_v62  ;;  %5892 = vmatpush.msra.mxu1 %v10708_v17  ;;  %v10712_v4 = vand.u32 4294901760, %v10711_v20  ;;  %v9896_v62 = vand.u32 4294901760, %v5325_v51 }
0x1787   : > { %5832 = vmatpush.msrb.mxu0 %v9625_v14  ;;  %5939 = vmatpush.msra.mxu2 %v10710_v5  ;;  %v10713_v14 = vld [vmem:[#allocation23_spill] sm:$0xff] }
0x1788   : > { %5996 = vmatpush.msra.mxu3 %v9627_v15  ;;  %5894 = vmatpush.msra.mxu1 %v9665_v52  ;;  %v3872_v19 = vperm.slane %v10713_v14, 2  ;;  %v10714_v15 = vld [vmem:[#allocation26_spill] sm:$0xff] }
0x1789   : > { %5835 = vmatpush.msrb.mxu0 %v9634_v9  ;;  %5943 = vmatpush.msra.mxu2 %v10712_v4  ;;  %v10715_v12 = vand.u32 4294901760, %v10714_v15  ;;  %v4598_v9 = vpop.f32.mrf.mxu0 }
0x178a   : > { %5998 = vmatpush.msra.mxu3 %v9637_v28  ;;  %5896 = vmatpush.msra.mxu1 %v9672_v47  ;;  %v9910_v28 = vsub.f32 %v5325_v51, %v9896_v62  ;;  %v4599_v7 = vadd.f32 %v4598_v9, %v3872_v19  ;;  %v6076_v51 = vsub.f32 %v9920_v60, %v10599_v59 }
0x178b   : > { %5838 = vmatpush.msrb.mxu0 %v10706_v25  ;;  %5947 = vmatpush.msra.mxu2 %v10715_v12  ;;  %v5318_v25 = vld [vmem:[#allocation9 + $0x1e8] sm:$0xff] }
0x178c   : > { %6000 = vmatpush.msra.mxu3 %v10708_v17  ;;  %5722 = vmatmul.f32.vlgmr.msrb.gmra.mxu2 %v5721_v48  ;;  %v9961_v17 = vand.u32 4294901760, %v5319_v44  ;;  %v9975_v5 = vand.u32 4294901760, %v5318_v25  ;;  %v5316_v48 = vld [vmem:[#allocation9 + $0x1d8] sm:$0xff]  ;;  %v6077_v14 = vand.u32 4294901760, %v6076_v51  ;;  %v5311_v51 = vld [vmem:[#allocation9 + $0x1b0] sm:$0xff] }
0x178d   : > { %5841 = vmatpush.msrb.mxu0 %v10709_v22  ;;  %5898 = vmatpush.msra.mxu1 %v9692_v23  ;;  %v5317_v22 = vld [vmem:[#allocation9 + $0x1e0] sm:$0xff]  ;;  %v10003_v12 = vand.u32 4294901760, %v5316_v48 }
0x178e   : > { %5951 = vmatpush.msra.mxu2 %v10717_v49  ;;  %6002 = vmatpush.msra.mxu3 %v9665_v52  ;;  %v10600_v52 = vand.u32 4294901760, %v9910_v28  ;;  %v5314_v49 = vld [vmem:[#allocation9 + $0x1c8] sm:$0xff] }
0x178f   : > { %5844 = vmatpush.msrb.mxu0 %v10711_v20  ;;  %5900 = vmatpush.msra.mxu1 %v9704_v27  ;;  %v9987_v20 = vsub.f32 %v5319_v44, %v9961_v17 }
0x1790   : > { %5955 = vmatpush.msra.mxu2 %v10718_v18  ;;  %6004 = vmatpush.msra.mxu3 %v9672_v47  ;;  %v4700_v47 = vadd.f32 %v4699_v32, %v4599_v7  ;;  %v6070_v54 = vsub.f32 %v9910_v28, %v10600_v52  ;;  %v10029_v18 = vsub.f32 %v5316_v48, %v10003_v12  ;;  %v10034_v32 = vand.u32 4294901760, %v5314_v49 }
0x1791   : > { %5847 = vmatpush.msrb.mxu0 %v10714_v15  ;;  %5902 = vmatpush.msra.mxu1 %v9718_v61  ;;  %v10001_v15 = vsub.f32 %v5318_v25, %v9975_v5 }
0x1792   : > { %5959 = vmatpush.msra.mxu2 %v10719_v16  ;;  %6006 = vmatpush.msra.mxu3 %v9692_v23  ;;  %v9945_v23 = vsub.f32 %v5322_v63, %v9925_v11  ;;  %v10592_v63 = vand.u32 4294901760, %v9987_v20  ;;  %v10058_v48 = vsub.f32 %v5314_v49, %v10034_v32 }
0x1793   : > { %5850 = vmatpush.msrb.mxu0 %v10716_v55  ;;  %5904 = vmatpush.msra.mxu1 %v9733_v26 }
0x1794   : > { %5963 = vmatpush.msra.mxu2 %v5788_v3  ;;  %6008 = vmatpush.msra.mxu3 %v9704_v27  ;;  %v10597_v27 = vand.u32 4294901760, %v9934_v33  ;;  %v9959_v3 = vsub.f32 %v5321_v0, %v9936_v40  ;;  %v10591_v0 = vand.u32 4294901760, %v10001_v15 }
0x1795   : > { %5853 = vmatpush.msrb.mxu0 %v9716_v57  ;;  %5906 = vmatpush.msra.mxu1 %v9747_v31  ;;  %v4754_v57 = vadd.f32 %v4753_v43, %v4700_v47  ;;  %v6106_v47 = vsub.f32 %v9987_v20, %v10592_v63 }
0x1796   : > { %5967 = vmatpush.msra.mxu2 %v5794_v35  ;;  %6010 = vmatpush.msra.mxu3 %v9718_v61  ;;  %v10596_v61 = vand.u32 4294901760, %v9945_v23  ;;  %v9973_v35 = vsub.f32 %v5320_v41, %v9947_v56  ;;  %v6112_v43 = vsub.f32 %v10001_v15, %v10591_v0  ;;  %v5334_v0 = vld [vmem:[#allocation9 + $0x268] sm:$0xff] }
0x1797   : > { %5856 = vmatpush.msrb.mxu0 %v9731_v10  ;;  %5908 = vmatpush.msra.mxu1 %v9763_v34  ;;  %v6071_v10 = vand.u32 4294901760, %v6070_v54  ;;  %v4793_v4 = vadd.f32 %v4792_v42, %v4754_v57  ;;  %v5312_v54 = vld [vmem:[#allocation9 + $0x1b8] sm:$0xff]  ;;  %v10589_v57 = vand.u32 4294901760, %v10029_v18  ;;  %v6107_v42 = vand.u32 4294901760, %v6106_v47 }
0x1798   : > { %5971 = vmatpush.msra.mxu2 %v5800_v38  ;;  %6012 = vmatpush.msra.mxu3 %v9733_v26  ;;  %v6082_v26 = vsub.f32 %v9934_v33, %v10597_v27  ;;  %v10594_v38 = vand.u32 4294901760, %v9959_v3  ;;  %v10593_v19 = vand.u32 4294901760, %v9973_v35  ;;  %v10199_v27 = vand.u32 4294901760, %v5334_v0 }
0x1799   : > { %5859 = vmatpush.msrb.mxu0 %v9745_v30  ;;  %5910 = vmatpush.msra.mxu1 %v9777_v58  ;;  %v9989_v30 = vand.u32 4294901760, %v5317_v22 }
0x179a   : > { %5975 = vmatpush.msra.mxu2 %v5806_v24  ;;  %6014 = vmatpush.msra.mxu3 %v9747_v31  ;;  %v6088_v31 = vsub.f32 %v9945_v23, %v10596_v61  ;;  %v6083_v37 = vand.u32 4294901760, %v6082_v26  ;;  %v6094_v9 = vsub.f32 %v9959_v3, %v10594_v38  ;;  %v6100_v7 = vsub.f32 %v9973_v35, %v10593_v19 }
0x179b   : > { %5862 = vmatpush.msrb.mxu0 %v9761_v6  ;;  %5912 = vmatpush.msra.mxu1 %v9790_v1  ;;  %v5315_v6 = vld [vmem:[#allocation9 + $0x1d0] sm:$0xff]  ;;  %v10015_v55 = vsub.f32 %v5317_v22, %v9989_v30 }
0x179c   : > { %5979 = vmatpush.msra.mxu2 %v5812_v36  ;;  %6016 = vmatpush.msra.mxu3 %v9763_v34  ;;  %v4861_v24 = vpop.f32.mrf.mxu0  ;;  %v4898_v34 = vpop.f32.mrf.mxu1  ;;  %v6095_v16 = vand.u32 4294901760, %v6094_v9 }
0x179d   : > { %5916 = vmatmul.f32.vlgmr.msra.gmra.mxu1 %v5719_v29  ;;  %5865 = vmatpush.msrb.mxu0 %v9774_v8  ;;  %v4862_v36 = vadd.f32 %v4861_v24, %v4793_v4  ;;  %v10021_v29 = vand.u32 4294901760, %v5315_v6  ;;  %v10590_v44 = vand.u32 4294901760, %v10015_v55  ;;  %v5310_v4 = vld [vmem:[#allocation9 + $0x1a8] sm:$0xff] }
0x179e   : > { %6072 = vmatpush.msrb.mxu1 %v6071_v10  ;;  %5983 = vmatpush.msra.mxu2 %v5818_v45  ;;  %v6089_v45 = vand.u32 4294901760, %v6088_v31 }
0x179f   : > { %6018 = vmatpush.msra.mxu3 %v9777_v58  ;;  %5985 = vmatmul.f32.vlgmr.msra.gmra.mxu2 %v9845_v50  ;;  %v10019_v8 = vadd.f32 %v4898_v34, %v4862_v36  ;;  %v5313_v58 = vld [vmem:[#allocation9 + $0x1c0] sm:$0xff]  ;;  %v6118_v26 = vsub.f32 %v10015_v55, %v10590_v44  ;;  %v6124_v36 = vsub.f32 %v10029_v18, %v10589_v57 }
0x17a0   : > { %6078 = vmatpush.msrb.mxu1 %v6077_v14  ;;  %6170 = vmatpush.msrb.mxu2 %v9910_v28  ;;  %v10047_v25 = vand.u32 4294901760, %v5313_v58 }
0x17a1   : > { %5868 = vmatpush.msrb.mxu0 %v9786_v13  ;;  %6020 = vmatpush.msra.mxu3 %v9790_v1  ;;  %v5252_v41 = vmul.f32 0.044715, %v10019_v8  ;;  %v10045_v1 = vsub.f32 %v5315_v6, %v10021_v29  ;;  %v5248_v22 = vmul.f32 0.7978846, %v10019_v8  ;;  %v10072_v6 = vand.u32 4294901760, %v5311_v51 }
0x17a2   : > { %6022 = vmatmul.f32.vlgmr.msra.gmra.mxu3 %v9845_v50  ;;  %6084 = vmatpush.msrb.mxu1 %v6083_v37  ;;  %v6101_v50 = vand.u32 4294901760, %v6100_v7  ;;  %v10070_v24 = vsub.f32 %v5313_v58, %v10047_v25  ;;  %v10084_v37 = vand.u32 4294901760, %v5310_v4  ;;  %v6119_v9 = vand.u32 4294901760, %v6118_v26 }
0x17a3   : > { %6173 = vmatpush.msrb.mxu2 %v9920_v60  ;;  %6223 = vmatpush.msrb.mxu3 %v9896_v62  ;;  %v5256_v13 = vmul.f32 %v5252_v41, %v10019_v8  ;;  %v10588_v31 = vand.u32 4294901760, %v10045_v1  ;;  %v10094_v7 = vsub.f32 %v5311_v51, %v10072_v6  ;;  %v6125_v58 = vand.u32 4294901760, %v6124_v36 }
0x17a4   : > { %5871 = vmatpush.msrb.mxu0 %v9801_v2  ;;  %6090 = vmatpush.msrb.mxu1 %v6089_v45  ;;  %v10060_v2 = vand.u32 4294901760, %v5312_v54  ;;  %v10585_v45 = vand.u32 4294901760, %v10070_v24  ;;  %v10104_v47 = vsub.f32 %v5310_v4, %v10084_v37 }
0x17a5   : > { %6176 = vmatpush.msrb.mxu2 %v9934_v33  ;;  %6225 = vmatpush.msrb.mxu3 %v9904_v46  ;;  %v5260_v10 = vadd.f32 1.0, %v5256_v13  ;;  %v6130_v49 = vsub.f32 %v10045_v1, %v10588_v31  ;;  %10720 = vst [vmem:[#allocation24_spill] sm:$0xff] %v10094_v7  ;;  %v10584_v51 = vand.u32 4294901760, %v10094_v7 }
0x17a6   : > { %5874 = vmatpush.msrb.mxu0 %v9811_v39  ;;  %6096 = vmatpush.msrb.mxu1 %v6095_v16  ;;  %v6113_v39 = vand.u32 4294901760, %v6112_v43  ;;  %v10082_v34 = vsub.f32 %v5312_v54, %v10060_v2  ;;  %10721 = vst [vmem:[#allocation25_spill] sm:$0xff] %v10104_v47  ;;  %v5341_v54 = vld [vmem:[#allocation9 + $0x2a0] sm:$0xff]  ;;  %v6142_v43 = vsub.f32 %v10070_v24, %v10585_v45  ;;  %v4939_v45 = vpop.f32.mrf.mxu2 }
0x17a7   : > { %5877 = vmatmul.f32.vlgmr.msrb.gmra.mxu0 %v9857_v21  ;;  %6179 = vmatpush.msrb.mxu2 %v9945_v23  ;;  %v5264_v14 = vmul.f32 %v5260_v10, %v5248_v22  ;;  %v10587_v21 = vand.u32 4294901760, %v10058_v48  ;;  %v10115_v10 = vand.u32 4294901760, %v5341_v54 }
0x17a8   : > { %6027 = vmatpush.msra.mxu0 %v9896_v62  ;;  %6227 = vmatpush.msrb.mxu3 %v9915_v53  ;;  %v10583_v16 = vand.u32 4294901760, %v10082_v34  ;;  %v6143_v36 = vand.u32 4294901760, %v6142_v43 }
0x17a9   : > { %7114 = vtanh.f32 %v5264_v14  ;;  %6102 = vmatpush.msrb.mxu1 %v6101_v50  ;;  %6182 = vmatpush.msrb.mxu2 %v9959_v3  ;;  %v6136_v41 = vsub.f32 %v10058_v48, %v10587_v21  ;;  %v6131_v50 = vand.u32 4294901760, %v6130_v49  ;;  %v10586_v14 = vand.u32 4294901760, %v10104_v47  ;;  %v5336_v21 = vld [vmem:[#allocation9 + $0x278] sm:$0xff] }
0x17aa   : > { %6029 = vmatpush.msra.mxu0 %v9904_v46  ;;  %6229 = vmatpush.msrb.mxu3 %v9925_v11  ;;  %v6148_v4 = vsub.f32 %v10082_v34, %v10583_v16 }
0x17ab   : > { %6108 = vmatpush.msrb.mxu1 %v6107_v42  ;;  %6185 = vmatpush.msrb.mxu2 %v9973_v35  ;;  %v5340_v42 = vld [vmem:[#allocation9 + $0x298] sm:$0xff]  ;;  %v6137_v26 = vand.u32 4294901760, %v6136_v41 }
0x17ac   : > { %6031 = vmatpush.msra.mxu0 %v9915_v53  ;;  %6231 = vmatpush.msrb.mxu3 %v9936_v40  ;;  %v10129_v49 = vand.u32 4294901760, %v5340_v42  ;;  %v6149_v43 = vand.u32 4294901760, %v6148_v4 }
0x17ad   : > { %6114 = vmatpush.msrb.mxu1 %v6113_v39  ;;  %6188 = vmatpush.msrb.mxu2 %v9987_v20  ;;  %v5244_v39 = vmul.f32 0.5, %v10019_v8  ;;  %v10134_v8 = vsub.f32 %v5341_v54, %v10115_v10  ;;  %v5337_v54 = vld [vmem:[#allocation9 + $0x280] sm:$0xff] }
0x17ae   : > { %6033 = vmatpush.msra.mxu0 %v9925_v11  ;;  %6233 = vmatpush.msrb.mxu3 %v9947_v56 }
0x17af   : > { %v7115_v13 = vpop.eup %7114  ;;  %6120 = vmatpush.msrb.mxu1 %v6119_v9  ;;  %6191 = vmatpush.msrb.mxu2 %v10001_v15  ;;  %v6154_v9 = vsub.f32 %v10094_v7, %v10584_v51  ;;  %v6160_v51 = vsub.f32 %v10104_v47, %v10586_v14  ;;  %v10595_v14 = vand.u32 4294901760, %v10134_v8 }
0x17b0   : > { %v5272_v22 = vadd.f32 1.0, %v7115_v13  ;;  %6035 = vmatpush.msra.mxu0 %v9936_v40  ;;  %6235 = vmatpush.msrb.mxu3 %v9961_v17  ;;  %v5338_v13 = vld [vmem:[#allocation9 + $0x288] sm:$0xff] }
0x17b1   : > { %6126 = vmatpush.msrb.mxu1 %v6125_v58  ;;  %6194 = vmatpush.msrb.mxu2 %v10015_v55  ;;  %v5339_v58 = vld [vmem:[#allocation9 + $0x290] sm:$0xff]  ;;  %v10148_v4 = vand.u32 4294901760, %v5338_v13 }
0x17b2   : > { %6037 = vmatpush.msra.mxu0 %v9947_v56  ;;  %6237 = vmatpush.msrb.mxu3 %v9975_v5  ;;  %v5276_v41 = vmul.f32 %v5272_v22, %v5244_v39  ;;  %v10142_v22 = vand.u32 4294901760, %v5339_v58  ;;  %v6155_v39 = vand.u32 4294901760, %v6154_v9  ;;  %v10156_v9 = vand.u32 4294901760, %v5337_v54 }
0x17b3   : > { %6132 = vmatpush.msrb.mxu1 %v6131_v50  ;;  %6197 = vmatpush.msrb.mxu2 %v10029_v18  ;;  %v7133_v50 = vld [vmem:[#allocation11 + $0x200] ss:$8 sm:$0xf] }
0x17b4   : > { %6039 = vmatpush.msra.mxu0 %v9961_v17  ;;  %6239 = vmatpush.msrb.mxu3 %v9989_v30  ;;  %v3873_v16 = vperm.slane %v7133_v50, 3  ;;  %v10152_v50 = vand.u32 4294901760, %v5276_v41  ;;  %v10161_v57 = vsub.f32 %v5339_v58, %v10142_v22  ;;  %v6411_v58 = vsub.f32 %v10134_v8, %v10595_v14  ;;  %v5133_v14 = vpop.f32.mrf.mxu1 }
0x17b5   : > { %6138 = vmatpush.msrb.mxu1 %v6137_v26  ;;  %6200 = vmatpush.msrb.mxu2 %v10045_v1  ;;  %v10146_v26 = vsub.f32 %v5340_v42, %v10129_v49  ;;  %v5040_v42 = vpop.f32.mrf.mxu3 }
0x17b6   : > { %6041 = vmatpush.msra.mxu0 %v9975_v5  ;;  %6241 = vmatpush.msrb.mxu3 %v10003_v12  ;;  %v4940_v31 = vadd.f32 %v4939_v45, %v3873_v16  ;;  %10722 = vst [vmem:[#allocation22_spill] sm:$0xff] %v10161_v57  ;;  %v10166_v45 = vsub.f32 %v5338_v13, %v10148_v4  ;;  %v10168_v16 = vand.u32 4294901760, %v5336_v21  ;;  %v10602_v63 = vand.u32 4294901760, %v10161_v57 }
0x17b7   : > { %6144 = vmatpush.msrb.mxu1 %v6143_v36  ;;  %6203 = vmatpush.msrb.mxu2 %v10058_v48  ;;  %v6161_v36 = vand.u32 4294901760, %v6160_v51  ;;  %v10598_v44 = vand.u32 4294901760, %v10146_v26  ;;  %v5335_v51 = vld [vmem:[#allocation9 + $0x270] sm:$0xff]  ;;  %v10180_v13 = vsub.f32 %v5337_v54, %v10156_v9  ;;  %v6412_v61 = vand.u32 4294901760, %v6411_v58 }
0x17b8   : > { %6043 = vmatpush.msra.mxu0 %v9989_v30  ;;  %6243 = vmatpush.msrb.mxu3 %v10021_v29  ;;  %v10185_v38 = vand.u32 4294901760, %v5335_v51  ;;  %v10606_v54 = vand.u32 4294901760, %v10166_v45  ;;  %v6423_v58 = vsub.f32 %v10161_v57, %v10602_v63  ;;  %v10223_v57 = vsub.f32 %v5334_v0, %v10199_v27 }
0x17b9   : > { %6150 = vmatpush.msrb.mxu1 %v6149_v43  ;;  %6206 = vmatpush.msrb.mxu2 %v10070_v24  ;;  %v10176_v43 = vsub.f32 %v5276_v41, %v10152_v50  ;;  %10723 = vst [vmem:[#allocation21_spill] sm:$0xff] %v10180_v13 }
0x17ba   : > { %6045 = vmatpush.msra.mxu0 %v10003_v12  ;;  %6245 = vmatpush.msrb.mxu3 %v10034_v32  ;;  %v10210_v59 = vsub.f32 %v5335_v51, %v10185_v38 }
0x17bb   : > { %6156 = vmatpush.msrb.mxu1 %v6155_v39  ;;  %6209 = vmatpush.msrb.mxu2 %v10082_v34  ;;  %v5041_v39 = vadd.f32 %v5040_v42, %v4940_v31  ;;  %v6417_v31 = vsub.f32 %v10146_v26, %v10598_v44  ;;  %v5333_v42 = vld [vmem:[#allocation9 + $0x260] sm:$0xff] }
0x17bc   : > { %6047 = vmatpush.msra.mxu0 %v10021_v29  ;;  %6247 = vmatpush.msrb.mxu3 %v10047_v25  ;;  %v5202_v44 = vpop.f32.mrf.mxu2  ;;  %10725 = vst [vmem:[#allocation26_spill] sm:$0xff] %v10210_v59  ;;  %v10212_v52 = vand.u32 4294901760, %v5333_v42 }
0x17bd   : > { %6162 = vmatpush.msrb.mxu1 %v6161_v36  ;;  %6212 = vmatpush.msrb.mxu2 %v10094_v7  ;;  %v10194_v36 = vsub.f32 %v5336_v21, %v10168_v16  ;;  %v5332_v21 = vld [vmem:[#allocation9 + $0x258] sm:$0xff] }
0x17be   : > { %6049 = vmatpush.msra.mxu0 %v10034_v32  ;;  %6249 = vmatpush.msrb.mxu3 %v10060_v2  ;;  %v5094_v19 = vpop.f32.mrf.mxu0  ;;  %v10225_v7 = vand.u32 4294901760, %v5332_v21 }
0x17bf   : > { %6331 = vmatpush.msra.mxu1 %v9896_v62  ;;  %6215 = vmatpush.msrb.mxu2 %v10104_v47  ;;  %v5095_v41 = vadd.f32 %v5094_v19, %v5041_v39  ;;  %10724 = vst [vmem:[#allocation23_spill] sm:$0xff] %v10194_v36  ;;  %v6060_v62 = vand.u32 4294901760, %v10176_v43  ;;  %v5331_v47 = vld [vmem:[#allocation9 + $0x250] sm:$0xff]  ;;  %v5239_v51 = vpop.f32.mrf.mxu3 }
0x17c0   : > { %6051 = vmatpush.msra.mxu0 %v10047_v25  ;;  %6251 = vmatpush.msrb.mxu3 %v10072_v6  ;;  %v10240_v39 = vand.u32 4294901760, %v5331_v47 }
0x17c1   : > { %6333 = vmatpush.msra.mxu1 %v9904_v46  ;;  %6368 = vmatpush.msra.mxu2 %v10115_v10  ;;  %v5134_v19 = vadd.f32 %v5133_v14, %v5095_v41  ;;  %v6418_v46 = vand.u32 4294901760, %v6417_v31  ;;  %v6429_v41 = vsub.f32 %v10166_v45, %v10606_v54  ;;  %v6061_v63 = vsub.f32 %v10176_v43, %v6060_v62 }
0x17c2   : > { %6053 = vmatpush.msra.mxu0 %v10060_v2  ;;  %6253 = vmatpush.msrb.mxu3 %v10084_v37  ;;  %v10726_v31 = vand.u32 4294901760, %v10180_v13  ;;  %v10238_v54 = vsub.f32 %v5333_v42, %v10212_v52  ;;  %v10613_v42 = vand.u32 4294901760, %v10223_v57 }
0x17c3   : > { %6164 = vmatmul.f32.vlgmr.msrb.gmra.mxu1 %v10152_v50  ;;  %6370 = vmatpush.msra.mxu2 %v10129_v49  ;;  %v5203_v14 = vadd.f32 %v5202_v44, %v5134_v19  ;;  %v6062_v0 = vand.u32 4294901760, %v6061_v63  ;;  %v10730_v63 = vand.u32 4294901760, %v10210_v59 }
0x17c4   : > { %6335 = vmatpush.msra.mxu1 %v9915_v53  ;;  %6413 = vmatpush.msra.mxu3 %v6412_v61  ;;  %v6435_v19 = vsub.f32 %v10180_v13, %v10726_v31  ;;  %v5330_v53 = vld [vmem:[#allocation9 + $0x248] sm:$0xff]  ;;  %v6424_v61 = vand.u32 4294901760, %v6423_v58  ;;  %v5329_v31 = vld [vmem:[#allocation9 + $0x240] sm:$0xff]  ;;  %v10728_v58 = vand.u32 4294901760, %v9910_v28  ;;  %v10251_v13 = vsub.f32 %v5332_v21, %v10225_v7 }
0x17c5   : > { %6055 = vmatpush.msra.mxu0 %v10072_v6  ;;  %6218 = vmatmul.f32.vlgmr.msrb.gmra.mxu2 %v10176_v43  ;;  %v10229_v44 = vadd.f32 %v5239_v51, %v5203_v14  ;;  %v6430_v43 = vand.u32 4294901760, %v6429_v41  ;;  %v10727_v51 = vand.u32 4294901760, %v10194_v36  ;;  %v10729_v28 = vand.u32 4294901760, %v9920_v60 }
0x17c6   : > { %6337 = vmatpush.msra.mxu1 %v9925_v11  ;;  %6372 = vmatpush.msra.mxu2 %v10142_v22 }
0x17c7   : > { %6419 = vmatpush.msra.mxu3 %v6418_v46  ;;  %6057 = vmatpush.msra.mxu0 %v10084_v37  ;;  %v5253_v14 = vmul.f32 0.044715, %v10229_v44  ;;  %v6441_v11 = vsub.f32 %v10194_v36, %v10727_v51  ;;  %v10253_v46 = vand.u32 4294901760, %v5330_v53  ;;  %v6436_v51 = vand.u32 4294901760, %v6435_v19  ;;  %v5328_v36 = vld [vmem:[#allocation9 + $0x238] sm:$0xff] }
0x17c8   : > { %6257 = vmatmul.f32.vlgmr.msrb.gmra.mxu3 %v6060_v62  ;;  %6339 = vmatpush.msra.mxu1 %v9936_v40  ;;  %v6447_v62 = vsub.f32 %v10210_v59, %v10730_v63  ;;  %v10267_v40 = vand.u32 4294901760, %v5329_v31  ;;  %v5249_v19 = vmul.f32 0.7978846, %v10229_v44  ;;  %v10279_v63 = vand.u32 4294901760, %v5328_v36 }
0x17c9   : > { %6264 = vmatpush.msrb.mxu0 %v10728_v58  ;;  %6374 = vmatpush.msra.mxu2 %v10148_v4  ;;  %v5257_v41 = vmul.f32 %v5253_v14, %v10229_v44  ;;  %v10265_v58 = vsub.f32 %v5331_v47, %v10240_v39  ;;  %v6442_v60 = vand.u32 4294901760, %v6441_v11  ;;  %v6453_v14 = vsub.f32 %v10223_v57, %v10613_v42  ;;  %v5326_v42 = vld [vmem:[#allocation9 + $0x228] sm:$0xff] }
0x17ca   : > { %6425 = vmatpush.msra.mxu3 %v6424_v61  ;;  %6341 = vmatpush.msra.mxu1 %v9947_v56  ;;  %v10277_v47 = vsub.f32 %v5330_v53, %v10253_v46  ;;  %v5327_v56 = vld [vmem:[#allocation9 + $0x230] sm:$0xff]  ;;  %v10731_v59 = vand.u32 4294901760, %v9934_v33  ;;  %v10733_v33 = vand.u32 4294901760, %v9945_v23  ;;  %v10734_v23 = vand.u32 4294901760, %v9959_v3 }
0x17cb   : > { %6268 = vmatpush.msrb.mxu0 %v10729_v28  ;;  %6376 = vmatpush.msra.mxu2 %v10156_v9  ;;  %v5261_v61 = vadd.f32 1.0, %v5257_v41  ;;  %v6464_v28 = vand.u32 4294901760, %v10251_v13  ;;  %v6470_v53 = vand.u32 4294901760, %v10265_v58  ;;  %v10290_v41 = vsub.f32 %v5329_v31, %v10267_v40 }
0x17cc   : > { %6431 = vmatpush.msra.mxu3 %v6430_v43  ;;  %6063 = vmatmul.f32.vlgmr.msra.gmra.mxu0 %v6062_v0  ;;  %v6448_v0 = vand.u32 4294901760, %v6447_v62  ;;  %v10732_v43 = vand.u32 4294901760, %v10238_v54  ;;  %v6476_v31 = vand.u32 4294901760, %v10277_v47  ;;  %v10303_v62 = vsub.f32 %v5328_v36, %v10279_v63 }
0x17cd   : > { %v5265_v21 = vmul.f32 %v5261_v61, %v5249_v19  ;;  %6272 = vmatpush.msrb.mxu0 %v10731_v59  ;;  %6343 = vmatpush.msra.mxu1 %v9961_v17  ;;  %v10295_v59 = vand.u32 4294901760, %v5327_v56  ;;  %v6454_v17 = vand.u32 4294901760, %v6453_v14  ;;  %v6471_v19 = vsub.f32 %v10265_v58, %v6470_v53 }
0x17ce   : > { %6378 = vmatpush.msra.mxu2 %v10168_v16  ;;  %6437 = vmatpush.msra.mxu3 %v6436_v51  ;;  %v6459_v11 = vsub.f32 %v10238_v54, %v10732_v43  ;;  %v6465_v51 = vsub.f32 %v10251_v13, %v6464_v28  ;;  %v6482_v61 = vand.u32 4294901760, %v10290_v41  ;;  %v10735_v36 = vand.u32 4294901760, %v9973_v35 }
0x17cf   : > { %7116 = vtanh.f32 %v5265_v21  ;;  %6276 = vmatpush.msrb.mxu0 %v10733_v33  ;;  %6345 = vmatpush.msra.mxu1 %v9975_v5  ;;  %v10308_v5 = vand.u32 4294901760, %v5326_v42  ;;  %v10319_v3 = vsub.f32 %v5327_v56, %v10295_v59  ;;  %v6488_v14 = vand.u32 4294901760, %v10303_v62 }
0x17d0   : > { %6380 = vmatpush.msra.mxu2 %v10185_v38  ;;  %6443 = vmatpush.msra.mxu3 %v6442_v60  ;;  %v6460_v21 = vand.u32 4294901760, %v6459_v11  ;;  %v6477_v60 = vsub.f32 %v10277_v47, %v6476_v31  ;;  %v10736_v43 = vand.u32 4294901760, %v9987_v20  ;;  %v6472_v56 = vand.u32 4294901760, %v6471_v19 }
0x17d1   : > { %6280 = vmatpush.msrb.mxu0 %v10734_v23  ;;  %6347 = vmatpush.msra.mxu1 %v9989_v30  ;;  %v6466_v30 = vand.u32 4294901760, %v6465_v51  ;;  %v10330_v35 = vsub.f32 %v5326_v42, %v10308_v5  ;;  %v6483_v11 = vsub.f32 %v10290_v41, %v6482_v61  ;;  %v10737_v33 = vand.u32 4294901760, %v10001_v15 }
0x17d2   : > { %6382 = vmatpush.msra.mxu2 %v10199_v27  ;;  %6449 = vmatpush.msra.mxu3 %v6448_v0  ;;  %v6494_v20 = vand.u32 4294901760, %v10319_v3  ;;  %v6478_v42 = vand.u32 4294901760, %v6477_v60  ;;  %v10738_v51 = vand.u32 4294901760, %v10015_v55  ;;  %v10739_v23 = vand.u32 4294901760, %v10029_v18 }
0x17d3   : > { %6284 = vmatpush.msrb.mxu0 %v10735_v36  ;;  %6349 = vmatpush.msra.mxu1 %v10003_v12  ;;  %v6500_v15 = vand.u32 4294901760, %v10330_v35  ;;  %v10741_v19 = vand.u32 4294901760, %v10058_v48  ;;  %v10743_v48 = vand.u32 4294901760, %v10134_v8 }
0x17d4   : > { %6384 = vmatpush.msra.mxu2 %v10212_v52  ;;  %6455 = vmatpush.msra.mxu3 %v6454_v17  ;;  %v6489_v17 = vsub.f32 %v10303_v62, %v6488_v14 }
0x17d5   : > { %v7117_v0 = vpop.eup %7116  ;;  %6288 = vmatpush.msrb.mxu0 %v10736_v43  ;;  %6351 = vmatpush.msra.mxu1 %v10021_v29  ;;  %v5245_v29 = vmul.f32 0.5, %v10229_v44  ;;  %v6484_v44 = vand.u32 4294901760, %v6483_v11  ;;  %v6501_v18 = vsub.f32 %v10330_v35, %v6500_v15 }
0x17d6   : > { %v5273_v12 = vadd.f32 1.0, %v7117_v0  ;;  %6386 = vmatpush.msra.mxu2 %v10225_v7  ;;  %6461 = vmatpush.msra.mxu3 %v6460_v21  ;;  %v6495_v21 = vsub.f32 %v10319_v3, %v6494_v20  ;;  %v6490_v55 = vand.u32 4294901760, %v6489_v17  ;;  %v10746_v0 = vld [vmem:[#allocation24_spill] sm:$0xff] }
0x17d7   : > { %6292 = vmatpush.msrb.mxu0 %v10737_v33  ;;  %6353 = vmatpush.msra.mxu1 %v10034_v32  ;;  %v10747_v43 = vand.u32 4294901760, %v10746_v0  ;;  %v10752_v33 = vand.u32 4294901760, %v10166_v45 }
0x17d8   : > { %6388 = vmatpush.msra.mxu2 %v10240_v39  ;;  %6467 = vmatpush.msra.mxu3 %v6466_v30  ;;  %v5277_v32 = vmul.f32 %v5273_v12, %v5245_v29  ;;  %v6496_v36 = vand.u32 4294901760, %v6495_v21  ;;  %v10748_v12 = vld [vmem:[#allocation22_spill] sm:$0xff] }
0x17d9   : > { %6296 = vmatpush.msrb.mxu0 %v10738_v51  ;;  %6355 = vmatpush.msra.mxu1 %v10047_v25  ;;  %v10740_v25 = vand.u32 4294901760, %v10045_v1  ;;  %v10742_v1 = vand.u32 4294901760, %v10070_v24  ;;  %v10745_v24 = vand.u32 4294901760, %v10146_v26 }
0x17da   : > { %6390 = vmatpush.msra.mxu2 %v10253_v46  ;;  %6473 = vmatpush.msra.mxu3 %v6472_v56  ;;  %v10749_v56 = vand.u32 4294901760, %v10748_v12 }
0x17db   : > { %6300 = vmatpush.msrb.mxu0 %v10739_v23  ;;  %6357 = vmatpush.msra.mxu1 %v10060_v2  ;;  %v10364_v2 = vand.u32 4294901760, %v5277_v32 }
0x17dc   : > { %6392 = vmatpush.msra.mxu2 %v10267_v40  ;;  %6479 = vmatpush.msra.mxu3 %v6478_v42 }
0x17dd   : > { %6304 = vmatpush.msrb.mxu0 %v10740_v25  ;;  %6359 = vmatpush.msra.mxu1 %v10072_v6  ;;  %v6502_v6 = vand.u32 4294901760, %v6501_v18  ;;  %v10376_v30 = vsub.f32 %v5277_v32, %v10364_v2 }
0x17de   : > { %6394 = vmatpush.msra.mxu2 %v10279_v63  ;;  %6485 = vmatpush.msra.mxu3 %v6484_v44 }
0x17df   : > { %6308 = vmatpush.msrb.mxu0 %v10741_v19  ;;  %6361 = vmatpush.msra.mxu1 %v10084_v37  ;;  %v10744_v37 = vand.u32 4294901760, %v10082_v34  ;;  %v6401_v60 = vand.u32 4294901760, %v10376_v30  ;;  %v10750_v34 = vld [vmem:[#allocation25_spill] sm:$0xff] }
0x17e0   : > { %6396 = vmatpush.msra.mxu2 %v10295_v59  ;;  %6491 = vmatpush.msra.mxu3 %v6490_v55  ;;  %v10751_v11 = vand.u32 4294901760, %v10750_v34 }
0x17e1   : > { %6363 = vmatmul.f32.vlgmr.msra.gmra.mxu1 %v10152_v50  ;;  %6312 = vmatpush.msrb.mxu0 %v10742_v1 }
0x17e2   : > { %6564 = vmatpush.msrb.mxu1 %v10115_v10  ;;  %6398 = vmatpush.msra.mxu2 %v10308_v5 }
0x17e3   : > { %6497 = vmatpush.msra.mxu3 %v6496_v36  ;;  %6316 = vmatpush.msrb.mxu0 %v10744_v37 }
0x17e4   : > { %6605 = vmatpush.msrb.mxu2 %v10743_v48  ;;  %6566 = vmatpush.msrb.mxu1 %v10129_v49 }
0x17e5   : > { %6503 = vmatpush.msra.mxu3 %v6502_v6  ;;  %6320 = vmatpush.msrb.mxu0 %v10747_v43 }
0x17e6   : > { %6609 = vmatpush.msrb.mxu2 %v10745_v24  ;;  %6568 = vmatpush.msrb.mxu1 %v10142_v22 }
0x17e7   : > { %6672 = vmatpush.msrb.mxu3 %v10115_v10  ;;  %6324 = vmatpush.msrb.mxu0 %v10751_v11  ;;  %v6402_v10 = vsub.f32 %v10376_v30, %v6401_v60 }
0x17e8   : > { %6613 = vmatpush.msrb.mxu2 %v10749_v56  ;;  %6570 = vmatpush.msrb.mxu1 %v10148_v4 }
0x17e9   : > { %6674 = vmatpush.msrb.mxu3 %v10129_v49  ;;  %6326 = vmatmul.f32.vlgmr.msrb.gmra.mxu0 %v10152_v50  ;;  %v10753_v49 = vld [vmem:[#allocation21_spill] sm:$0xff]  ;;  %v6403_v50 = vand.u32 4294901760, %v6402_v10 }
0x17ea   : > { %6505 = vmatmul.f32.vlgmr.msra.gmra.mxu3 %v10364_v2  ;;  %6572 = vmatpush.msrb.mxu1 %v10156_v9  ;;  %v10754_v29 = vand.u32 4294901760, %v10753_v49 }
0x17eb   : > { %6511 = vmatpush.msra.mxu0 %v10134_v8  ;;  %6617 = vmatpush.msrb.mxu2 %v10752_v33  ;;  %v10755_v8 = vld [vmem:[#allocation23_spill] sm:$0xff] }
0x17ec   : > { %6676 = vmatpush.msrb.mxu3 %v10142_v22  ;;  %6574 = vmatpush.msrb.mxu1 %v10168_v16  ;;  %v10756_v42 = vand.u32 4294901760, %v10755_v8  ;;  %v10757_v22 = vld [vmem:[#allocation26_spill] sm:$0xff] }
0x17ed   : > { %6514 = vmatpush.msra.mxu0 %v10146_v26  ;;  %6621 = vmatpush.msrb.mxu2 %v10754_v29  ;;  %v10758_v26 = vand.u32 4294901760, %v10757_v22 }
0x17ee   : > { %6678 = vmatpush.msrb.mxu3 %v10148_v4  ;;  %6576 = vmatpush.msrb.mxu1 %v10185_v38  ;;  %v10759_v4 = vand.u32 4294901760, %v10223_v57 }
0x17ef   : > { %6517 = vmatpush.msra.mxu0 %v10748_v12  ;;  %6625 = vmatpush.msrb.mxu2 %v10756_v42  ;;  %v7134_v12 = vld [vmem:[%s7570_s7] sm:$0xff] }
0x17f0   : > { %6680 = vmatpush.msrb.mxu3 %v10156_v9  ;;  %6578 = vmatpush.msrb.mxu1 %v10199_v27  ;;  %v10760_v9 = vand.u32 4294901760, %v10238_v54  ;;  %v6731_v56 = vcvt.s32.f32 %v7134_v12 }
0x17f1   : > { %6520 = vmatpush.msra.mxu0 %v10166_v45  ;;  %6629 = vmatpush.msrb.mxu2 %v10758_v26  ;;  %v5537_v45 = vpop.f32.mrf.mxu2 }
0x17f2   : > { %6682 = vmatpush.msrb.mxu3 %v10168_v16  ;;  %6404 = vmatmul.f32.vlgmr.msra.gmra.mxu2 %v6403_v50 }
0x17f3   : > { %6523 = vmatpush.msra.mxu0 %v10753_v49  ;;  %6580 = vmatpush.msrb.mxu1 %v10212_v52 }
0x17f4   : > { %6633 = vmatpush.msrb.mxu2 %v10759_v4  ;;  %6684 = vmatpush.msrb.mxu3 %v10185_v38 }
0x17f5   : > { %6526 = vmatpush.msra.mxu0 %v10755_v8  ;;  %6582 = vmatpush.msrb.mxu1 %v10225_v7 }
0x17f6   : > { %6637 = vmatpush.msrb.mxu2 %v10760_v9  ;;  %6686 = vmatpush.msrb.mxu3 %v10199_v27  ;;  %v5382_v27 = vpop.f32.mrf.mxu0 }
0x17f7   : > { %6529 = vmatpush.msra.mxu0 %v10757_v22  ;;  %6584 = vmatpush.msrb.mxu1 %v10240_v39 }
0x17f8   : > { %6641 = vmatpush.msrb.mxu2 %v6464_v28  ;;  %6688 = vmatpush.msrb.mxu3 %v10212_v52  ;;  %v7025_v52 = vld [vmem:[#allocation9 + $0x22] ss:$0 sm:$0xff] }
0x17f9   : > { %6532 = vmatpush.msra.mxu0 %v10223_v57  ;;  %6586 = vmatpush.msrb.mxu1 %v10253_v46  ;;  %v5383_v38 = vadd.f32 %v7025_v52, %v5382_v27  ;;  %v5483_v57 = vpop.f32.mrf.mxu1 }
0x17fa   : > { %6645 = vmatpush.msrb.mxu2 %v6470_v53  ;;  %6690 = vmatpush.msrb.mxu3 %v10225_v7 }
0x17fb   : > { %6535 = vmatpush.msra.mxu0 %v10238_v54  ;;  %6588 = vmatpush.msrb.mxu1 %v10267_v40  ;;  %v5484_v7 = vadd.f32 %v5483_v57, %v5383_v38 }
0x17fc   : > { %6649 = vmatpush.msrb.mxu2 %v6476_v31  ;;  %6692 = vmatpush.msrb.mxu3 %v10240_v39 }
0x17fd   : > { %6538 = vmatpush.msra.mxu0 %v10251_v13  ;;  %6590 = vmatpush.msrb.mxu1 %v10279_v63  ;;  %v5538_v16 = vadd.f32 %v5537_v45, %v5484_v7  ;;  %v5576_v13 = vpop.f32.mrf.mxu3  ;;  %v6746_v45 = vlaneseq }
0x17fe   : > { %6653 = vmatpush.msrb.mxu2 %v6482_v61  ;;  %6694 = vmatpush.msrb.mxu3 %v10253_v46 }
0x17ff   : > { %6541 = vmatpush.msra.mxu0 %v10265_v58  ;;  %6592 = vmatpush.msrb.mxu1 %v10295_v59  ;;  %v5577_v39 = vadd.f32 %v5576_v13, %v5538_v16  ;;  %v6747_v16 = vand.u32 127, %v6746_v45 }
0x1800   : > { %6657 = vmatpush.msrb.mxu2 %v6488_v14  ;;  %6696 = vmatpush.msrb.mxu3 %v10267_v40  ;;  %v5645_v54 = vpop.f32.mrf.mxu0 }
0x1801   : > { %6544 = vmatpush.msra.mxu0 %v10277_v47  ;;  %6594 = vmatpush.msrb.mxu1 %v10308_v5  ;;  %v5646_v46 = vadd.f32 %v5645_v54, %v5577_v39  ;;  %v5682_v58 = vpop.f32.mrf.mxu1  ;;  %vm6749_vm1 = vcmp.eq.s32.totalorder %v6747_v16, 8  ;;  %v10761_v54 = vmov 0.0  }
0x1802   : > { %6661 = vmatpush.msrb.mxu2 %v6494_v20  ;;  %6698 = vmatpush.msrb.mxu3 %v10279_v63  ;;  %v6916_v39 = vsel %vm6749_vm1, 1.0, %v10761_v54 }
0x1803   : > { %6598 = vmatmul.f32.vlgmr.msrb.gmra.mxu1 %v6401_v60  ;;  %6547 = vmatpush.msra.mxu0 %v10290_v41  ;;  %v5683_v28 = vadd.f32 %v5682_v58, %v5646_v46 }
0x1804   : > { %6665 = vmatpush.msrb.mxu2 %v6500_v15  ;;  %6700 = vmatpush.msrb.mxu3 %v10295_v59 }
0x1805   : > { %6667 = vmatmul.f32.vlgmr.msrb.gmra.mxu2 %v10364_v2  ;;  %6550 = vmatpush.msra.mxu0 %v10303_v62 }
0x1806   : > { %6702 = vmatpush.msrb.mxu3 %v10308_v5 }
0x1807   : > { %6704 = vmatmul.f32.vlgmr.msrb.gmra.mxu3 %v10364_v2  ;;  %6553 = vmatpush.msra.mxu0 %v10319_v3  ;;  %v5824_v63 = vpop.f32.mrf.mxu3 }
0x1809   : > { %6556 = vmatpush.msra.mxu0 %v10330_v35 }
0x180a   : > { %6559 = vmatmul.f32.vlgmr.msra.gmra.mxu0 %v10376_v30 }
0x180f   : > { %v5723_v40 = vpop.f32.mrf.mxu2 }
0x1810   : > { %v5724_v47 = vadd.f32 %v5723_v40, %v5683_v28  ;;  %v10762_v40 = vld [vmem:[#allocation20_spill] sm:$0xff] }
0x1812   : > { %v5825_v41 = vadd.f32 %v5824_v63, %v5724_v47 }
0x181a   : > { %v5917_v31 = vpop.f32.mrf.mxu1 }
0x1822   : > { %v5986_v5 = vpop.f32.mrf.mxu2 }
0x1824   : > { %v5878_v53 = vpop.f32.mrf.mxu0 }
0x1825   : > { %v5879_v59 = vadd.f32 %v5878_v53, %v5825_v41  ;;  %v6023_v3 = vpop.f32.mrf.mxu3 }
0x1827   : > { %v5918_v62 = vadd.f32 %v5917_v31, %v5879_v59 }
0x1829   : > { %v5987_v61 = vadd.f32 %v5986_v5, %v5918_v62 }
0x182b   : > { %v6024_v35 = vadd.f32 %v6023_v3, %v5987_v61 }
0x1840   : > { %v6165_v17 = vpop.f32.mrf.mxu1 }
0x1848   : > { %v6219_v15 = vpop.f32.mrf.mxu2 }
0x1849   : > { %v6064_v14 = vpop.f32.mrf.mxu0 }
0x184a   : > { %v6065_v20 = vadd.f32 %v6064_v14, %v6024_v35 }
0x184b   : > { %v6258_v44 = vpop.f32.mrf.mxu3 }
0x184c   : > { %v6166_v51 = vadd.f32 %v6165_v17, %v6065_v20 }
0x184e   : > { %v6220_v32 = vadd.f32 %v6219_v15, %v6166_v51 }
0x1850   : > { %v6259_v21 = vadd.f32 %v6258_v44, %v6220_v32 }
0x185e   : > { %v6364_v25 = vpop.f32.mrf.mxu1 }
0x1866   : > { %v6327_v23 = vpop.f32.mrf.mxu0 }
0x1867   : > { %v6328_v55 = vadd.f32 %v6327_v23, %v6259_v21 }
0x1869   : > { %v6365_v2 = vadd.f32 %v6364_v25, %v6328_v55 }
0x186d   : > { %v6506_v36 = vpop.f32.mrf.mxu3 }
0x1875   : > { %v6405_v18 = vpop.f32.mrf.mxu2 }
0x1876   : > { %v6406_v19 = vadd.f32 %v6405_v18, %v6365_v2 }
0x1878   : > { %v6507_v1 = vadd.f32 %v6506_v36, %v6406_v19 }
0x1880   : > { %v6599_v48 = vpop.f32.mrf.mxu1 }
0x1887   : > { %v6560_v6 = vpop.f32.mrf.mxu0 }
0x1888   : > { %v6561_v30 = vadd.f32 %v6560_v6, %v6507_v1  ;;  %v6668_v24 = vpop.f32.mrf.mxu2 }
0x188a   : > { %v6600_v37 = vadd.f32 %v6599_v48, %v6561_v30  ;;  %v6705_v0 = vpop.f32.mrf.mxu3 }
0x188c   : > { %v6669_v60 = vadd.f32 %v6668_v24, %v6600_v37 }
0x188e   : > { %v6706_v43 = vadd.f32 %v6705_v0, %v6669_v60 }
0x1890   : > { %6709 = vrot.lane.b32.xlu0 %v6706_v43, %s7377_s15  ;;  %v6748_v28 = vadd.f32 %v6706_v43, %v10762_v40 }
0x1898   : > { %6733 = vrot.lane.b32.xlu0 %v6731_v56, %s7378_s17 }
0x1902   : > { %v6710_v34 = vpop.permute.xlu0 %6709 }
0x1903   : > { %v6712_v11 = vmax.f32 %v6706_v43, %v6710_v34 }
0x1905   : > { %6717 = vrot.lane.b32.xlu1 %v6712_v11, %s7379_s12  ;;  %v6713_v22 = vsub.f32 %v6706_v43, %v6712_v11 }
0x1907   : > { %v6714_v26 = vmul.f32 1.442695, %v6713_v22 }
0x190a   : > { %v6734_v10 = vpop.permute.xlu0 %6733 }
0x190b   : > { %v6736_v33 = vmul.f32 %v6734_v10, %v6706_v43 }
0x190d   : > { %v6738_v49 = vsel %vm6737_vm4, %v6736_v33, 0.0 }
0x192f   : > { %6739 = vadd.xlane.f32.xlu1 %v6738_v49 }
0x1977   : > { %v6718_v29 = vpop.permute.xlu1 %6717 }
0x1978   : > { %v6720_v50 = vsub.f32 %v6706_v43, %v6718_v29 }
0x197a   : > { %v6721_v8 = vmul.f32 1.442695, %v6720_v50 }
0x197c   : > { %7118 = vpow2.f32 %v6721_v8 }
0x197d   : > { %7120 = vpow2.f32 %v6714_v26 }
0x1982   : > { %v7119_v42 = vpop.eup %7118 }
0x1983   : > { %6724 = vrot.lane.b32.xlu2 %v7119_v42, %s7377_s15  ;;  %v7121_v4 = vpop.eup %7120 }
0x19a2   : > { %v6740_v13 = vpop.xlane.xlu1 %6739 }
0x19dd   : > { %v6725_v9 = vpop.permute.xlu2 %6724 }
0x19de   : > { %v6727_v52 = vadd.f32 %v7121_v4, %v6725_v9 }
0x19e0   : > { %7122 = vlog2.f32 %v6727_v52 }
0x19e6   : > { %v7123_v27 = vpop.eup %7122 }
0x19e7   : > { %v6729_v38 = vmul.f32 0.6931472, %v7123_v27 }
0x19e9   : > { %v6730_v57 = vadd.f32 %v6729_v38, %v6712_v11 }
0x19eb   : > { %v6742_v7 = vsel %vm6741_vm0, %v6730_v57, 0.0 }
0x19ec   : > { %6743 = vadd.xlane.f32.xlu2 %v6742_v7 }
0x1a5f   : > { %v6744_v46 = vpop.xlane.xlu2 %6743 }
0x1a60   : > { %v6745_v58 = vsub.f32 %v6744_v46, %v6740_v13 }
0x1a62   : > { %v6752_v47 = vmul.f32 %v6916_v39, %v6745_v58 }
0x1a64   : > { %v6753_v63 = vadd.f32 %v6752_v47, %v6748_v28 }
0x1a66   : > { %6754 = vst [vmem:[%s331_s11] sm:$0xff] %v6753_v63 }
0x1a67   : > { %7312 = shalt.err (!%p7309_p9)
}
0x1a68   : > { %6941 = dma.vmem_to_hbm [thread:$0]  (%p7499_p7), %s6769_s13, 128, %s6771_s9, %s6756_s22  }
0x1a69 PF: > { %s6782_s23 = sand.u32 1, %s7351_s18   ;;  %p10763_p12 = scmp.ge.s32.totalorder %s7363_s21, 2 }
0x1a6a   : > { %s6783_s7 = scalar_lea.sflag [#allocation5], %s6782_s23 }
0x1a6b   : > { %p6961_p13 = pnand %p10763_p12, %p7445_p6 }
0x1a6d   : > { %p6962_p0 = pneg %p6961_p13 }
0x1a6f   : > { %7346 = dma.done.wait (%p6962_p0), %s6783_s7, 128  }
0x1a70   : > { %7348 = vsyncadd (%p6962_p0), %s6783_s7, 4294967168  ;;  %s10764_s24 = sld [smem:[#allocation18_spill]]  ;;  %p22_p3 = scmp.ge.s32.totalorder %s7485_s30, 4  }
0x1a71   : > { %s10765_s20 = sld [smem:[#allocation19_spill]]  ;;  %s10766_s18 = smov %s7355_s19 }
0x1a72   : > { %s10768_s21 = smov %s7485_s30  ;;  %24 = sbr.rel (!%p22_p3) target bundleno = 12 (0xc), region = 125 }
0x1a76   : > { %s10767_s19 = smov %s10764_s24 }
0x1a77   :  { %6789 = vsyncpa [#allocation4], 1 }
0x1a78   :  { %6791 = vsyncpa [#allocation4 + $0x1], 1 }
0x1a79   :  { %6792 = vsyncpa [#allocation7], 1 }
0x1a7a   :  { %6794 = vsyncpa [#allocation7 + $0x1], 1 }
0x1a7b   :  { %6795 = vsyncpa [#allocation10], 1 }
0x1a7c   :  { %6796 = vsyncpa [#allocation5], 1 }
0x1a7d   :  { %6798 = vsyncpa [#allocation5 + $0x1], 1 }

</bundles_post_ra>
